<compile_context>
chip_gen: v6e
topology: v6e:2x2x1
jax: 0.10.0
libtpu: 0.0.40
codegen_flags: <defaults>
</compile_context>

<pallas_src>
import jax
import jax.numpy as jnp
import numpy as np
from jax.experimental import pallas as pl
from jax.experimental.pallas import tpu as pltpu

OPAD = 128   # lane-dense padding of the fc output
SUB = 8      # sublane granule: batch is padded to a multiple of this


# ----------------------------------------------------------------------------- kernel

def make_model_kernel(num_rnn1_layers, num_rnn2_layers, T, B, H):
    """Kernel for fixed layer counts / shapes.  B is the (sublane-padded) batch.

    Ref layout (positional):
      inputs : x_flat (T*B, Din),
               per stacked layer (rnn1 layers then rnn2 layers):
                 A    (Din_l, 8H)  "same-row"   input-projection weights
                 Bm   (Din_l, 8H)  "mirror-row" input-projection weights
                 Wh   (2H, 8H)     recurrent weights (both directions, column-scattered)
                 bias (1, 8H)      b_ih + b_hh of both directions (folded into A proj)
               fc_a (2H, OPAD), fc_bm (2H, OPAD), fc_bias (1, OPAD)
      outputs: out (B, OPAD)
      scratch: qa, qb   (T*B, 8H)  hoisted input projections of the current layer
               p_a, p_b (T*B, 2H)  ping-pong step-packed layer outputs
               st (2*num_rnn1_layers, B, 2H)  rnn1 final (h, c) spill for rnn2 init
    """
    n_total = num_rnn1_layers + num_rnn2_layers
    H2 = 2 * H
    G8 = 8 * H
    unroll = True if T <= 16 else 8   # cap straight-line code growth for long sequences

    def kernel(*refs):
        x_ref = refs[0]
        lrefs = refs[1:1 + 4 * n_total]
        fca_ref = refs[1 + 4 * n_total]
        fcbm_ref = refs[2 + 4 * n_total]
        fcbias_ref = refs[3 + 4 * n_total]
        out_ref = refs[4 + 4 * n_total]
        qa_ref, qb_ref, p_a, p_b, st_ref = refs[5 + 4 * n_total:]

        # tanh-gate lane mask (g occupies lanes [4H:6H]) -- built once, hoisted.
        lane = jax.lax.broadcasted_iota(jnp.int32, (B, G8), 1)
        g_lanes = (lane >= 4 * H) & (lane < 6 * H)

        zero_state = jnp.zeros((B, H2), jnp.float32)

        def run_layer(inp_ref, a_ref, b_ref, wh_ref, bias_ref, p_out, h0, c0):
            # ---- hoisted, time-invariant input projection (one matmul pair / layer),
            #      bias folded in, written to VMEM scratch off the recurrent chain ----
            xin = inp_ref[...]
            qa_ref[...] = (jnp.dot(xin, a_ref[...], preferred_element_type=jnp.float32)
                           + bias_ref[...])
            qb_ref[...] = jnp.dot(xin, b_ref[...], preferred_element_type=jnp.float32)

            def step(s, carry):
                h, c = carry                                   # (B, 2H) packed [fwd|bwd]
                row = pl.multiple_of(s * B, SUB)
                rrow = pl.multiple_of((T - 1 - s) * B, SUB)
                # gate pre-activations: two hoisted-projection row loads + one recurrent
                # matmul.  wh_ref is re-read from VMEM (cheap vld; compiler hoists/CSEs).
                # TODO(synk): pltpu.matmul_push_rhs could pin Wh in MXU staging across T.
                gates = (qa_ref[pl.ds(row, B)] + qb_ref[pl.ds(rrow, B)]
                         + jnp.dot(h, wh_ref[...], preferred_element_type=jnp.float32))
                # full-width activations: 1 tanh + 1 sigmoid + 1 select over (B, 8H)
                act = jnp.where(g_lanes, jnp.tanh(gates), jax.nn.sigmoid(gates))
                i = act[:, 0 * H2:1 * H2]
                f = act[:, 1 * H2:2 * H2]
                g = act[:, 2 * H2:3 * H2]
                o = act[:, 3 * H2:4 * H2]
                c = f * c + i * g
                h = o * jnp.tanh(c)
                p_out[pl.ds(row, B)] = h                       # one contiguous row store
                return h, c

            return jax.lax.fori_loop(0, T, step, (h0, c0), unroll=unroll)

        pairs = (p_a, p_b)
        cur_in = x_ref
        out_idx = 0
        wl = 0

        # ---- rnn1: zero initial states; spill final (h, c) to VMEM for rnn2 ----
        for l in range(num_rnn1_layers):
            a_r, b_r, wh_r, bias_r = lrefs[4 * wl:4 * wl + 4]
            wl += 1
            p_out = pairs[out_idx]
            h, c = run_layer(cur_in, a_r, b_r, wh_r, bias_r, p_out, zero_state, zero_state)
            st_ref[2 * l] = h
            st_ref[2 * l + 1] = c
            cur_in = p_out
            out_idx = 1 - out_idx

        # ---- rnn2: initial states = rnn1 final states (same layer / direction) ----
        for l in range(num_rnn2_layers):
            a_r, b_r, wh_r, bias_r = lrefs[4 * wl:4 * wl + 4]
            wl += 1
            p_out = pairs[out_idx]
            run_layer(cur_in, a_r, b_r, wh_r, bias_r, p_out,
                      st_ref[2 * l], st_ref[2 * l + 1])
            cur_in = p_out
            out_idx = 1 - out_idx

        # ---- fc head on out2[:, -1, :] = [h_fwd_top(T-1) | h_bwd_top(T-1)] ----
        # Step-packed layout: h_fwd(T-1) sits in row-block T-1 (lanes [0:H]) and
        # h_bwd(T-1) in row-block 0 (lanes [H:2H]); the complementary lanes are
        # cancelled by the zero rows of the padded fc weights.
        last_fwd = cur_in[pl.ds((T - 1) * B, B)]
        last_bwd = cur_in[pl.ds(0, B)]
        out_ref[...] = (jnp.dot(last_fwd, fca_ref[...], preferred_element_type=jnp.float32)
                        + jnp.dot(last_bwd, fcbm_ref[...], preferred_element_type=jnp.float32)
                        + fcbias_ref[...])

    return kernel


# ----------------------------------------------------------------------------- wrapper

def lstm_classifier_forward(x, params):
    """Matches LSTMClassifier.forward: zero init -> rnn1 -> rnn2(h1, c1) -> fc(out[:, -1, :])."""
    B, T, Din = x.shape
    H = params["hidden_dim"]
    L = params["layer_dim"]
    O = params["output_dim"]
    Bp = max(SUB, ((B + SUB - 1) // SUB) * SUB)   # sublane-pad batch (review: B >= 8)

    # time-major, batch-padded, pre-flattened to (T*Bp, Din) -- no reshapes in-kernel.
    x_tbd = jnp.transpose(x.astype(jnp.float32), (1, 0, 2))
    x_pad = jnp.zeros((T, Bp, Din), jnp.float32).at[:, :B, :].set(x_tbd)
    x_flat = x_pad.reshape(T * Bp, Din)

    args = [x_flat]
    for (A, Bm, Wh, bias) in params["fused"]:
        args += [A, Bm, Wh, bias]
    args += [params["fc_a"], params["fc_bm"], params["fc_bias_pad"]]

    kernel = make_model_kernel(L, L, T, Bp, H)
    out_pad = pl.pallas_call(
        kernel,
        out_shape=jax.ShapeDtypeStruct((Bp, OPAD), jnp.float32),
        scratch_shapes=[
            pltpu.VMEM((T * Bp, 8 * H), jnp.float32),      # qa: A-projection (+bias)
            pltpu.VMEM((T * Bp, 8 * H), jnp.float32),      # qb: Bm-projection
            pltpu.VMEM((T * Bp, 2 * H), jnp.float32),      # p_a: layer output (ping)
            pltpu.VMEM((T * Bp, 2 * H), jnp.float32),      # p_b: layer output (pong)
            pltpu.VMEM((2 * L, Bp, 2 * H), jnp.float32),   # rnn1 final (h, c) spill
        ],
    )(*args)
    return out_pad[:B, :O]


# ----------------------------------------------------------------------------- params

def _uniform(key, shape, bound):
    return jax.random.uniform(key, shape, jnp.float32, -bound, bound)


def init_lstm_params(key, input_size, hidden_dim, num_layers):
    """Raw per-direction params: (W_ih (D,4H), W_hh (H,4H), b = b_ih + b_hh (4H,))."""
    bound = 1.0 / np.sqrt(hidden_dim)
    layers = []
    for l in range(num_layers):
        in_size = input_size if l == 0 else 2 * hidden_dim
        dirs = []
        for _ in range(2):  # fwd, bwd
            key, k1, k2, k3, k4 = jax.random.split(key, 5)
            wih = _uniform(k1, (in_size, 4 * hidden_dim), bound)
            whh = _uniform(k2, (hidden_dim, 4 * hidden_dim), bound)
            b = _uniform(k3, (4 * hidden_dim,), bound) + _uniform(k4, (4 * hidden_dim,), bound)
            dirs.append((wih, whh, b))
        layers.append(tuple(dirs))
    return key, layers


def fuse_layer_params(p_fwd, p_bwd, H, is_first):
    """Pack one bidirectional layer for the kernel's combined-gate lane layout
    [i_f,i_b | f_f,f_b | g_f,g_b | o_f,o_b]  (each gate block = 2H lanes).

    A ("same-row") and Bm ("mirror-row") are the two input-projection matrices such that
    QA[s] + QB[T-1-s] equals the x-side gate pre-activations of BOTH directions at loop
    step s, given the step-packed previous-layer output P[s] = [h_f(s) | h_b(T-1-s)].
    """
    wih_f, whh_f, b_f = p_fwd      # (D, 4H), (H, 4H), (4H,)
    wih_b, whh_b, b_b = p_bwd
    D = wih_f.shape[0]
    G8 = 8 * H

    def scat(dst, row0, src, d):
        # scatter per-direction gate cols [i|f|g|o] of src (n,4H) into combined-gate cols
        n = src.shape[0]
        for k in range(4):
            dst = dst.at[row0:row0 + n,
                         k * 2 * H + d * H:k * 2 * H + (d + 1) * H].set(src[:, k * H:(k + 1) * H])
        return dst

    if is_first:
        # layer input is the raw time-ordered sequence
        A = scat(jnp.zeros((D, G8), jnp.float32), 0, wih_f, 0)
        Bm = scat(jnp.zeros((D, G8), jnp.float32), 0, wih_b, 1)
    else:
        # layer input is the previous layer's step-packed output P[s] = [h_f(s)|h_b(T-1-s)]
        assert D == 2 * H
        A = scat(jnp.zeros((D, G8), jnp.float32), 0, wih_f[:H], 0)   # h_f(s)     -> fwd gates
        A = scat(A, H, wih_b[H:], 1)                                 # h_b(T-1-s) -> bwd gates
        Bm = scat(jnp.zeros((D, G8), jnp.float32), 0, wih_b[:H], 1)  # h_f(T-1-s) -> bwd gates
        Bm = scat(Bm, H, wih_f[H:], 0)                               # h_b(s)     -> fwd gates

    Wh = scat(jnp.zeros((2 * H, G8), jnp.float32), 0, whh_f, 0)
    Wh = scat(Wh, H, whh_b, 1)

    bias = scat(jnp.zeros((1, G8), jnp.float32), 0, b_f.reshape(1, 4 * H), 0)
    bias = scat(bias, 0, b_b.reshape(1, 4 * H), 1)
    return A, Bm, Wh, bias


def init_model_params(key, input_dim, hidden_dim, layer_dim, output_dim):
    key, rnn1 = init_lstm_params(key, input_dim, hidden_dim, layer_dim)
    key, rnn2 = init_lstm_params(key, 2 * hidden_dim, hidden_dim, layer_dim)
    bound = 1.0 / np.sqrt(2 * hidden_dim)
    key, kw, kb = jax.random.split(key, 3)
    fc_w = _uniform(kw, (2 * hidden_dim, output_dim), bound)
    fc_b = _uniform(kb, (output_dim,), bound)

    fused = [fuse_layer_params(pf, pb, hidden_dim, is_first=(l == 0))
             for l, (pf, pb) in enumerate(rnn1)]
    fused += [fuse_layer_params(pf, pb, hidden_dim, is_first=False) for (pf, pb) in rnn2]

    # fc weights split by direction rows and zero-padded to a lane-dense OPAD slab.
    H = hidden_dim
    fc_a = jnp.zeros((2 * H, OPAD), jnp.float32).at[:H, :output_dim].set(fc_w[:H])
    fc_bm = jnp.zeros((2 * H, OPAD), jnp.float32).at[H:, :output_dim].set(fc_w[H:])
    fc_bias_pad = jnp.zeros((1, OPAD), jnp.float32).at[0, :output_dim].set(fc_b)

    return {"rnn1": rnn1, "rnn2": rnn2, "fused": fused,
            "fc_w": fc_w, "fc_b": fc_b,
            "fc_a": fc_a, "fc_bm": fc_bm, "fc_bias_pad": fc_bias_pad,
            "hidden_dim": hidden_dim, "layer_dim": layer_dim, "output_dim": output_dim}


# ----------------------------------------------------------------------------- pure-JAX reference

def _ref_dir(x_tbd, wih, whh, b, h0, c0):
    H = h0.shape[-1]
    h, c = h0, c0
    outs = []
    for t in range(x_tbd.shape[0]):
        g = x_tbd[t] @ wih + h @ whh + b
        i = jax.nn.sigmoid(g[:, :H])
        f = jax.nn.sigmoid(g[:, H:2 * H])
        gg = jnp.tanh(g[:, 2 * H:3 * H])
        o = jax.nn.sigmoid(g[:, 3 * H:])
        c = f * c + i * gg
        h = o * jnp.tanh(c)
        outs.append(h)
    return jnp.stack(outs), h, c


def _ref_stack(x_btd, params, h0, c0):
    x = jnp.transpose(x_btd, (1, 0, 2))
    hs, cs = [], []
    for l, (pf, pb) in enumerate(params):
        of, hf, cf = _ref_dir(x, *pf, h0[2 * l], c0[2 * l])
        ob, hb, cb = _ref_dir(x[::-1], *pb, h0[2 * l + 1], c0[2 * l + 1])
        x = jnp.concatenate([of, ob[::-1]], axis=-1)
        hs += [hf, hb]
        cs += [cf, cb]
    return jnp.transpose(x, (1, 0, 2)), jnp.stack(hs), jnp.stack(cs)


def _ref_forward(x, params):
    B = x.shape[0]
    H, L = params["hidden_dim"], params["layer_dim"]
    h0 = jnp.zeros((L * 2, B, H), jnp.float32)
    c0 = jnp.zeros((L * 2, B, H), jnp.float32)
    o1, h1, c1 = _ref_stack(x, params["rnn1"], h0, c0)
    o2, _, _ = _ref_stack(o1, params["rnn2"], h1, c1)
    return o2[:, -1, :] @ params["fc_w"] + params["fc_b"]


# ----------------------------------------------------------------------------- main

if __name__ == "__main__":
    B, T = 4, 8
    input_dim, hidden_dim, layer_dim, output_dim = 16, 32, 2, 8

    key = jax.random.PRNGKey(0)
    key, kx = jax.random.split(key)
    x = jax.random.normal(kx, (B, T, input_dim), jnp.float32)

    params = init_model_params(key, input_dim, hidden_dim, layer_dim, output_dim)

    out = jax.block_until_ready(lstm_classifier_forward(x, params))
    ref = jax.block_until_ready(_ref_forward(x, params))

    np.testing.assert_allclose(np.asarray(out), np.asarray(ref), rtol=1e-4, atol=2e-5)
    assert out.shape == (B, output_dim)
    print("KERNEL_OK")
</pallas_src>

<mosaic_0001>
module attributes {stable_mosaic.version = 11 : i64} {
  func.func @kernel(%arg0: memref<64x16xf32, #tpu.memory_space<vmem>>, %arg1: memref<16x256xf32, #tpu.memory_space<vmem>>, %arg2: memref<16x256xf32, #tpu.memory_space<vmem>>, %arg3: memref<64x256xf32, #tpu.memory_space<vmem>>, %arg4: memref<1x256xf32, #tpu.memory_space<vmem>>, %arg5: memref<64x256xf32, #tpu.memory_space<vmem>>, %arg6: memref<64x256xf32, #tpu.memory_space<vmem>>, %arg7: memref<64x256xf32, #tpu.memory_space<vmem>>, %arg8: memref<1x256xf32, #tpu.memory_space<vmem>>, %arg9: memref<64x256xf32, #tpu.memory_space<vmem>>, %arg10: memref<64x256xf32, #tpu.memory_space<vmem>>, %arg11: memref<64x256xf32, #tpu.memory_space<vmem>>, %arg12: memref<1x256xf32, #tpu.memory_space<vmem>>, %arg13: memref<64x256xf32, #tpu.memory_space<vmem>>, %arg14: memref<64x256xf32, #tpu.memory_space<vmem>>, %arg15: memref<64x256xf32, #tpu.memory_space<vmem>>, %arg16: memref<1x256xf32, #tpu.memory_space<vmem>>, %arg17: memref<64x128xf32, #tpu.memory_space<vmem>>, %arg18: memref<64x128xf32, #tpu.memory_space<vmem>>, %arg19: memref<1x128xf32, #tpu.memory_space<vmem>>, %arg20: memref<8x128xf32, #tpu.memory_space<vmem>>, %arg21: memref<64x256xf32, #tpu.memory_space<vmem>>, %arg22: memref<64x256xf32, #tpu.memory_space<vmem>>, %arg23: memref<64x64xf32, #tpu.memory_space<vmem>>, %arg24: memref<64x64xf32, #tpu.memory_space<vmem>>, %arg25: memref<4x8x64xf32, #tpu.memory_space<vmem>>) attributes {dimension_semantics = [], scalar_prefetch = 0 : i64, scratch_operands = 5 : i64, tpu.core_type = #tpu.core_type<tc>} {
    %0 = tpu.iota {dimensions = array<i32: 1>} : vector<8x256xi32>
    %c128_i32 = arith.constant 128 : i32
    %1 = vector.broadcast %c128_i32 : i32 to vector<8x256xi32>
    %2 = arith.cmpi sge, %0, %1 : vector<8x256xi32>
    %c192_i32 = arith.constant 192 : i32
    %3 = vector.broadcast %c192_i32 : i32 to vector<8x256xi32>
    %4 = arith.cmpi slt, %0, %3 : vector<8x256xi32>
    %5 = arith.andi %2, %4 : vector<8x256xi1>
    %cst = arith.constant 0.000000e+00 : f32
    %6 = vector.broadcast %cst : f32 to vector<8x64xf32>
    %c0 = arith.constant 0 : index
    %c0_0 = arith.constant 0 : index
    %7 = vector.load %arg0[%c0, %c0_0] : memref<64x16xf32, #tpu.memory_space<vmem>>, vector<64x16xf32>
    %c0_1 = arith.constant 0 : index
    %c0_2 = arith.constant 0 : index
    %8 = vector.load %arg1[%c0_1, %c0_2] : memref<16x256xf32, #tpu.memory_space<vmem>>, vector<16x256xf32>
    %cst_3 = arith.constant dense<0.000000e+00> : vector<64x256xf32>
    %9 = tpu.matmul %7, %8, %cst_3 {dimension_numbers = #tpu.dot_dimension_numbers<[1], [0], [0], [1], [0, 0, 1, 1], [], []>} : vector<64x16xf32>, vector<16x256xf32>, vector<64x256xf32> -> vector<64x256xf32>
    %c0_4 = arith.constant 0 : index
    %c0_5 = arith.constant 0 : index
    %10 = vector.load %arg4[%c0_4, %c0_5] : memref<1x256xf32, #tpu.memory_space<vmem>>, vector<1x256xf32>
    %11 = vector.broadcast %10 : vector<1x256xf32> to vector<64x256xf32>
    %12 = arith.addf %9, %11 : vector<64x256xf32>
    %c0_6 = arith.constant 0 : index
    %c0_7 = arith.constant 0 : index
    %13 = vector.load %arg21[%c0_6, %c0_7] : memref<64x256xf32, #tpu.memory_space<vmem>>, vector<64x256xf32>
    tpu.vector_store %arg21[%c0_6, %c0_7], %12 {strides = array<i32>} : memref<64x256xf32, #tpu.memory_space<vmem>>, vector<64x256xf32>,
    %c0_8 = arith.constant 0 : index
    %c0_9 = arith.constant 0 : index
    %14 = vector.load %arg2[%c0_8, %c0_9] : memref<16x256xf32, #tpu.memory_space<vmem>>, vector<16x256xf32>
    %cst_10 = arith.constant dense<0.000000e+00> : vector<64x256xf32>
    %15 = tpu.matmul %7, %14, %cst_10 {dimension_numbers = #tpu.dot_dimension_numbers<[1], [0], [0], [1], [0, 0, 1, 1], [], []>} : vector<64x16xf32>, vector<16x256xf32>, vector<64x256xf32> -> vector<64x256xf32>
    %c0_11 = arith.constant 0 : index
    %c0_12 = arith.constant 0 : index
    %16 = vector.load %arg22[%c0_11, %c0_12] : memref<64x256xf32, #tpu.memory_space<vmem>>, vector<64x256xf32>
    tpu.vector_store %arg22[%c0_11, %c0_12], %15 {strides = array<i32>} : memref<64x256xf32, #tpu.memory_space<vmem>>, vector<64x256xf32>,
    %c0_i32 = arith.constant 0 : i32
    %c8_i32 = arith.constant 8 : i32
    %17 = arith.muli %c0_i32, %c8_i32 : i32
    %18 = tpu.assume_multiple %17, 8 : i32
    %c7_i32 = arith.constant 7 : i32
    %19 = arith.subi %c7_i32, %c0_i32 : i32
    %c8_i32_13 = arith.constant 8 : i32
    %20 = arith.muli %19, %c8_i32_13 : i32
    %21 = tpu.assume_multiple %20, 8 : i32
    %22 = arith.index_cast %18 : i32 to index
    %c0_14 = arith.constant 0 : index
    %23 = vector.load %arg21[%22, %c0_14] : memref<64x256xf32, #tpu.memory_space<vmem>>, vector<8x256xf32>
    %24 = arith.index_cast %21 : i32 to index
    %c0_15 = arith.constant 0 : index
    %25 = vector.load %arg22[%24, %c0_15] : memref<64x256xf32, #tpu.memory_space<vmem>>, vector<8x256xf32>
    %26 = arith.addf %23, %25 : vector<8x256xf32>
    %c0_16 = arith.constant 0 : index
    %c0_17 = arith.constant 0 : index
    %27 = vector.load %arg3[%c0_16, %c0_17] : memref<64x256xf32, #tpu.memory_space<vmem>>, vector<64x256xf32>
    %cst_18 = arith.constant dense<0.000000e+00> : vector<8x256xf32>
    %28 = tpu.matmul %6, %27, %cst_18 {dimension_numbers = #tpu.dot_dimension_numbers<[1], [0], [0], [1], [0, 0, 1, 1], [], []>} : vector<8x64xf32>, vector<64x256xf32>, vector<8x256xf32> -> vector<8x256xf32>
    %29 = arith.addf %26, %28 : vector<8x256xf32>
    %30 = math.tanh %29 : vector<8x256xf32>
    %31 = arith.negf %29 : vector<8x256xf32>
    %32 = math.exp %31 : vector<8x256xf32>
    %cst_19 = arith.constant 1.000000e+00 : f32
    %33 = vector.broadcast %cst_19 : f32 to vector<8x256xf32>
    %34 = arith.addf %33, %32 : vector<8x256xf32>
    %35 = arith.divf %33, %34 : vector<8x256xf32>
    %36 = arith.select %5, %30, %35 : vector<8x256xi1>, vector<8x256xf32>
    %37 = vector.extract_strided_slice %36 {offsets = [0, 0], sizes = [8, 64], strides = [1, 1]} : vector<8x256xf32> to vector<8x64xf32>
    %38 = vector.extract_strided_slice %36 {offsets = [0, 64], sizes = [8, 64], strides = [1, 1]} : vector<8x256xf32> to vector<8x64xf32>
    %39 = vector.extract_strided_slice %36 {offsets = [0, 128], sizes = [8, 64], strides = [1, 1]} : vector<8x256xf32> to vector<8x64xf32>
    %40 = vector.extract_strided_slice %36 {offsets = [0, 192], sizes = [8, 64], strides = [1, 1]} : vector<8x256xf32> to vector<8x64xf32>
    %41 = arith.mulf %38, %6 : vector<8x64xf32>
    %42 = arith.mulf %37, %39 : vector<8x64xf32>
    %43 = arith.addf %41, %42 : vector<8x64xf32>
    %44 = math.tanh %43 : vector<8x64xf32>
    %45 = arith.mulf %40, %44 : vector<8x64xf32>
    %46 = arith.index_cast %18 : i32 to index
    %c0_20 = arith.constant 0 : index
    %47 = vector.load %arg23[%46, %c0_20] : memref<64x64xf32, #tpu.memory_space<vmem>>, vector<8x64xf32>
    tpu.vector_store %arg23[%46, %c0_20], %45 {strides = array<i32>} : memref<64x64xf32, #tpu.memory_space<vmem>>, vector<8x64xf32>,
    %c1_i32 = arith.constant 1 : i32
    %c8_i32_21 = arith.constant 8 : i32
    %48 = arith.muli %c1_i32, %c8_i32_21 : i32
    %49 = tpu.assume_multiple %48, 8 : i32
    %c7_i32_22 = arith.constant 7 : i32
    %50 = arith.subi %c7_i32_22, %c1_i32 : i32
    %c8_i32_23 = arith.constant 8 : i32
    %51 = arith.muli %50, %c8_i32_23 : i32
    %52 = tpu.assume_multiple %51, 8 : i32
    %53 = arith.index_cast %49 : i32 to index
    %c0_24 = arith.constant 0 : index
    %54 = vector.load %arg21[%53, %c0_24] : memref<64x256xf32, #tpu.memory_space<vmem>>, vector<8x256xf32>
    %55 = arith.index_cast %52 : i32 to index
    %c0_25 = arith.constant 0 : index
    %56 = vector.load %arg22[%55, %c0_25] : memref<64x256xf32, #tpu.memory_space<vmem>>, vector<8x256xf32>
    %57 = arith.addf %54, %56 : vector<8x256xf32>
    %c0_26 = arith.constant 0 : index
    %c0_27 = arith.constant 0 : index
    %58 = vector.load %arg3[%c0_26, %c0_27] : memref<64x256xf32, #tpu.memory_space<vmem>>, vector<64x256xf32>
    %cst_28 = arith.constant dense<0.000000e+00> : vector<8x256xf32>
    %59 = tpu.matmul %45, %58, %cst_28 {dimension_numbers = #tpu.dot_dimension_numbers<[1], [0], [0], [1], [0, 0, 1, 1], [], []>} : vector<8x64xf32>, vector<64x256xf32>, vector<8x256xf32> -> vector<8x256xf32>
    %60 = arith.addf %57, %59 : vector<8x256xf32>
    %61 = math.tanh %60 : vector<8x256xf32>
    %62 = arith.negf %60 : vector<8x256xf32>
    %63 = math.exp %62 : vector<8x256xf32>
    %cst_29 = arith.constant 1.000000e+00 : f32
    %64 = vector.broadcast %cst_29 : f32 to vector<8x256xf32>
    %65 = arith.addf %64, %63 : vector<8x256xf32>
    %66 = arith.divf %64, %65 : vector<8x256xf32>
    %67 = arith.select %5, %61, %66 : vector<8x256xi1>, vector<8x256xf32>
    %68 = vector.extract_strided_slice %67 {offsets = [0, 0], sizes = [8, 64], strides = [1, 1]} : vector<8x256xf32> to vector<8x64xf32>
    %69 = vector.extract_strided_slice %67 {offsets = [0, 64], sizes = [8, 64], strides = [1, 1]} : vector<8x256xf32> to vector<8x64xf32>
    %70 = vector.extract_strided_slice %67 {offsets = [0, 128], sizes = [8, 64], strides = [1, 1]} : vector<8x256xf32> to vector<8x64xf32>
    %71 = vector.extract_strided_slice %67 {offsets = [0, 192], sizes = [8, 64], strides = [1, 1]} : vector<8x256xf32> to vector<8x64xf32>
    %72 = arith.mulf %69, %43 : vector<8x64xf32>
    %73 = arith.mulf %68, %70 : vector<8x64xf32>
    %74 = arith.addf %72, %73 : vector<8x64xf32>
    %75 = math.tanh %74 : vector<8x64xf32>
    %76 = arith.mulf %71, %75 : vector<8x64xf32>
    %77 = arith.index_cast %49 : i32 to index
    %c0_30 = arith.constant 0 : index
    %78 = vector.load %arg23[%77, %c0_30] : memref<64x64xf32, #tpu.memory_space<vmem>>, vector<8x64xf32>
    tpu.vector_store %arg23[%77, %c0_30], %76 {strides = array<i32>} : memref<64x64xf32, #tpu.memory_space<vmem>>, vector<8x64xf32>,
    %c2_i32 = arith.constant 2 : i32
    %c8_i32_31 = arith.constant 8 : i32
    %79 = arith.muli %c2_i32, %c8_i32_31 : i32
    %80 = tpu.assume_multiple %79, 8 : i32
    %c7_i32_32 = arith.constant 7 : i32
    %81 = arith.subi %c7_i32_32, %c2_i32 : i32
    %c8_i32_33 = arith.constant 8 : i32
    %82 = arith.muli %81, %c8_i32_33 : i32
    %83 = tpu.assume_multiple %82, 8 : i32
    %84 = arith.index_cast %80 : i32 to index
    %c0_34 = arith.constant 0 : index
    %85 = vector.load %arg21[%84, %c0_34] : memref<64x256xf32, #tpu.memory_space<vmem>>, vector<8x256xf32>
    %86 = arith.index_cast %83 : i32 to index
    %c0_35 = arith.constant 0 : index
    %87 = vector.load %arg22[%86, %c0_35] : memref<64x256xf32, #tpu.memory_space<vmem>>, vector<8x256xf32>
    %88 = arith.addf %85, %87 : vector<8x256xf32>
    %c0_36 = arith.constant 0 : index
    %c0_37 = arith.constant 0 : index
    %89 = vector.load %arg3[%c0_36, %c0_37] : memref<64x256xf32, #tpu.memory_space<vmem>>, vector<64x256xf32>
    %cst_38 = arith.constant dense<0.000000e+00> : vector<8x256xf32>
    %90 = tpu.matmul %76, %89, %cst_38 {dimension_numbers = #tpu.dot_dimension_numbers<[1], [0], [0], [1], [0, 0, 1, 1], [], []>} : vector<8x64xf32>, vector<64x256xf32>, vector<8x256xf32> -> vector<8x256xf32>
    %91 = arith.addf %88, %90 : vector<8x256xf32>
    %92 = math.tanh %91 : vector<8x256xf32>
    %93 = arith.negf %91 : vector<8x256xf32>
    %94 = math.exp %93 : vector<8x256xf32>
    %cst_39 = arith.constant 1.000000e+00 : f32
    %95 = vector.broadcast %cst_39 : f32 to vector<8x256xf32>
    %96 = arith.addf %95, %94 : vector<8x256xf32>
    %97 = arith.divf %95, %96 : vector<8x256xf32>
    %98 = arith.select %5, %92, %97 : vector<8x256xi1>, vector<8x256xf32>
    %99 = vector.extract_strided_slice %98 {offsets = [0, 0], sizes = [8, 64], strides = [1, 1]} : vector<8x256xf32> to vector<8x64xf32>
    %100 = vector.extract_strided_slice %98 {offsets = [0, 64], sizes = [8, 64], strides = [1, 1]} : vector<8x256xf32> to vector<8x64xf32>
    %101 = vector.extract_strided_slice %98 {offsets = [0, 128], sizes = [8, 64], strides = [1, 1]} : vector<8x256xf32> to vector<8x64xf32>
    %102 = vector.extract_strided_slice %98 {offsets = [0, 192], sizes = [8, 64], strides = [1, 1]} : vector<8x256xf32> to vector<8x64xf32>
    %103 = arith.mulf %100, %74 : vector<8x64xf32>
    %104 = arith.mulf %99, %101 : vector<8x64xf32>
    %105 = arith.addf %103, %104 : vector<8x64xf32>
    %106 = math.tanh %105 : vector<8x64xf32>
    %107 = arith.mulf %102, %106 : vector<8x64xf32>
    %108 = arith.index_cast %80 : i32 to index
    %c0_40 = arith.constant 0 : index
    %109 = vector.load %arg23[%108, %c0_40] : memref<64x64xf32, #tpu.memory_space<vmem>>, vector<8x64xf32>
    tpu.vector_store %arg23[%108, %c0_40], %107 {strides = array<i32>} : memref<64x64xf32, #tpu.memory_space<vmem>>, vector<8x64xf32>,
    %c3_i32 = arith.constant 3 : i32
    %c8_i32_41 = arith.constant 8 : i32
    %110 = arith.muli %c3_i32, %c8_i32_41 : i32
    %111 = tpu.assume_multiple %110, 8 : i32
    %c7_i32_42 = arith.constant 7 : i32
    %112 = arith.subi %c7_i32_42, %c3_i32 : i32
    %c8_i32_43 = arith.constant 8 : i32
    %113 = arith.muli %112, %c8_i32_43 : i32
    %114 = tpu.assume_multiple %113, 8 : i32
    %115 = arith.index_cast %111 : i32 to index
    %c0_44 = arith.constant 0 : index
    %116 = vector.load %arg21[%115, %c0_44] : memref<64x256xf32, #tpu.memory_space<vmem>>, vector<8x256xf32>
    %117 = arith.index_cast %114 : i32 to index
    %c0_45 = arith.constant 0 : index
    %118 = vector.load %arg22[%117, %c0_45] : memref<64x256xf32, #tpu.memory_space<vmem>>, vector<8x256xf32>
    %119 = arith.addf %116, %118 : vector<8x256xf32>
    %c0_46 = arith.constant 0 : index
    %c0_47 = arith.constant 0 : index
    %120 = vector.load %arg3[%c0_46, %c0_47] : memref<64x256xf32, #tpu.memory_space<vmem>>, vector<64x256xf32>
    %cst_48 = arith.constant dense<0.000000e+00> : vector<8x256xf32>
    %121 = tpu.matmul %107, %120, %cst_48 {dimension_numbers = #tpu.dot_dimension_numbers<[1], [0], [0], [1], [0, 0, 1, 1], [], []>} : vector<8x64xf32>, vector<64x256xf32>, vector<8x256xf32> -> vector<8x256xf32>
    %122 = arith.addf %119, %121 : vector<8x256xf32>
    %123 = math.tanh %122 : vector<8x256xf32>
    %124 = arith.negf %122 : vector<8x256xf32>
    %125 = math.exp %124 : vector<8x256xf32>
    %cst_49 = arith.constant 1.000000e+00 : f32
    %126 = vector.broadcast %cst_49 : f32 to vector<8x256xf32>
    %127 = arith.addf %126, %125 : vector<8x256xf32>
    %128 = arith.divf %126, %127 : vector<8x256xf32>
    %129 = arith.select %5, %123, %128 : vector<8x256xi1>, vector<8x256xf32>
    %130 = vector.extract_strided_slice %129 {offsets = [0, 0], sizes = [8, 64], strides = [1, 1]} : vector<8x256xf32> to vector<8x64xf32>
    %131 = vector.extract_strided_slice %129 {offsets = [0, 64], sizes = [8, 64], strides = [1, 1]} : vector<8x256xf32> to vector<8x64xf32>
    %132 = vector.extract_strided_slice %129 {offsets = [0, 128], sizes = [8, 64], strides = [1, 1]} : vector<8x256xf32> to vector<8x64xf32>
    %133 = vector.extract_strided_slice %129 {offsets = [0, 192], sizes = [8, 64], strides = [1, 1]} : vector<8x256xf32> to vector<8x64xf32>
    %134 = arith.mulf %131, %105 : vector<8x64xf32>
    %135 = arith.mulf %130, %132 : vector<8x64xf32>
    %136 = arith.addf %134, %135 : vector<8x64xf32>
    %137 = math.tanh %136 : vector<8x64xf32>
    %138 = arith.mulf %133, %137 : vector<8x64xf32>
    %139 = arith.index_cast %111 : i32 to index
    %c0_50 = arith.constant 0 : index
    %140 = vector.load %arg23[%139, %c0_50] : memref<64x64xf32, #tpu.memory_space<vmem>>, vector<8x64xf32>
    tpu.vector_store %arg23[%139, %c0_50], %138 {strides = array<i32>} : memref<64x64xf32, #tpu.memory_space<vmem>>, vector<8x64xf32>,
    %c4_i32 = arith.constant 4 : i32
    %c8_i32_51 = arith.constant 8 : i32
    %141 = arith.muli %c4_i32, %c8_i32_51 : i32
    %142 = tpu.assume_multiple %141, 8 : i32
    %c7_i32_52 = arith.constant 7 : i32
    %143 = arith.subi %c7_i32_52, %c4_i32 : i32
    %c8_i32_53 = arith.constant 8 : i32
    %144 = arith.muli %143, %c8_i32_53 : i32
    %145 = tpu.assume_multiple %144, 8 : i32
    %146 = arith.index_cast %142 : i32 to index
    %c0_54 = arith.constant 0 : index
    %147 = vector.load %arg21[%146, %c0_54] : memref<64x256xf32, #tpu.memory_space<vmem>>, vector<8x256xf32>
    %148 = arith.index_cast %145 : i32 to index
    %c0_55 = arith.constant 0 : index
    %149 = vector.load %arg22[%148, %c0_55] : memref<64x256xf32, #tpu.memory_space<vmem>>, vector<8x256xf32>
    %150 = arith.addf %147, %149 : vector<8x256xf32>
    %c0_56 = arith.constant 0 : index
    %c0_57 = arith.constant 0 : index
    %151 = vector.load %arg3[%c0_56, %c0_57] : memref<64x256xf32, #tpu.memory_space<vmem>>, vector<64x256xf32>
    %cst_58 = arith.constant dense<0.000000e+00> : vector<8x256xf32>
    %152 = tpu.matmul %138, %151, %cst_58 {dimension_numbers = #tpu.dot_dimension_numbers<[1], [0], [0], [1], [0, 0, 1, 1], [], []>} : vector<8x64xf32>, vector<64x256xf32>, vector<8x256xf32> -> vector<8x256xf32>
    %153 = arith.addf %150, %152 : vector<8x256xf32>
    %154 = math.tanh %153 : vector<8x256xf32>
    %155 = arith.negf %153 : vector<8x256xf32>
    %156 = math.exp %155 : vector<8x256xf32>
    %cst_59 = arith.constant 1.000000e+00 : f32
    %157 = vector.broadcast %cst_59 : f32 to vector<8x256xf32>
    %158 = arith.addf %157, %156 : vector<8x256xf32>
    %159 = arith.divf %157, %158 : vector<8x256xf32>
    %160 = arith.select %5, %154, %159 : vector<8x256xi1>, vector<8x256xf32>
    %161 = vector.extract_strided_slice %160 {offsets = [0, 0], sizes = [8, 64], strides = [1, 1]} : vector<8x256xf32> to vector<8x64xf32>
    %162 = vector.extract_strided_slice %160 {offsets = [0, 64], sizes = [8, 64], strides = [1, 1]} : vector<8x256xf32> to vector<8x64xf32>
    %163 = vector.extract_strided_slice %160 {offsets = [0, 128], sizes = [8, 64], strides = [1, 1]} : vector<8x256xf32> to vector<8x64xf32>
    %164 = vector.extract_strided_slice %160 {offsets = [0, 192], sizes = [8, 64], strides = [1, 1]} : vector<8x256xf32> to vector<8x64xf32>
    %165 = arith.mulf %162, %136 : vector<8x64xf32>
    %166 = arith.mulf %161, %163 : vector<8x64xf32>
    %167 = arith.addf %165, %166 : vector<8x64xf32>
    %168 = math.tanh %167 : vector<8x64xf32>
    %169 = arith.mulf %164, %168 : vector<8x64xf32>
    %170 = arith.index_cast %142 : i32 to index
    %c0_60 = arith.constant 0 : index
    %171 = vector.load %arg23[%170, %c0_60] : memref<64x64xf32, #tpu.memory_space<vmem>>, vector<8x64xf32>
    tpu.vector_store %arg23[%170, %c0_60], %169 {strides = array<i32>} : memref<64x64xf32, #tpu.memory_space<vmem>>, vector<8x64xf32>,
    %c5_i32 = arith.constant 5 : i32
    %c8_i32_61 = arith.constant 8 : i32
    %172 = arith.muli %c5_i32, %c8_i32_61 : i32
    %173 = tpu.assume_multiple %172, 8 : i32
    %c7_i32_62 = arith.constant 7 : i32
    %174 = arith.subi %c7_i32_62, %c5_i32 : i32
    %c8_i32_63 = arith.constant 8 : i32
    %175 = arith.muli %174, %c8_i32_63 : i32
    %176 = tpu.assume_multiple %175, 8 : i32
    %177 = arith.index_cast %173 : i32 to index
    %c0_64 = arith.constant 0 : index
    %178 = vector.load %arg21[%177, %c0_64] : memref<64x256xf32, #tpu.memory_space<vmem>>, vector<8x256xf32>
    %179 = arith.index_cast %176 : i32 to index
    %c0_65 = arith.constant 0 : index
    %180 = vector.load %arg22[%179, %c0_65] : memref<64x256xf32, #tpu.memory_space<vmem>>, vector<8x256xf32>
    %181 = arith.addf %178, %180 : vector<8x256xf32>
    %c0_66 = arith.constant 0 : index
    %c0_67 = arith.constant 0 : index
    %182 = vector.load %arg3[%c0_66, %c0_67] : memref<64x256xf32, #tpu.memory_space<vmem>>, vector<64x256xf32>
    %cst_68 = arith.constant dense<0.000000e+00> : vector<8x256xf32>
    %183 = tpu.matmul %169, %182, %cst_68 {dimension_numbers = #tpu.dot_dimension_numbers<[1], [0], [0], [1], [0, 0, 1, 1], [], []>} : vector<8x64xf32>, vector<64x256xf32>, vector<8x256xf32> -> vector<8x256xf32>
    %184 = arith.addf %181, %183 : vector<8x256xf32>
    %185 = math.tanh %184 : vector<8x256xf32>
    %186 = arith.negf %184 : vector<8x256xf32>
    %187 = math.exp %186 : vector<8x256xf32>
    %cst_69 = arith.constant 1.000000e+00 : f32
    %188 = vector.broadcast %cst_69 : f32 to vector<8x256xf32>
    %189 = arith.addf %188, %187 : vector<8x256xf32>
    %190 = arith.divf %188, %189 : vector<8x256xf32>
    %191 = arith.select %5, %185, %190 : vector<8x256xi1>, vector<8x256xf32>
    %192 = vector.extract_strided_slice %191 {offsets = [0, 0], sizes = [8, 64], strides = [1, 1]} : vector<8x256xf32> to vector<8x64xf32>
    %193 = vector.extract_strided_slice %191 {offsets = [0, 64], sizes = [8, 64], strides = [1, 1]} : vector<8x256xf32> to vector<8x64xf32>
    %194 = vector.extract_strided_slice %191 {offsets = [0, 128], sizes = [8, 64], strides = [1, 1]} : vector<8x256xf32> to vector<8x64xf32>
    %195 = vector.extract_strided_slice %191 {offsets = [0, 192], sizes = [8, 64], strides = [1, 1]} : vector<8x256xf32> to vector<8x64xf32>
    %196 = arith.mulf %193, %167 : vector<8x64xf32>
    %197 = arith.mulf %192, %194 : vector<8x64xf32>
    %198 = arith.addf %196, %197 : vector<8x64xf32>
    %199 = math.tanh %198 : vector<8x64xf32>
    %200 = arith.mulf %195, %199 : vector<8x64xf32>
    %201 = arith.index_cast %173 : i32 to index
    %c0_70 = arith.constant 0 : index
    %202 = vector.load %arg23[%201, %c0_70] : memref<64x64xf32, #tpu.memory_space<vmem>>, vector<8x64xf32>
    tpu.vector_store %arg23[%201, %c0_70], %200 {strides = array<i32>} : memref<64x64xf32, #tpu.memory_space<vmem>>, vector<8x64xf32>,
    %c6_i32 = arith.constant 6 : i32
    %c8_i32_71 = arith.constant 8 : i32
    %203 = arith.muli %c6_i32, %c8_i32_71 : i32
    %204 = tpu.assume_multiple %203, 8 : i32
    %c7_i32_72 = arith.constant 7 : i32
    %205 = arith.subi %c7_i32_72, %c6_i32 : i32
    %c8_i32_73 = arith.constant 8 : i32
    %206 = arith.muli %205, %c8_i32_73 : i32
    %207 = tpu.assume_multiple %206, 8 : i32
    %208 = arith.index_cast %204 : i32 to index
    %c0_74 = arith.constant 0 : index
    %209 = vector.load %arg21[%208, %c0_74] : memref<64x256xf32, #tpu.memory_space<vmem>>, vector<8x256xf32>
    %210 = arith.index_cast %207 : i32 to index
    %c0_75 = arith.constant 0 : index
    %211 = vector.load %arg22[%210, %c0_75] : memref<64x256xf32, #tpu.memory_space<vmem>>, vector<8x256xf32>
    %212 = arith.addf %209, %211 : vector<8x256xf32>
    %c0_76 = arith.constant 0 : index
    %c0_77 = arith.constant 0 : index
    %213 = vector.load %arg3[%c0_76, %c0_77] : memref<64x256xf32, #tpu.memory_space<vmem>>, vector<64x256xf32>
    %cst_78 = arith.constant dense<0.000000e+00> : vector<8x256xf32>
    %214 = tpu.matmul %200, %213, %cst_78 {dimension_numbers = #tpu.dot_dimension_numbers<[1], [0], [0], [1], [0, 0, 1, 1], [], []>} : vector<8x64xf32>, vector<64x256xf32>, vector<8x256xf32> -> vector<8x256xf32>
    %215 = arith.addf %212, %214 : vector<8x256xf32>
    %216 = math.tanh %215 : vector<8x256xf32>
    %217 = arith.negf %215 : vector<8x256xf32>
    %218 = math.exp %217 : vector<8x256xf32>
    %cst_79 = arith.constant 1.000000e+00 : f32
    %219 = vector.broadcast %cst_79 : f32 to vector<8x256xf32>
    %220 = arith.addf %219, %218 : vector<8x256xf32>
    %221 = arith.divf %219, %220 : vector<8x256xf32>
    %222 = arith.select %5, %216, %221 : vector<8x256xi1>, vector<8x256xf32>
    %223 = vector.extract_strided_slice %222 {offsets = [0, 0], sizes = [8, 64], strides = [1, 1]} : vector<8x256xf32> to vector<8x64xf32>
    %224 = vector.extract_strided_slice %222 {offsets = [0, 64], sizes = [8, 64], strides = [1, 1]} : vector<8x256xf32> to vector<8x64xf32>
    %225 = vector.extract_strided_slice %222 {offsets = [0, 128], sizes = [8, 64], strides = [1, 1]} : vector<8x256xf32> to vector<8x64xf32>
    %226 = vector.extract_strided_slice %222 {offsets = [0, 192], sizes = [8, 64], strides = [1, 1]} : vector<8x256xf32> to vector<8x64xf32>
    %227 = arith.mulf %224, %198 : vector<8x64xf32>
    %228 = arith.mulf %223, %225 : vector<8x64xf32>
    %229 = arith.addf %227, %228 : vector<8x64xf32>
    %230 = math.tanh %229 : vector<8x64xf32>
    %231 = arith.mulf %226, %230 : vector<8x64xf32>
    %232 = arith.index_cast %204 : i32 to index
    %c0_80 = arith.constant 0 : index
    %233 = vector.load %arg23[%232, %c0_80] : memref<64x64xf32, #tpu.memory_space<vmem>>, vector<8x64xf32>
    tpu.vector_store %arg23[%232, %c0_80], %231 {strides = array<i32>} : memref<64x64xf32, #tpu.memory_space<vmem>>, vector<8x64xf32>,
    %c7_i32_81 = arith.constant 7 : i32
    %c8_i32_82 = arith.constant 8 : i32
    %234 = arith.muli %c7_i32_81, %c8_i32_82 : i32
    %235 = tpu.assume_multiple %234, 8 : i32
    %c7_i32_83 = arith.constant 7 : i32
    %236 = arith.subi %c7_i32_83, %c7_i32_81 : i32
    %c8_i32_84 = arith.constant 8 : i32
    %237 = arith.muli %236, %c8_i32_84 : i32
    %238 = tpu.assume_multiple %237, 8 : i32
    %239 = arith.index_cast %235 : i32 to index
    %c0_85 = arith.constant 0 : index
    %240 = vector.load %arg21[%239, %c0_85] : memref<64x256xf32, #tpu.memory_space<vmem>>, vector<8x256xf32>
    %241 = arith.index_cast %238 : i32 to index
    %c0_86 = arith.constant 0 : index
    %242 = vector.load %arg22[%241, %c0_86] : memref<64x256xf32, #tpu.memory_space<vmem>>, vector<8x256xf32>
    %243 = arith.addf %240, %242 : vector<8x256xf32>
    %c0_87 = arith.constant 0 : index
    %c0_88 = arith.constant 0 : index
    %244 = vector.load %arg3[%c0_87, %c0_88] : memref<64x256xf32, #tpu.memory_space<vmem>>, vector<64x256xf32>
    %cst_89 = arith.constant dense<0.000000e+00> : vector<8x256xf32>
    %245 = tpu.matmul %231, %244, %cst_89 {dimension_numbers = #tpu.dot_dimension_numbers<[1], [0], [0], [1], [0, 0, 1, 1], [], []>} : vector<8x64xf32>, vector<64x256xf32>, vector<8x256xf32> -> vector<8x256xf32>
    %246 = arith.addf %243, %245 : vector<8x256xf32>
    %247 = math.tanh %246 : vector<8x256xf32>
    %248 = arith.negf %246 : vector<8x256xf32>
    %249 = math.exp %248 : vector<8x256xf32>
    %cst_90 = arith.constant 1.000000e+00 : f32
    %250 = vector.broadcast %cst_90 : f32 to vector<8x256xf32>
    %251 = arith.addf %250, %249 : vector<8x256xf32>
    %252 = arith.divf %250, %251 : vector<8x256xf32>
    %253 = arith.select %5, %247, %252 : vector<8x256xi1>, vector<8x256xf32>
    %254 = vector.extract_strided_slice %253 {offsets = [0, 0], sizes = [8, 64], strides = [1, 1]} : vector<8x256xf32> to vector<8x64xf32>
    %255 = vector.extract_strided_slice %253 {offsets = [0, 64], sizes = [8, 64], strides = [1, 1]} : vector<8x256xf32> to vector<8x64xf32>
    %256 = vector.extract_strided_slice %253 {offsets = [0, 128], sizes = [8, 64], strides = [1, 1]} : vector<8x256xf32> to vector<8x64xf32>
    %257 = vector.extract_strided_slice %253 {offsets = [0, 192], sizes = [8, 64], strides = [1, 1]} : vector<8x256xf32> to vector<8x64xf32>
    %258 = arith.mulf %255, %229 : vector<8x64xf32>
    %259 = arith.mulf %254, %256 : vector<8x64xf32>
    %260 = arith.addf %258, %259 : vector<8x64xf32>
    %261 = math.tanh %260 : vector<8x64xf32>
    %262 = arith.mulf %257, %261 : vector<8x64xf32>
    %263 = arith.index_cast %235 : i32 to index
    %c0_91 = arith.constant 0 : index
    %264 = vector.load %arg23[%263, %c0_91] : memref<64x64xf32, #tpu.memory_space<vmem>>, vector<8x64xf32>
    tpu.vector_store %arg23[%263, %c0_91], %262 {strides = array<i32>} : memref<64x64xf32, #tpu.memory_space<vmem>>, vector<8x64xf32>,
    %c8_i32_92 = arith.constant 8 : i32
    %c0_93 = arith.constant 0 : index
    %c0_94 = arith.constant 0 : index
    %c0_95 = arith.constant 0 : index
    %265 = vector.load %arg25[%c0_93, %c0_94, %c0_95] : memref<4x8x64xf32, #tpu.memory_space<vmem>>, vector<1x8x64xf32>
    %266 = vector.shape_cast %265 : vector<1x8x64xf32> to vector<8x64xf32>
    %267 = vector.shape_cast %262 : vector<8x64xf32> to vector<1x8x64xf32>
    tpu.vector_store %arg25[%c0_93, %c0_94, %c0_95], %267 {strides = array<i32>} : memref<4x8x64xf32, #tpu.memory_space<vmem>>, vector<1x8x64xf32>,
    %c1 = arith.constant 1 : index
    %c0_96 = arith.constant 0 : index
    %c0_97 = arith.constant 0 : index
    %268 = vector.load %arg25[%c1, %c0_96, %c0_97] : memref<4x8x64xf32, #tpu.memory_space<vmem>>, vector<1x8x64xf32>
    %269 = vector.shape_cast %268 : vector<1x8x64xf32> to vector<8x64xf32>
    %270 = vector.shape_cast %260 : vector<8x64xf32> to vector<1x8x64xf32>
    tpu.vector_store %arg25[%c1, %c0_96, %c0_97], %270 {strides = array<i32>} : memref<4x8x64xf32, #tpu.memory_space<vmem>>, vector<1x8x64xf32>,
    %c0_98 = arith.constant 0 : index
    %c0_99 = arith.constant 0 : index
    %271 = vector.load %arg23[%c0_98, %c0_99] : memref<64x64xf32, #tpu.memory_space<vmem>>, vector<64x64xf32>
    %c0_100 = arith.constant 0 : index
    %c0_101 = arith.constant 0 : index
    %272 = vector.load %arg5[%c0_100, %c0_101] : memref<64x256xf32, #tpu.memory_space<vmem>>, vector<64x256xf32>
    %cst_102 = arith.constant dense<0.000000e+00> : vector<64x256xf32>
    %273 = tpu.matmul %271, %272, %cst_102 {dimension_numbers = #tpu.dot_dimension_numbers<[1], [0], [0], [1], [0, 0, 1, 1], [], []>} : vector<64x64xf32>, vector<64x256xf32>, vector<64x256xf32> -> vector<64x256xf32>
    %c0_103 = arith.constant 0 : index
    %c0_104 = arith.constant 0 : index
    %274 = vector.load %arg8[%c0_103, %c0_104] : memref<1x256xf32, #tpu.memory_space<vmem>>, vector<1x256xf32>
    %275 = vector.broadcast %274 : vector<1x256xf32> to vector<64x256xf32>
    %276 = arith.addf %273, %275 : vector<64x256xf32>
    %c0_105 = arith.constant 0 : index
    %c0_106 = arith.constant 0 : index
    %277 = vector.load %arg21[%c0_105, %c0_106] : memref<64x256xf32, #tpu.memory_space<vmem>>, vector<64x256xf32>
    tpu.vector_store %arg21[%c0_105, %c0_106], %276 {strides = array<i32>} : memref<64x256xf32, #tpu.memory_space<vmem>>, vector<64x256xf32>,
    %c0_107 = arith.constant 0 : index
    %c0_108 = arith.constant 0 : index
    %278 = vector.load %arg6[%c0_107, %c0_108] : memref<64x256xf32, #tpu.memory_space<vmem>>, vector<64x256xf32>
    %cst_109 = arith.constant dense<0.000000e+00> : vector<64x256xf32>
    %279 = tpu.matmul %271, %278, %cst_109 {dimension_numbers = #tpu.dot_dimension_numbers<[1], [0], [0], [1], [0, 0, 1, 1], [], []>} : vector<64x64xf32>, vector<64x256xf32>, vector<64x256xf32> -> vector<64x256xf32>
    %c0_110 = arith.constant 0 : index
    %c0_111 = arith.constant 0 : index
    %280 = vector.load %arg22[%c0_110, %c0_111] : memref<64x256xf32, #tpu.memory_space<vmem>>, vector<64x256xf32>
    tpu.vector_store %arg22[%c0_110, %c0_111], %279 {strides = array<i32>} : memref<64x256xf32, #tpu.memory_space<vmem>>, vector<64x256xf32>,
    %c0_i32_112 = arith.constant 0 : i32
    %c8_i32_113 = arith.constant 8 : i32
    %281 = arith.muli %c0_i32_112, %c8_i32_113 : i32
    %282 = tpu.assume_multiple %281, 8 : i32
    %c7_i32_114 = arith.constant 7 : i32
    %283 = arith.subi %c7_i32_114, %c0_i32_112 : i32
    %c8_i32_115 = arith.constant 8 : i32
    %284 = arith.muli %283, %c8_i32_115 : i32
    %285 = tpu.assume_multiple %284, 8 : i32
    %286 = arith.index_cast %282 : i32 to index
    %c0_116 = arith.constant 0 : index
    %287 = vector.load %arg21[%286, %c0_116] : memref<64x256xf32, #tpu.memory_space<vmem>>, vector<8x256xf32>
    %288 = arith.index_cast %285 : i32 to index
    %c0_117 = arith.constant 0 : index
    %289 = vector.load %arg22[%288, %c0_117] : memref<64x256xf32, #tpu.memory_space<vmem>>, vector<8x256xf32>
    %290 = arith.addf %287, %289 : vector<8x256xf32>
    %c0_118 = arith.constant 0 : index
    %c0_119 = arith.constant 0 : index
    %291 = vector.load %arg7[%c0_118, %c0_119] : memref<64x256xf32, #tpu.memory_space<vmem>>, vector<64x256xf32>
    %cst_120 = arith.constant dense<0.000000e+00> : vector<8x256xf32>
    %292 = tpu.matmul %6, %291, %cst_120 {dimension_numbers = #tpu.dot_dimension_numbers<[1], [0], [0], [1], [0, 0, 1, 1], [], []>} : vector<8x64xf32>, vector<64x256xf32>, vector<8x256xf32> -> vector<8x256xf32>
    %293 = arith.addf %290, %292 : vector<8x256xf32>
    %294 = math.tanh %293 : vector<8x256xf32>
    %295 = arith.negf %293 : vector<8x256xf32>
    %296 = math.exp %295 : vector<8x256xf32>
    %cst_121 = arith.constant 1.000000e+00 : f32
    %297 = vector.broadcast %cst_121 : f32 to vector<8x256xf32>
    %298 = arith.addf %297, %296 : vector<8x256xf32>
    %299 = arith.divf %297, %298 : vector<8x256xf32>
    %300 = arith.select %5, %294, %299 : vector<8x256xi1>, vector<8x256xf32>
    %301 = vector.extract_strided_slice %300 {offsets = [0, 0], sizes = [8, 64], strides = [1, 1]} : vector<8x256xf32> to vector<8x64xf32>
    %302 = vector.extract_strided_slice %300 {offsets = [0, 64], sizes = [8, 64], strides = [1, 1]} : vector<8x256xf32> to vector<8x64xf32>
    %303 = vector.extract_strided_slice %300 {offsets = [0, 128], sizes = [8, 64], strides = [1, 1]} : vector<8x256xf32> to vector<8x64xf32>
    %304 = vector.extract_strided_slice %300 {offsets = [0, 192], sizes = [8, 64], strides = [1, 1]} : vector<8x256xf32> to vector<8x64xf32>
    %305 = arith.mulf %302, %6 : vector<8x64xf32>
    %306 = arith.mulf %301, %303 : vector<8x64xf32>
    %307 = arith.addf %305, %306 : vector<8x64xf32>
    %308 = math.tanh %307 : vector<8x64xf32>
    %309 = arith.mulf %304, %308 : vector<8x64xf32>
    %310 = arith.index_cast %282 : i32 to index
    %c0_122 = arith.constant 0 : index
    %311 = vector.load %arg24[%310, %c0_122] : memref<64x64xf32, #tpu.memory_space<vmem>>, vector<8x64xf32>
    tpu.vector_store %arg24[%310, %c0_122], %309 {strides = array<i32>} : memref<64x64xf32, #tpu.memory_space<vmem>>, vector<8x64xf32>,
    %c1_i32_123 = arith.constant 1 : i32
    %c8_i32_124 = arith.constant 8 : i32
    %312 = arith.muli %c1_i32_123, %c8_i32_124 : i32
    %313 = tpu.assume_multiple %312, 8 : i32
    %c7_i32_125 = arith.constant 7 : i32
    %314 = arith.subi %c7_i32_125, %c1_i32_123 : i32
    %c8_i32_126 = arith.constant 8 : i32
    %315 = arith.muli %314, %c8_i32_126 : i32
    %316 = tpu.assume_multiple %315, 8 : i32
    %317 = arith.index_cast %313 : i32 to index
    %c0_127 = arith.constant 0 : index
    %318 = vector.load %arg21[%317, %c0_127] : memref<64x256xf32, #tpu.memory_space<vmem>>, vector<8x256xf32>
    %319 = arith.index_cast %316 : i32 to index
    %c0_128 = arith.constant 0 : index
    %320 = vector.load %arg22[%319, %c0_128] : memref<64x256xf32, #tpu.memory_space<vmem>>, vector<8x256xf32>
    %321 = arith.addf %318, %320 : vector<8x256xf32>
    %c0_129 = arith.constant 0 : index
    %c0_130 = arith.constant 0 : index
    %322 = vector.load %arg7[%c0_129, %c0_130] : memref<64x256xf32, #tpu.memory_space<vmem>>, vector<64x256xf32>
    %cst_131 = arith.constant dense<0.000000e+00> : vector<8x256xf32>
    %323 = tpu.matmul %309, %322, %cst_131 {dimension_numbers = #tpu.dot_dimension_numbers<[1], [0], [0], [1], [0, 0, 1, 1], [], []>} : vector<8x64xf32>, vector<64x256xf32>, vector<8x256xf32> -> vector<8x256xf32>
    %324 = arith.addf %321, %323 : vector<8x256xf32>
    %325 = math.tanh %324 : vector<8x256xf32>
    %326 = arith.negf %324 : vector<8x256xf32>
    %327 = math.exp %326 : vector<8x256xf32>
    %cst_132 = arith.constant 1.000000e+00 : f32
    %328 = vector.broadcast %cst_132 : f32 to vector<8x256xf32>
    %329 = arith.addf %328, %327 : vector<8x256xf32>
    %330 = arith.divf %328, %329 : vector<8x256xf32>
    %331 = arith.select %5, %325, %330 : vector<8x256xi1>, vector<8x256xf32>
    %332 = vector.extract_strided_slice %331 {offsets = [0, 0], sizes = [8, 64], strides = [1, 1]} : vector<8x256xf32> to vector<8x64xf32>
    %333 = vector.extract_strided_slice %331 {offsets = [0, 64], sizes = [8, 64], strides = [1, 1]} : vector<8x256xf32> to vector<8x64xf32>
    %334 = vector.extract_strided_slice %331 {offsets = [0, 128], sizes = [8, 64], strides = [1, 1]} : vector<8x256xf32> to vector<8x64xf32>
    %335 = vector.extract_strided_slice %331 {offsets = [0, 192], sizes = [8, 64], strides = [1, 1]} : vector<8x256xf32> to vector<8x64xf32>
    %336 = arith.mulf %333, %307 : vector<8x64xf32>
    %337 = arith.mulf %332, %334 : vector<8x64xf32>
    %338 = arith.addf %336, %337 : vector<8x64xf32>
    %339 = math.tanh %338 : vector<8x64xf32>
    %340 = arith.mulf %335, %339 : vector<8x64xf32>
    %341 = arith.index_cast %313 : i32 to index
    %c0_133 = arith.constant 0 : index
    %342 = vector.load %arg24[%341, %c0_133] : memref<64x64xf32, #tpu.memory_space<vmem>>, vector<8x64xf32>
    tpu.vector_store %arg24[%341, %c0_133], %340 {strides = array<i32>} : memref<64x64xf32, #tpu.memory_space<vmem>>, vector<8x64xf32>,
    %c2_i32_134 = arith.constant 2 : i32
    %c8_i32_135 = arith.constant 8 : i32
    %343 = arith.muli %c2_i32_134, %c8_i32_135 : i32
    %344 = tpu.assume_multiple %343, 8 : i32
    %c7_i32_136 = arith.constant 7 : i32
    %345 = arith.subi %c7_i32_136, %c2_i32_134 : i32
    %c8_i32_137 = arith.constant 8 : i32
    %346 = arith.muli %345, %c8_i32_137 : i32
    %347 = tpu.assume_multiple %346, 8 : i32
    %348 = arith.index_cast %344 : i32 to index
    %c0_138 = arith.constant 0 : index
    %349 = vector.load %arg21[%348, %c0_138] : memref<64x256xf32, #tpu.memory_space<vmem>>, vector<8x256xf32>
    %350 = arith.index_cast %347 : i32 to index
    %c0_139 = arith.constant 0 : index
    %351 = vector.load %arg22[%350, %c0_139] : memref<64x256xf32, #tpu.memory_space<vmem>>, vector<8x256xf32>
    %352 = arith.addf %349, %351 : vector<8x256xf32>
    %c0_140 = arith.constant 0 : index
    %c0_141 = arith.constant 0 : index
    %353 = vector.load %arg7[%c0_140, %c0_141] : memref<64x256xf32, #tpu.memory_space<vmem>>, vector<64x256xf32>
    %cst_142 = arith.constant dense<0.000000e+00> : vector<8x256xf32>
    %354 = tpu.matmul %340, %353, %cst_142 {dimension_numbers = #tpu.dot_dimension_numbers<[1], [0], [0], [1], [0, 0, 1, 1], [], []>} : vector<8x64xf32>, vector<64x256xf32>, vector<8x256xf32> -> vector<8x256xf32>
    %355 = arith.addf %352, %354 : vector<8x256xf32>
    %356 = math.tanh %355 : vector<8x256xf32>
    %357 = arith.negf %355 : vector<8x256xf32>
    %358 = math.exp %357 : vector<8x256xf32>
    %cst_143 = arith.constant 1.000000e+00 : f32
    %359 = vector.broadcast %cst_143 : f32 to vector<8x256xf32>
    %360 = arith.addf %359, %358 : vector<8x256xf32>
    %361 = arith.divf %359, %360 : vector<8x256xf32>
    %362 = arith.select %5, %356, %361 : vector<8x256xi1>, vector<8x256xf32>
    %363 = vector.extract_strided_slice %362 {offsets = [0, 0], sizes = [8, 64], strides = [1, 1]} : vector<8x256xf32> to vector<8x64xf32>
    %364 = vector.extract_strided_slice %362 {offsets = [0, 64], sizes = [8, 64], strides = [1, 1]} : vector<8x256xf32> to vector<8x64xf32>
    %365 = vector.extract_strided_slice %362 {offsets = [0, 128], sizes = [8, 64], strides = [1, 1]} : vector<8x256xf32> to vector<8x64xf32>
    %366 = vector.extract_strided_slice %362 {offsets = [0, 192], sizes = [8, 64], strides = [1, 1]} : vector<8x256xf32> to vector<8x64xf32>
    %367 = arith.mulf %364, %338 : vector<8x64xf32>
    %368 = arith.mulf %363, %365 : vector<8x64xf32>
    %369 = arith.addf %367, %368 : vector<8x64xf32>
    %370 = math.tanh %369 : vector<8x64xf32>
    %371 = arith.mulf %366, %370 : vector<8x64xf32>
    %372 = arith.index_cast %344 : i32 to index
    %c0_144 = arith.constant 0 : index
    %373 = vector.load %arg24[%372, %c0_144] : memref<64x64xf32, #tpu.memory_space<vmem>>, vector<8x64xf32>
    tpu.vector_store %arg24[%372, %c0_144], %371 {strides = array<i32>} : memref<64x64xf32, #tpu.memory_space<vmem>>, vector<8x64xf32>,
    %c3_i32_145 = arith.constant 3 : i32
    %c8_i32_146 = arith.constant 8 : i32
    %374 = arith.muli %c3_i32_145, %c8_i32_146 : i32
    %375 = tpu.assume_multiple %374, 8 : i32
    %c7_i32_147 = arith.constant 7 : i32
    %376 = arith.subi %c7_i32_147, %c3_i32_145 : i32
    %c8_i32_148 = arith.constant 8 : i32
    %377 = arith.muli %376, %c8_i32_148 : i32
    %378 = tpu.assume_multiple %377, 8 : i32
    %379 = arith.index_cast %375 : i32 to index
    %c0_149 = arith.constant 0 : index
    %380 = vector.load %arg21[%379, %c0_149] : memref<64x256xf32, #tpu.memory_space<vmem>>, vector<8x256xf32>
    %381 = arith.index_cast %378 : i32 to index
    %c0_150 = arith.constant 0 : index
    %382 = vector.load %arg22[%381, %c0_150] : memref<64x256xf32, #tpu.memory_space<vmem>>, vector<8x256xf32>
    %383 = arith.addf %380, %382 : vector<8x256xf32>
    %c0_151 = arith.constant 0 : index
    %c0_152 = arith.constant 0 : index
    %384 = vector.load %arg7[%c0_151, %c0_152] : memref<64x256xf32, #tpu.memory_space<vmem>>, vector<64x256xf32>
    %cst_153 = arith.constant dense<0.000000e+00> : vector<8x256xf32>
    %385 = tpu.matmul %371, %384, %cst_153 {dimension_numbers = #tpu.dot_dimension_numbers<[1], [0], [0], [1], [0, 0, 1, 1], [], []>} : vector<8x64xf32>, vector<64x256xf32>, vector<8x256xf32> -> vector<8x256xf32>
    %386 = arith.addf %383, %385 : vector<8x256xf32>
    %387 = math.tanh %386 : vector<8x256xf32>
    %388 = arith.negf %386 : vector<8x256xf32>
    %389 = math.exp %388 : vector<8x256xf32>
    %cst_154 = arith.constant 1.000000e+00 : f32
    %390 = vector.broadcast %cst_154 : f32 to vector<8x256xf32>
    %391 = arith.addf %390, %389 : vector<8x256xf32>
    %392 = arith.divf %390, %391 : vector<8x256xf32>
    %393 = arith.select %5, %387, %392 : vector<8x256xi1>, vector<8x256xf32>
    %394 = vector.extract_strided_slice %393 {offsets = [0, 0], sizes = [8, 64], strides = [1, 1]} : vector<8x256xf32> to vector<8x64xf32>
    %395 = vector.extract_strided_slice %393 {offsets = [0, 64], sizes = [8, 64], strides = [1, 1]} : vector<8x256xf32> to vector<8x64xf32>
    %396 = vector.extract_strided_slice %393 {offsets = [0, 128], sizes = [8, 64], strides = [1, 1]} : vector<8x256xf32> to vector<8x64xf32>
    %397 = vector.extract_strided_slice %393 {offsets = [0, 192], sizes = [8, 64], strides = [1, 1]} : vector<8x256xf32> to vector<8x64xf32>
    %398 = arith.mulf %395, %369 : vector<8x64xf32>
    %399 = arith.mulf %394, %396 : vector<8x64xf32>
    %400 = arith.addf %398, %399 : vector<8x64xf32>
    %401 = math.tanh %400 : vector<8x64xf32>
    %402 = arith.mulf %397, %401 : vector<8x64xf32>
    %403 = arith.index_cast %375 : i32 to index
    %c0_155 = arith.constant 0 : index
    %404 = vector.load %arg24[%403, %c0_155] : memref<64x64xf32, #tpu.memory_space<vmem>>, vector<8x64xf32>
    tpu.vector_store %arg24[%403, %c0_155], %402 {strides = array<i32>} : memref<64x64xf32, #tpu.memory_space<vmem>>, vector<8x64xf32>,
    %c4_i32_156 = arith.constant 4 : i32
    %c8_i32_157 = arith.constant 8 : i32
    %405 = arith.muli %c4_i32_156, %c8_i32_157 : i32
    %406 = tpu.assume_multiple %405, 8 : i32
    %c7_i32_158 = arith.constant 7 : i32
    %407 = arith.subi %c7_i32_158, %c4_i32_156 : i32
    %c8_i32_159 = arith.constant 8 : i32
    %408 = arith.muli %407, %c8_i32_159 : i32
    %409 = tpu.assume_multiple %408, 8 : i32
    %410 = arith.index_cast %406 : i32 to index
    %c0_160 = arith.constant 0 : index
    %411 = vector.load %arg21[%410, %c0_160] : memref<64x256xf32, #tpu.memory_space<vmem>>, vector<8x256xf32>
    %412 = arith.index_cast %409 : i32 to index
    %c0_161 = arith.constant 0 : index
    %413 = vector.load %arg22[%412, %c0_161] : memref<64x256xf32, #tpu.memory_space<vmem>>, vector<8x256xf32>
    %414 = arith.addf %411, %413 : vector<8x256xf32>
    %c0_162 = arith.constant 0 : index
    %c0_163 = arith.constant 0 : index
    %415 = vector.load %arg7[%c0_162, %c0_163] : memref<64x256xf32, #tpu.memory_space<vmem>>, vector<64x256xf32>
    %cst_164 = arith.constant dense<0.000000e+00> : vector<8x256xf32>
    %416 = tpu.matmul %402, %415, %cst_164 {dimension_numbers = #tpu.dot_dimension_numbers<[1], [0], [0], [1], [0, 0, 1, 1], [], []>} : vector<8x64xf32>, vector<64x256xf32>, vector<8x256xf32> -> vector<8x256xf32>
    %417 = arith.addf %414, %416 : vector<8x256xf32>
    %418 = math.tanh %417 : vector<8x256xf32>
    %419 = arith.negf %417 : vector<8x256xf32>
    %420 = math.exp %419 : vector<8x256xf32>
    %cst_165 = arith.constant 1.000000e+00 : f32
    %421 = vector.broadcast %cst_165 : f32 to vector<8x256xf32>
    %422 = arith.addf %421, %420 : vector<8x256xf32>
    %423 = arith.divf %421, %422 : vector<8x256xf32>
    %424 = arith.select %5, %418, %423 : vector<8x256xi1>, vector<8x256xf32>
    %425 = vector.extract_strided_slice %424 {offsets = [0, 0], sizes = [8, 64], strides = [1, 1]} : vector<8x256xf32> to vector<8x64xf32>
    %426 = vector.extract_strided_slice %424 {offsets = [0, 64], sizes = [8, 64], strides = [1, 1]} : vector<8x256xf32> to vector<8x64xf32>
    %427 = vector.extract_strided_slice %424 {offsets = [0, 128], sizes = [8, 64], strides = [1, 1]} : vector<8x256xf32> to vector<8x64xf32>
    %428 = vector.extract_strided_slice %424 {offsets = [0, 192], sizes = [8, 64], strides = [1, 1]} : vector<8x256xf32> to vector<8x64xf32>
    %429 = arith.mulf %426, %400 : vector<8x64xf32>
    %430 = arith.mulf %425, %427 : vector<8x64xf32>
    %431 = arith.addf %429, %430 : vector<8x64xf32>
    %432 = math.tanh %431 : vector<8x64xf32>
    %433 = arith.mulf %428, %432 : vector<8x64xf32>
    %434 = arith.index_cast %406 : i32 to index
    %c0_166 = arith.constant 0 : index
    %435 = vector.load %arg24[%434, %c0_166] : memref<64x64xf32, #tpu.memory_space<vmem>>, vector<8x64xf32>
    tpu.vector_store %arg24[%434, %c0_166], %433 {strides = array<i32>} : memref<64x64xf32, #tpu.memory_space<vmem>>, vector<8x64xf32>,
    %c5_i32_167 = arith.constant 5 : i32
    %c8_i32_168 = arith.constant 8 : i32
    %436 = arith.muli %c5_i32_167, %c8_i32_168 : i32
    %437 = tpu.assume_multiple %436, 8 : i32
    %c7_i32_169 = arith.constant 7 : i32
    %438 = arith.subi %c7_i32_169, %c5_i32_167 : i32
    %c8_i32_170 = arith.constant 8 : i32
    %439 = arith.muli %438, %c8_i32_170 : i32
    %440 = tpu.assume_multiple %439, 8 : i32
    %441 = arith.index_cast %437 : i32 to index
    %c0_171 = arith.constant 0 : index
    %442 = vector.load %arg21[%441, %c0_171] : memref<64x256xf32, #tpu.memory_space<vmem>>, vector<8x256xf32>
    %443 = arith.index_cast %440 : i32 to index
    %c0_172 = arith.constant 0 : index
    %444 = vector.load %arg22[%443, %c0_172] : memref<64x256xf32, #tpu.memory_space<vmem>>, vector<8x256xf32>
    %445 = arith.addf %442, %444 : vector<8x256xf32>
    %c0_173 = arith.constant 0 : index
    %c0_174 = arith.constant 0 : index
    %446 = vector.load %arg7[%c0_173, %c0_174] : memref<64x256xf32, #tpu.memory_space<vmem>>, vector<64x256xf32>
    %cst_175 = arith.constant dense<0.000000e+00> : vector<8x256xf32>
    %447 = tpu.matmul %433, %446, %cst_175 {dimension_numbers = #tpu.dot_dimension_numbers<[1], [0], [0], [1], [0, 0, 1, 1], [], []>} : vector<8x64xf32>, vector<64x256xf32>, vector<8x256xf32> -> vector<8x256xf32>
    %448 = arith.addf %445, %447 : vector<8x256xf32>
    %449 = math.tanh %448 : vector<8x256xf32>
    %450 = arith.negf %448 : vector<8x256xf32>
    %451 = math.exp %450 : vector<8x256xf32>
    %cst_176 = arith.constant 1.000000e+00 : f32
    %452 = vector.broadcast %cst_176 : f32 to vector<8x256xf32>
    %453 = arith.addf %452, %451 : vector<8x256xf32>
    %454 = arith.divf %452, %453 : vector<8x256xf32>
    %455 = arith.select %5, %449, %454 : vector<8x256xi1>, vector<8x256xf32>
    %456 = vector.extract_strided_slice %455 {offsets = [0, 0], sizes = [8, 64], strides = [1, 1]} : vector<8x256xf32> to vector<8x64xf32>
    %457 = vector.extract_strided_slice %455 {offsets = [0, 64], sizes = [8, 64], strides = [1, 1]} : vector<8x256xf32> to vector<8x64xf32>
    %458 = vector.extract_strided_slice %455 {offsets = [0, 128], sizes = [8, 64], strides = [1, 1]} : vector<8x256xf32> to vector<8x64xf32>
    %459 = vector.extract_strided_slice %455 {offsets = [0, 192], sizes = [8, 64], strides = [1, 1]} : vector<8x256xf32> to vector<8x64xf32>
    %460 = arith.mulf %457, %431 : vector<8x64xf32>
    %461 = arith.mulf %456, %458 : vector<8x64xf32>
    %462 = arith.addf %460, %461 : vector<8x64xf32>
    %463 = math.tanh %462 : vector<8x64xf32>
    %464 = arith.mulf %459, %463 : vector<8x64xf32>
    %465 = arith.index_cast %437 : i32 to index
    %c0_177 = arith.constant 0 : index
    %466 = vector.load %arg24[%465, %c0_177] : memref<64x64xf32, #tpu.memory_space<vmem>>, vector<8x64xf32>
    tpu.vector_store %arg24[%465, %c0_177], %464 {strides = array<i32>} : memref<64x64xf32, #tpu.memory_space<vmem>>, vector<8x64xf32>,
    %c6_i32_178 = arith.constant 6 : i32
    %c8_i32_179 = arith.constant 8 : i32
    %467 = arith.muli %c6_i32_178, %c8_i32_179 : i32
    %468 = tpu.assume_multiple %467, 8 : i32
    %c7_i32_180 = arith.constant 7 : i32
    %469 = arith.subi %c7_i32_180, %c6_i32_178 : i32
    %c8_i32_181 = arith.constant 8 : i32
    %470 = arith.muli %469, %c8_i32_181 : i32
    %471 = tpu.assume_multiple %470, 8 : i32
    %472 = arith.index_cast %468 : i32 to index
    %c0_182 = arith.constant 0 : index
    %473 = vector.load %arg21[%472, %c0_182] : memref<64x256xf32, #tpu.memory_space<vmem>>, vector<8x256xf32>
    %474 = arith.index_cast %471 : i32 to index
    %c0_183 = arith.constant 0 : index
    %475 = vector.load %arg22[%474, %c0_183] : memref<64x256xf32, #tpu.memory_space<vmem>>, vector<8x256xf32>
    %476 = arith.addf %473, %475 : vector<8x256xf32>
    %c0_184 = arith.constant 0 : index
    %c0_185 = arith.constant 0 : index
    %477 = vector.load %arg7[%c0_184, %c0_185] : memref<64x256xf32, #tpu.memory_space<vmem>>, vector<64x256xf32>
    %cst_186 = arith.constant dense<0.000000e+00> : vector<8x256xf32>
    %478 = tpu.matmul %464, %477, %cst_186 {dimension_numbers = #tpu.dot_dimension_numbers<[1], [0], [0], [1], [0, 0, 1, 1], [], []>} : vector<8x64xf32>, vector<64x256xf32>, vector<8x256xf32> -> vector<8x256xf32>
    %479 = arith.addf %476, %478 : vector<8x256xf32>
    %480 = math.tanh %479 : vector<8x256xf32>
    %481 = arith.negf %479 : vector<8x256xf32>
    %482 = math.exp %481 : vector<8x256xf32>
    %cst_187 = arith.constant 1.000000e+00 : f32
    %483 = vector.broadcast %cst_187 : f32 to vector<8x256xf32>
    %484 = arith.addf %483, %482 : vector<8x256xf32>
    %485 = arith.divf %483, %484 : vector<8x256xf32>
    %486 = arith.select %5, %480, %485 : vector<8x256xi1>, vector<8x256xf32>
    %487 = vector.extract_strided_slice %486 {offsets = [0, 0], sizes = [8, 64], strides = [1, 1]} : vector<8x256xf32> to vector<8x64xf32>
    %488 = vector.extract_strided_slice %486 {offsets = [0, 64], sizes = [8, 64], strides = [1, 1]} : vector<8x256xf32> to vector<8x64xf32>
    %489 = vector.extract_strided_slice %486 {offsets = [0, 128], sizes = [8, 64], strides = [1, 1]} : vector<8x256xf32> to vector<8x64xf32>
    %490 = vector.extract_strided_slice %486 {offsets = [0, 192], sizes = [8, 64], strides = [1, 1]} : vector<8x256xf32> to vector<8x64xf32>
    %491 = arith.mulf %488, %462 : vector<8x64xf32>
    %492 = arith.mulf %487, %489 : vector<8x64xf32>
    %493 = arith.addf %491, %492 : vector<8x64xf32>
    %494 = math.tanh %493 : vector<8x64xf32>
    %495 = arith.mulf %490, %494 : vector<8x64xf32>
    %496 = arith.index_cast %468 : i32 to index
    %c0_188 = arith.constant 0 : index
    %497 = vector.load %arg24[%496, %c0_188] : memref<64x64xf32, #tpu.memory_space<vmem>>, vector<8x64xf32>
    tpu.vector_store %arg24[%496, %c0_188], %495 {strides = array<i32>} : memref<64x64xf32, #tpu.memory_space<vmem>>, vector<8x64xf32>,
    %c7_i32_189 = arith.constant 7 : i32
    %c8_i32_190 = arith.constant 8 : i32
    %498 = arith.muli %c7_i32_189, %c8_i32_190 : i32
    %499 = tpu.assume_multiple %498, 8 : i32
    %c7_i32_191 = arith.constant 7 : i32
    %500 = arith.subi %c7_i32_191, %c7_i32_189 : i32
    %c8_i32_192 = arith.constant 8 : i32
    %501 = arith.muli %500, %c8_i32_192 : i32
    %502 = tpu.assume_multiple %501, 8 : i32
    %503 = arith.index_cast %499 : i32 to index
    %c0_193 = arith.constant 0 : index
    %504 = vector.load %arg21[%503, %c0_193] : memref<64x256xf32, #tpu.memory_space<vmem>>, vector<8x256xf32>
    %505 = arith.index_cast %502 : i32 to index
    %c0_194 = arith.constant 0 : index
    %506 = vector.load %arg22[%505, %c0_194] : memref<64x256xf32, #tpu.memory_space<vmem>>, vector<8x256xf32>
    %507 = arith.addf %504, %506 : vector<8x256xf32>
    %c0_195 = arith.constant 0 : index
    %c0_196 = arith.constant 0 : index
    %508 = vector.load %arg7[%c0_195, %c0_196] : memref<64x256xf32, #tpu.memory_space<vmem>>, vector<64x256xf32>
    %cst_197 = arith.constant dense<0.000000e+00> : vector<8x256xf32>
    %509 = tpu.matmul %495, %508, %cst_197 {dimension_numbers = #tpu.dot_dimension_numbers<[1], [0], [0], [1], [0, 0, 1, 1], [], []>} : vector<8x64xf32>, vector<64x256xf32>, vector<8x256xf32> -> vector<8x256xf32>
    %510 = arith.addf %507, %509 : vector<8x256xf32>
    %511 = math.tanh %510 : vector<8x256xf32>
    %512 = arith.negf %510 : vector<8x256xf32>
    %513 = math.exp %512 : vector<8x256xf32>
    %cst_198 = arith.constant 1.000000e+00 : f32
    %514 = vector.broadcast %cst_198 : f32 to vector<8x256xf32>
    %515 = arith.addf %514, %513 : vector<8x256xf32>
    %516 = arith.divf %514, %515 : vector<8x256xf32>
    %517 = arith.select %5, %511, %516 : vector<8x256xi1>, vector<8x256xf32>
    %518 = vector.extract_strided_slice %517 {offsets = [0, 0], sizes = [8, 64], strides = [1, 1]} : vector<8x256xf32> to vector<8x64xf32>
    %519 = vector.extract_strided_slice %517 {offsets = [0, 64], sizes = [8, 64], strides = [1, 1]} : vector<8x256xf32> to vector<8x64xf32>
    %520 = vector.extract_strided_slice %517 {offsets = [0, 128], sizes = [8, 64], strides = [1, 1]} : vector<8x256xf32> to vector<8x64xf32>
    %521 = vector.extract_strided_slice %517 {offsets = [0, 192], sizes = [8, 64], strides = [1, 1]} : vector<8x256xf32> to vector<8x64xf32>
    %522 = arith.mulf %519, %493 : vector<8x64xf32>
    %523 = arith.mulf %518, %520 : vector<8x64xf32>
    %524 = arith.addf %522, %523 : vector<8x64xf32>
    %525 = math.tanh %524 : vector<8x64xf32>
    %526 = arith.mulf %521, %525 : vector<8x64xf32>
    %527 = arith.index_cast %499 : i32 to index
    %c0_199 = arith.constant 0 : index
    %528 = vector.load %arg24[%527, %c0_199] : memref<64x64xf32, #tpu.memory_space<vmem>>, vector<8x64xf32>
    tpu.vector_store %arg24[%527, %c0_199], %526 {strides = array<i32>} : memref<64x64xf32, #tpu.memory_space<vmem>>, vector<8x64xf32>,
    %c8_i32_200 = arith.constant 8 : i32
    %c2 = arith.constant 2 : index
    %c0_201 = arith.constant 0 : index
    %c0_202 = arith.constant 0 : index
    %529 = vector.load %arg25[%c2, %c0_201, %c0_202] : memref<4x8x64xf32, #tpu.memory_space<vmem>>, vector<1x8x64xf32>
    %530 = vector.shape_cast %529 : vector<1x8x64xf32> to vector<8x64xf32>
    %531 = vector.shape_cast %526 : vector<8x64xf32> to vector<1x8x64xf32>
    tpu.vector_store %arg25[%c2, %c0_201, %c0_202], %531 {strides = array<i32>} : memref<4x8x64xf32, #tpu.memory_space<vmem>>, vector<1x8x64xf32>,
    %c3 = arith.constant 3 : index
    %c0_203 = arith.constant 0 : index
    %c0_204 = arith.constant 0 : index
    %532 = vector.load %arg25[%c3, %c0_203, %c0_204] : memref<4x8x64xf32, #tpu.memory_space<vmem>>, vector<1x8x64xf32>
    %533 = vector.shape_cast %532 : vector<1x8x64xf32> to vector<8x64xf32>
    %534 = vector.shape_cast %524 : vector<8x64xf32> to vector<1x8x64xf32>
    tpu.vector_store %arg25[%c3, %c0_203, %c0_204], %534 {strides = array<i32>} : memref<4x8x64xf32, #tpu.memory_space<vmem>>, vector<1x8x64xf32>,
    %c0_205 = arith.constant 0 : index
    %c0_206 = arith.constant 0 : index
    %c0_207 = arith.constant 0 : index
    %535 = vector.load %arg25[%c0_205, %c0_206, %c0_207] : memref<4x8x64xf32, #tpu.memory_space<vmem>>, vector<1x8x64xf32>
    %536 = vector.shape_cast %535 : vector<1x8x64xf32> to vector<8x64xf32>
    %c1_208 = arith.constant 1 : index
    %c0_209 = arith.constant 0 : index
    %c0_210 = arith.constant 0 : index
    %537 = vector.load %arg25[%c1_208, %c0_209, %c0_210] : memref<4x8x64xf32, #tpu.memory_space<vmem>>, vector<1x8x64xf32>
    %538 = vector.shape_cast %537 : vector<1x8x64xf32> to vector<8x64xf32>
    %c0_211 = arith.constant 0 : index
    %c0_212 = arith.constant 0 : index
    %539 = vector.load %arg24[%c0_211, %c0_212] : memref<64x64xf32, #tpu.memory_space<vmem>>, vector<64x64xf32>
    %c0_213 = arith.constant 0 : index
    %c0_214 = arith.constant 0 : index
    %540 = vector.load %arg9[%c0_213, %c0_214] : memref<64x256xf32, #tpu.memory_space<vmem>>, vector<64x256xf32>
    %cst_215 = arith.constant dense<0.000000e+00> : vector<64x256xf32>
    %541 = tpu.matmul %539, %540, %cst_215 {dimension_numbers = #tpu.dot_dimension_numbers<[1], [0], [0], [1], [0, 0, 1, 1], [], []>} : vector<64x64xf32>, vector<64x256xf32>, vector<64x256xf32> -> vector<64x256xf32>
    %c0_216 = arith.constant 0 : index
    %c0_217 = arith.constant 0 : index
    %542 = vector.load %arg12[%c0_216, %c0_217] : memref<1x256xf32, #tpu.memory_space<vmem>>, vector<1x256xf32>
    %543 = vector.broadcast %542 : vector<1x256xf32> to vector<64x256xf32>
    %544 = arith.addf %541, %543 : vector<64x256xf32>
    %c0_218 = arith.constant 0 : index
    %c0_219 = arith.constant 0 : index
    %545 = vector.load %arg21[%c0_218, %c0_219] : memref<64x256xf32, #tpu.memory_space<vmem>>, vector<64x256xf32>
    tpu.vector_store %arg21[%c0_218, %c0_219], %544 {strides = array<i32>} : memref<64x256xf32, #tpu.memory_space<vmem>>, vector<64x256xf32>,
    %c0_220 = arith.constant 0 : index
    %c0_221 = arith.constant 0 : index
    %546 = vector.load %arg10[%c0_220, %c0_221] : memref<64x256xf32, #tpu.memory_space<vmem>>, vector<64x256xf32>
    %cst_222 = arith.constant dense<0.000000e+00> : vector<64x256xf32>
    %547 = tpu.matmul %539, %546, %cst_222 {dimension_numbers = #tpu.dot_dimension_numbers<[1], [0], [0], [1], [0, 0, 1, 1], [], []>} : vector<64x64xf32>, vector<64x256xf32>, vector<64x256xf32> -> vector<64x256xf32>
    %c0_223 = arith.constant 0 : index
    %c0_224 = arith.constant 0 : index
    %548 = vector.load %arg22[%c0_223, %c0_224] : memref<64x256xf32, #tpu.memory_space<vmem>>, vector<64x256xf32>
    tpu.vector_store %arg22[%c0_223, %c0_224], %547 {strides = array<i32>} : memref<64x256xf32, #tpu.memory_space<vmem>>, vector<64x256xf32>,
    %c0_i32_225 = arith.constant 0 : i32
    %c8_i32_226 = arith.constant 8 : i32
    %549 = arith.muli %c0_i32_225, %c8_i32_226 : i32
    %550 = tpu.assume_multiple %549, 8 : i32
    %c7_i32_227 = arith.constant 7 : i32
    %551 = arith.subi %c7_i32_227, %c0_i32_225 : i32
    %c8_i32_228 = arith.constant 8 : i32
    %552 = arith.muli %551, %c8_i32_228 : i32
    %553 = tpu.assume_multiple %552, 8 : i32
    %554 = arith.index_cast %550 : i32 to index
    %c0_229 = arith.constant 0 : index
    %555 = vector.load %arg21[%554, %c0_229] : memref<64x256xf32, #tpu.memory_space<vmem>>, vector<8x256xf32>
    %556 = arith.index_cast %553 : i32 to index
    %c0_230 = arith.constant 0 : index
    %557 = vector.load %arg22[%556, %c0_230] : memref<64x256xf32, #tpu.memory_space<vmem>>, vector<8x256xf32>
    %558 = arith.addf %555, %557 : vector<8x256xf32>
    %c0_231 = arith.constant 0 : index
    %c0_232 = arith.constant 0 : index
    %559 = vector.load %arg11[%c0_231, %c0_232] : memref<64x256xf32, #tpu.memory_space<vmem>>, vector<64x256xf32>
    %cst_233 = arith.constant dense<0.000000e+00> : vector<8x256xf32>
    %560 = tpu.matmul %536, %559, %cst_233 {dimension_numbers = #tpu.dot_dimension_numbers<[1], [0], [0], [1], [0, 0, 1, 1], [], []>} : vector<8x64xf32>, vector<64x256xf32>, vector<8x256xf32> -> vector<8x256xf32>
    %561 = arith.addf %558, %560 : vector<8x256xf32>
    %562 = math.tanh %561 : vector<8x256xf32>
    %563 = arith.negf %561 : vector<8x256xf32>
    %564 = math.exp %563 : vector<8x256xf32>
    %cst_234 = arith.constant 1.000000e+00 : f32
    %565 = vector.broadcast %cst_234 : f32 to vector<8x256xf32>
    %566 = arith.addf %565, %564 : vector<8x256xf32>
    %567 = arith.divf %565, %566 : vector<8x256xf32>
    %568 = arith.select %5, %562, %567 : vector<8x256xi1>, vector<8x256xf32>
    %569 = vector.extract_strided_slice %568 {offsets = [0, 0], sizes = [8, 64], strides = [1, 1]} : vector<8x256xf32> to vector<8x64xf32>
    %570 = vector.extract_strided_slice %568 {offsets = [0, 64], sizes = [8, 64], strides = [1, 1]} : vector<8x256xf32> to vector<8x64xf32>
    %571 = vector.extract_strided_slice %568 {offsets = [0, 128], sizes = [8, 64], strides = [1, 1]} : vector<8x256xf32> to vector<8x64xf32>
    %572 = vector.extract_strided_slice %568 {offsets = [0, 192], sizes = [8, 64], strides = [1, 1]} : vector<8x256xf32> to vector<8x64xf32>
    %573 = arith.mulf %570, %538 : vector<8x64xf32>
    %574 = arith.mulf %569, %571 : vector<8x64xf32>
    %575 = arith.addf %573, %574 : vector<8x64xf32>
    %576 = math.tanh %575 : vector<8x64xf32>
    %577 = arith.mulf %572, %576 : vector<8x64xf32>
    %578 = arith.index_cast %550 : i32 to index
    %c0_235 = arith.constant 0 : index
    %579 = vector.load %arg23[%578, %c0_235] : memref<64x64xf32, #tpu.memory_space<vmem>>, vector<8x64xf32>
    tpu.vector_store %arg23[%578, %c0_235], %577 {strides = array<i32>} : memref<64x64xf32, #tpu.memory_space<vmem>>, vector<8x64xf32>,
    %c1_i32_236 = arith.constant 1 : i32
    %c8_i32_237 = arith.constant 8 : i32
    %580 = arith.muli %c1_i32_236, %c8_i32_237 : i32
    %581 = tpu.assume_multiple %580, 8 : i32
    %c7_i32_238 = arith.constant 7 : i32
    %582 = arith.subi %c7_i32_238, %c1_i32_236 : i32
    %c8_i32_239 = arith.constant 8 : i32
    %583 = arith.muli %582, %c8_i32_239 : i32
    %584 = tpu.assume_multiple %583, 8 : i32
    %585 = arith.index_cast %581 : i32 to index
    %c0_240 = arith.constant 0 : index
    %586 = vector.load %arg21[%585, %c0_240] : memref<64x256xf32, #tpu.memory_space<vmem>>, vector<8x256xf32>
    %587 = arith.index_cast %584 : i32 to index
    %c0_241 = arith.constant 0 : index
    %588 = vector.load %arg22[%587, %c0_241] : memref<64x256xf32, #tpu.memory_space<vmem>>, vector<8x256xf32>
    %589 = arith.addf %586, %588 : vector<8x256xf32>
    %c0_242 = arith.constant 0 : index
    %c0_243 = arith.constant 0 : index
    %590 = vector.load %arg11[%c0_242, %c0_243] : memref<64x256xf32, #tpu.memory_space<vmem>>, vector<64x256xf32>
    %cst_244 = arith.constant dense<0.000000e+00> : vector<8x256xf32>
    %591 = tpu.matmul %577, %590, %cst_244 {dimension_numbers = #tpu.dot_dimension_numbers<[1], [0], [0], [1], [0, 0, 1, 1], [], []>} : vector<8x64xf32>, vector<64x256xf32>, vector<8x256xf32> -> vector<8x256xf32>
    %592 = arith.addf %589, %591 : vector<8x256xf32>
    %593 = math.tanh %592 : vector<8x256xf32>
    %594 = arith.negf %592 : vector<8x256xf32>
    %595 = math.exp %594 : vector<8x256xf32>
    %cst_245 = arith.constant 1.000000e+00 : f32
    %596 = vector.broadcast %cst_245 : f32 to vector<8x256xf32>
    %597 = arith.addf %596, %595 : vector<8x256xf32>
    %598 = arith.divf %596, %597 : vector<8x256xf32>
    %599 = arith.select %5, %593, %598 : vector<8x256xi1>, vector<8x256xf32>
    %600 = vector.extract_strided_slice %599 {offsets = [0, 0], sizes = [8, 64], strides = [1, 1]} : vector<8x256xf32> to vector<8x64xf32>
    %601 = vector.extract_strided_slice %599 {offsets = [0, 64], sizes = [8, 64], strides = [1, 1]} : vector<8x256xf32> to vector<8x64xf32>
    %602 = vector.extract_strided_slice %599 {offsets = [0, 128], sizes = [8, 64], strides = [1, 1]} : vector<8x256xf32> to vector<8x64xf32>
    %603 = vector.extract_strided_slice %599 {offsets = [0, 192], sizes = [8, 64], strides = [1, 1]} : vector<8x256xf32> to vector<8x64xf32>
    %604 = arith.mulf %601, %575 : vector<8x64xf32>
    %605 = arith.mulf %600, %602 : vector<8x64xf32>
    %606 = arith.addf %604, %605 : vector<8x64xf32>
    %607 = math.tanh %606 : vector<8x64xf32>
    %608 = arith.mulf %603, %607 : vector<8x64xf32>
    %609 = arith.index_cast %581 : i32 to index
    %c0_246 = arith.constant 0 : index
    %610 = vector.load %arg23[%609, %c0_246] : memref<64x64xf32, #tpu.memory_space<vmem>>, vector<8x64xf32>
    tpu.vector_store %arg23[%609, %c0_246], %608 {strides = array<i32>} : memref<64x64xf32, #tpu.memory_space<vmem>>, vector<8x64xf32>,
    %c2_i32_247 = arith.constant 2 : i32
    %c8_i32_248 = arith.constant 8 : i32
    %611 = arith.muli %c2_i32_247, %c8_i32_248 : i32
    %612 = tpu.assume_multiple %611, 8 : i32
    %c7_i32_249 = arith.constant 7 : i32
    %613 = arith.subi %c7_i32_249, %c2_i32_247 : i32
    %c8_i32_250 = arith.constant 8 : i32
    %614 = arith.muli %613, %c8_i32_250 : i32
    %615 = tpu.assume_multiple %614, 8 : i32
    %616 = arith.index_cast %612 : i32 to index
    %c0_251 = arith.constant 0 : index
    %617 = vector.load %arg21[%616, %c0_251] : memref<64x256xf32, #tpu.memory_space<vmem>>, vector<8x256xf32>
    %618 = arith.index_cast %615 : i32 to index
    %c0_252 = arith.constant 0 : index
    %619 = vector.load %arg22[%618, %c0_252] : memref<64x256xf32, #tpu.memory_space<vmem>>, vector<8x256xf32>
    %620 = arith.addf %617, %619 : vector<8x256xf32>
    %c0_253 = arith.constant 0 : index
    %c0_254 = arith.constant 0 : index
    %621 = vector.load %arg11[%c0_253, %c0_254] : memref<64x256xf32, #tpu.memory_space<vmem>>, vector<64x256xf32>
    %cst_255 = arith.constant dense<0.000000e+00> : vector<8x256xf32>
    %622 = tpu.matmul %608, %621, %cst_255 {dimension_numbers = #tpu.dot_dimension_numbers<[1], [0], [0], [1], [0, 0, 1, 1], [], []>} : vector<8x64xf32>, vector<64x256xf32>, vector<8x256xf32> -> vector<8x256xf32>
    %623 = arith.addf %620, %622 : vector<8x256xf32>
    %624 = math.tanh %623 : vector<8x256xf32>
    %625 = arith.negf %623 : vector<8x256xf32>
    %626 = math.exp %625 : vector<8x256xf32>
    %cst_256 = arith.constant 1.000000e+00 : f32
    %627 = vector.broadcast %cst_256 : f32 to vector<8x256xf32>
    %628 = arith.addf %627, %626 : vector<8x256xf32>
    %629 = arith.divf %627, %628 : vector<8x256xf32>
    %630 = arith.select %5, %624, %629 : vector<8x256xi1>, vector<8x256xf32>
    %631 = vector.extract_strided_slice %630 {offsets = [0, 0], sizes = [8, 64], strides = [1, 1]} : vector<8x256xf32> to vector<8x64xf32>
    %632 = vector.extract_strided_slice %630 {offsets = [0, 64], sizes = [8, 64], strides = [1, 1]} : vector<8x256xf32> to vector<8x64xf32>
    %633 = vector.extract_strided_slice %630 {offsets = [0, 128], sizes = [8, 64], strides = [1, 1]} : vector<8x256xf32> to vector<8x64xf32>
    %634 = vector.extract_strided_slice %630 {offsets = [0, 192], sizes = [8, 64], strides = [1, 1]} : vector<8x256xf32> to vector<8x64xf32>
    %635 = arith.mulf %632, %606 : vector<8x64xf32>
    %636 = arith.mulf %631, %633 : vector<8x64xf32>
    %637 = arith.addf %635, %636 : vector<8x64xf32>
    %638 = math.tanh %637 : vector<8x64xf32>
    %639 = arith.mulf %634, %638 : vector<8x64xf32>
    %640 = arith.index_cast %612 : i32 to index
    %c0_257 = arith.constant 0 : index
    %641 = vector.load %arg23[%640, %c0_257] : memref<64x64xf32, #tpu.memory_space<vmem>>, vector<8x64xf32>
    tpu.vector_store %arg23[%640, %c0_257], %639 {strides = array<i32>} : memref<64x64xf32, #tpu.memory_space<vmem>>, vector<8x64xf32>,
    %c3_i32_258 = arith.constant 3 : i32
    %c8_i32_259 = arith.constant 8 : i32
    %642 = arith.muli %c3_i32_258, %c8_i32_259 : i32
    %643 = tpu.assume_multiple %642, 8 : i32
    %c7_i32_260 = arith.constant 7 : i32
    %644 = arith.subi %c7_i32_260, %c3_i32_258 : i32
    %c8_i32_261 = arith.constant 8 : i32
    %645 = arith.muli %644, %c8_i32_261 : i32
    %646 = tpu.assume_multiple %645, 8 : i32
    %647 = arith.index_cast %643 : i32 to index
    %c0_262 = arith.constant 0 : index
    %648 = vector.load %arg21[%647, %c0_262] : memref<64x256xf32, #tpu.memory_space<vmem>>, vector<8x256xf32>
    %649 = arith.index_cast %646 : i32 to index
    %c0_263 = arith.constant 0 : index
    %650 = vector.load %arg22[%649, %c0_263] : memref<64x256xf32, #tpu.memory_space<vmem>>, vector<8x256xf32>
    %651 = arith.addf %648, %650 : vector<8x256xf32>
    %c0_264 = arith.constant 0 : index
    %c0_265 = arith.constant 0 : index
    %652 = vector.load %arg11[%c0_264, %c0_265] : memref<64x256xf32, #tpu.memory_space<vmem>>, vector<64x256xf32>
    %cst_266 = arith.constant dense<0.000000e+00> : vector<8x256xf32>
    %653 = tpu.matmul %639, %652, %cst_266 {dimension_numbers = #tpu.dot_dimension_numbers<[1], [0], [0], [1], [0, 0, 1, 1], [], []>} : vector<8x64xf32>, vector<64x256xf32>, vector<8x256xf32> -> vector<8x256xf32>
    %654 = arith.addf %651, %653 : vector<8x256xf32>
    %655 = math.tanh %654 : vector<8x256xf32>
    %656 = arith.negf %654 : vector<8x256xf32>
    %657 = math.exp %656 : vector<8x256xf32>
    %cst_267 = arith.constant 1.000000e+00 : f32
    %658 = vector.broadcast %cst_267 : f32 to vector<8x256xf32>
    %659 = arith.addf %658, %657 : vector<8x256xf32>
    %660 = arith.divf %658, %659 : vector<8x256xf32>
    %661 = arith.select %5, %655, %660 : vector<8x256xi1>, vector<8x256xf32>
    %662 = vector.extract_strided_slice %661 {offsets = [0, 0], sizes = [8, 64], strides = [1, 1]} : vector<8x256xf32> to vector<8x64xf32>
    %663 = vector.extract_strided_slice %661 {offsets = [0, 64], sizes = [8, 64], strides = [1, 1]} : vector<8x256xf32> to vector<8x64xf32>
    %664 = vector.extract_strided_slice %661 {offsets = [0, 128], sizes = [8, 64], strides = [1, 1]} : vector<8x256xf32> to vector<8x64xf32>
    %665 = vector.extract_strided_slice %661 {offsets = [0, 192], sizes = [8, 64], strides = [1, 1]} : vector<8x256xf32> to vector<8x64xf32>
    %666 = arith.mulf %663, %637 : vector<8x64xf32>
    %667 = arith.mulf %662, %664 : vector<8x64xf32>
    %668 = arith.addf %666, %667 : vector<8x64xf32>
    %669 = math.tanh %668 : vector<8x64xf32>
    %670 = arith.mulf %665, %669 : vector<8x64xf32>
    %671 = arith.index_cast %643 : i32 to index
    %c0_268 = arith.constant 0 : index
    %672 = vector.load %arg23[%671, %c0_268] : memref<64x64xf32, #tpu.memory_space<vmem>>, vector<8x64xf32>
    tpu.vector_store %arg23[%671, %c0_268], %670 {strides = array<i32>} : memref<64x64xf32, #tpu.memory_space<vmem>>, vector<8x64xf32>,
    %c4_i32_269 = arith.constant 4 : i32
    %c8_i32_270 = arith.constant 8 : i32
    %673 = arith.muli %c4_i32_269, %c8_i32_270 : i32
    %674 = tpu.assume_multiple %673, 8 : i32
    %c7_i32_271 = arith.constant 7 : i32
    %675 = arith.subi %c7_i32_271, %c4_i32_269 : i32
    %c8_i32_272 = arith.constant 8 : i32
    %676 = arith.muli %675, %c8_i32_272 : i32
    %677 = tpu.assume_multiple %676, 8 : i32
    %678 = arith.index_cast %674 : i32 to index
    %c0_273 = arith.constant 0 : index
    %679 = vector.load %arg21[%678, %c0_273] : memref<64x256xf32, #tpu.memory_space<vmem>>, vector<8x256xf32>
    %680 = arith.index_cast %677 : i32 to index
    %c0_274 = arith.constant 0 : index
    %681 = vector.load %arg22[%680, %c0_274] : memref<64x256xf32, #tpu.memory_space<vmem>>, vector<8x256xf32>
    %682 = arith.addf %679, %681 : vector<8x256xf32>
    %c0_275 = arith.constant 0 : index
    %c0_276 = arith.constant 0 : index
    %683 = vector.load %arg11[%c0_275, %c0_276] : memref<64x256xf32, #tpu.memory_space<vmem>>, vector<64x256xf32>
    %cst_277 = arith.constant dense<0.000000e+00> : vector<8x256xf32>
    %684 = tpu.matmul %670, %683, %cst_277 {dimension_numbers = #tpu.dot_dimension_numbers<[1], [0], [0], [1], [0, 0, 1, 1], [], []>} : vector<8x64xf32>, vector<64x256xf32>, vector<8x256xf32> -> vector<8x256xf32>
    %685 = arith.addf %682, %684 : vector<8x256xf32>
    %686 = math.tanh %685 : vector<8x256xf32>
    %687 = arith.negf %685 : vector<8x256xf32>
    %688 = math.exp %687 : vector<8x256xf32>
    %cst_278 = arith.constant 1.000000e+00 : f32
    %689 = vector.broadcast %cst_278 : f32 to vector<8x256xf32>
    %690 = arith.addf %689, %688 : vector<8x256xf32>
    %691 = arith.divf %689, %690 : vector<8x256xf32>
    %692 = arith.select %5, %686, %691 : vector<8x256xi1>, vector<8x256xf32>
    %693 = vector.extract_strided_slice %692 {offsets = [0, 0], sizes = [8, 64], strides = [1, 1]} : vector<8x256xf32> to vector<8x64xf32>
    %694 = vector.extract_strided_slice %692 {offsets = [0, 64], sizes = [8, 64], strides = [1, 1]} : vector<8x256xf32> to vector<8x64xf32>
    %695 = vector.extract_strided_slice %692 {offsets = [0, 128], sizes = [8, 64], strides = [1, 1]} : vector<8x256xf32> to vector<8x64xf32>
    %696 = vector.extract_strided_slice %692 {offsets = [0, 192], sizes = [8, 64], strides = [1, 1]} : vector<8x256xf32> to vector<8x64xf32>
    %697 = arith.mulf %694, %668 : vector<8x64xf32>
    %698 = arith.mulf %693, %695 : vector<8x64xf32>
    %699 = arith.addf %697, %698 : vector<8x64xf32>
    %700 = math.tanh %699 : vector<8x64xf32>
    %701 = arith.mulf %696, %700 : vector<8x64xf32>
    %702 = arith.index_cast %674 : i32 to index
    %c0_279 = arith.constant 0 : index
    %703 = vector.load %arg23[%702, %c0_279] : memref<64x64xf32, #tpu.memory_space<vmem>>, vector<8x64xf32>
    tpu.vector_store %arg23[%702, %c0_279], %701 {strides = array<i32>} : memref<64x64xf32, #tpu.memory_space<vmem>>, vector<8x64xf32>,
    %c5_i32_280 = arith.constant 5 : i32
    %c8_i32_281 = arith.constant 8 : i32
    %704 = arith.muli %c5_i32_280, %c8_i32_281 : i32
    %705 = tpu.assume_multiple %704, 8 : i32
    %c7_i32_282 = arith.constant 7 : i32
    %706 = arith.subi %c7_i32_282, %c5_i32_280 : i32
    %c8_i32_283 = arith.constant 8 : i32
    %707 = arith.muli %706, %c8_i32_283 : i32
    %708 = tpu.assume_multiple %707, 8 : i32
    %709 = arith.index_cast %705 : i32 to index
    %c0_284 = arith.constant 0 : index
    %710 = vector.load %arg21[%709, %c0_284] : memref<64x256xf32, #tpu.memory_space<vmem>>, vector<8x256xf32>
    %711 = arith.index_cast %708 : i32 to index
    %c0_285 = arith.constant 0 : index
    %712 = vector.load %arg22[%711, %c0_285] : memref<64x256xf32, #tpu.memory_space<vmem>>, vector<8x256xf32>
    %713 = arith.addf %710, %712 : vector<8x256xf32>
    %c0_286 = arith.constant 0 : index
    %c0_287 = arith.constant 0 : index
    %714 = vector.load %arg11[%c0_286, %c0_287] : memref<64x256xf32, #tpu.memory_space<vmem>>, vector<64x256xf32>
    %cst_288 = arith.constant dense<0.000000e+00> : vector<8x256xf32>
    %715 = tpu.matmul %701, %714, %cst_288 {dimension_numbers = #tpu.dot_dimension_numbers<[1], [0], [0], [1], [0, 0, 1, 1], [], []>} : vector<8x64xf32>, vector<64x256xf32>, vector<8x256xf32> -> vector<8x256xf32>
    %716 = arith.addf %713, %715 : vector<8x256xf32>
    %717 = math.tanh %716 : vector<8x256xf32>
    %718 = arith.negf %716 : vector<8x256xf32>
    %719 = math.exp %718 : vector<8x256xf32>
    %cst_289 = arith.constant 1.000000e+00 : f32
    %720 = vector.broadcast %cst_289 : f32 to vector<8x256xf32>
    %721 = arith.addf %720, %719 : vector<8x256xf32>
    %722 = arith.divf %720, %721 : vector<8x256xf32>
    %723 = arith.select %5, %717, %722 : vector<8x256xi1>, vector<8x256xf32>
    %724 = vector.extract_strided_slice %723 {offsets = [0, 0], sizes = [8, 64], strides = [1, 1]} : vector<8x256xf32> to vector<8x64xf32>
    %725 = vector.extract_strided_slice %723 {offsets = [0, 64], sizes = [8, 64], strides = [1, 1]} : vector<8x256xf32> to vector<8x64xf32>
    %726 = vector.extract_strided_slice %723 {offsets = [0, 128], sizes = [8, 64], strides = [1, 1]} : vector<8x256xf32> to vector<8x64xf32>
    %727 = vector.extract_strided_slice %723 {offsets = [0, 192], sizes = [8, 64], strides = [1, 1]} : vector<8x256xf32> to vector<8x64xf32>
    %728 = arith.mulf %725, %699 : vector<8x64xf32>
    %729 = arith.mulf %724, %726 : vector<8x64xf32>
    %730 = arith.addf %728, %729 : vector<8x64xf32>
    %731 = math.tanh %730 : vector<8x64xf32>
    %732 = arith.mulf %727, %731 : vector<8x64xf32>
    %733 = arith.index_cast %705 : i32 to index
    %c0_290 = arith.constant 0 : index
    %734 = vector.load %arg23[%733, %c0_290] : memref<64x64xf32, #tpu.memory_space<vmem>>, vector<8x64xf32>
    tpu.vector_store %arg23[%733, %c0_290], %732 {strides = array<i32>} : memref<64x64xf32, #tpu.memory_space<vmem>>, vector<8x64xf32>,
    %c6_i32_291 = arith.constant 6 : i32
    %c8_i32_292 = arith.constant 8 : i32
    %735 = arith.muli %c6_i32_291, %c8_i32_292 : i32
    %736 = tpu.assume_multiple %735, 8 : i32
    %c7_i32_293 = arith.constant 7 : i32
    %737 = arith.subi %c7_i32_293, %c6_i32_291 : i32
    %c8_i32_294 = arith.constant 8 : i32
    %738 = arith.muli %737, %c8_i32_294 : i32
    %739 = tpu.assume_multiple %738, 8 : i32
    %740 = arith.index_cast %736 : i32 to index
    %c0_295 = arith.constant 0 : index
    %741 = vector.load %arg21[%740, %c0_295] : memref<64x256xf32, #tpu.memory_space<vmem>>, vector<8x256xf32>
    %742 = arith.index_cast %739 : i32 to index
    %c0_296 = arith.constant 0 : index
    %743 = vector.load %arg22[%742, %c0_296] : memref<64x256xf32, #tpu.memory_space<vmem>>, vector<8x256xf32>
    %744 = arith.addf %741, %743 : vector<8x256xf32>
    %c0_297 = arith.constant 0 : index
    %c0_298 = arith.constant 0 : index
    %745 = vector.load %arg11[%c0_297, %c0_298] : memref<64x256xf32, #tpu.memory_space<vmem>>, vector<64x256xf32>
    %cst_299 = arith.constant dense<0.000000e+00> : vector<8x256xf32>
    %746 = tpu.matmul %732, %745, %cst_299 {dimension_numbers = #tpu.dot_dimension_numbers<[1], [0], [0], [1], [0, 0, 1, 1], [], []>} : vector<8x64xf32>, vector<64x256xf32>, vector<8x256xf32> -> vector<8x256xf32>
    %747 = arith.addf %744, %746 : vector<8x256xf32>
    %748 = math.tanh %747 : vector<8x256xf32>
    %749 = arith.negf %747 : vector<8x256xf32>
    %750 = math.exp %749 : vector<8x256xf32>
    %cst_300 = arith.constant 1.000000e+00 : f32
    %751 = vector.broadcast %cst_300 : f32 to vector<8x256xf32>
    %752 = arith.addf %751, %750 : vector<8x256xf32>
    %753 = arith.divf %751, %752 : vector<8x256xf32>
    %754 = arith.select %5, %748, %753 : vector<8x256xi1>, vector<8x256xf32>
    %755 = vector.extract_strided_slice %754 {offsets = [0, 0], sizes = [8, 64], strides = [1, 1]} : vector<8x256xf32> to vector<8x64xf32>
    %756 = vector.extract_strided_slice %754 {offsets = [0, 64], sizes = [8, 64], strides = [1, 1]} : vector<8x256xf32> to vector<8x64xf32>
    %757 = vector.extract_strided_slice %754 {offsets = [0, 128], sizes = [8, 64], strides = [1, 1]} : vector<8x256xf32> to vector<8x64xf32>
    %758 = vector.extract_strided_slice %754 {offsets = [0, 192], sizes = [8, 64], strides = [1, 1]} : vector<8x256xf32> to vector<8x64xf32>
    %759 = arith.mulf %756, %730 : vector<8x64xf32>
    %760 = arith.mulf %755, %757 : vector<8x64xf32>
    %761 = arith.addf %759, %760 : vector<8x64xf32>
    %762 = math.tanh %761 : vector<8x64xf32>
    %763 = arith.mulf %758, %762 : vector<8x64xf32>
    %764 = arith.index_cast %736 : i32 to index
    %c0_301 = arith.constant 0 : index
    %765 = vector.load %arg23[%764, %c0_301] : memref<64x64xf32, #tpu.memory_space<vmem>>, vector<8x64xf32>
    tpu.vector_store %arg23[%764, %c0_301], %763 {strides = array<i32>} : memref<64x64xf32, #tpu.memory_space<vmem>>, vector<8x64xf32>,
    %c7_i32_302 = arith.constant 7 : i32
    %c8_i32_303 = arith.constant 8 : i32
    %766 = arith.muli %c7_i32_302, %c8_i32_303 : i32
    %767 = tpu.assume_multiple %766, 8 : i32
    %c7_i32_304 = arith.constant 7 : i32
    %768 = arith.subi %c7_i32_304, %c7_i32_302 : i32
    %c8_i32_305 = arith.constant 8 : i32
    %769 = arith.muli %768, %c8_i32_305 : i32
    %770 = tpu.assume_multiple %769, 8 : i32
    %771 = arith.index_cast %767 : i32 to index
    %c0_306 = arith.constant 0 : index
    %772 = vector.load %arg21[%771, %c0_306] : memref<64x256xf32, #tpu.memory_space<vmem>>, vector<8x256xf32>
    %773 = arith.index_cast %770 : i32 to index
    %c0_307 = arith.constant 0 : index
    %774 = vector.load %arg22[%773, %c0_307] : memref<64x256xf32, #tpu.memory_space<vmem>>, vector<8x256xf32>
    %775 = arith.addf %772, %774 : vector<8x256xf32>
    %c0_308 = arith.constant 0 : index
    %c0_309 = arith.constant 0 : index
    %776 = vector.load %arg11[%c0_308, %c0_309] : memref<64x256xf32, #tpu.memory_space<vmem>>, vector<64x256xf32>
    %cst_310 = arith.constant dense<0.000000e+00> : vector<8x256xf32>
    %777 = tpu.matmul %763, %776, %cst_310 {dimension_numbers = #tpu.dot_dimension_numbers<[1], [0], [0], [1], [0, 0, 1, 1], [], []>} : vector<8x64xf32>, vector<64x256xf32>, vector<8x256xf32> -> vector<8x256xf32>
    %778 = arith.addf %775, %777 : vector<8x256xf32>
    %779 = math.tanh %778 : vector<8x256xf32>
    %780 = arith.negf %778 : vector<8x256xf32>
    %781 = math.exp %780 : vector<8x256xf32>
    %cst_311 = arith.constant 1.000000e+00 : f32
    %782 = vector.broadcast %cst_311 : f32 to vector<8x256xf32>
    %783 = arith.addf %782, %781 : vector<8x256xf32>
    %784 = arith.divf %782, %783 : vector<8x256xf32>
    %785 = arith.select %5, %779, %784 : vector<8x256xi1>, vector<8x256xf32>
    %786 = vector.extract_strided_slice %785 {offsets = [0, 0], sizes = [8, 64], strides = [1, 1]} : vector<8x256xf32> to vector<8x64xf32>
    %787 = vector.extract_strided_slice %785 {offsets = [0, 64], sizes = [8, 64], strides = [1, 1]} : vector<8x256xf32> to vector<8x64xf32>
    %788 = vector.extract_strided_slice %785 {offsets = [0, 128], sizes = [8, 64], strides = [1, 1]} : vector<8x256xf32> to vector<8x64xf32>
    %789 = vector.extract_strided_slice %785 {offsets = [0, 192], sizes = [8, 64], strides = [1, 1]} : vector<8x256xf32> to vector<8x64xf32>
    %790 = arith.mulf %787, %761 : vector<8x64xf32>
    %791 = arith.mulf %786, %788 : vector<8x64xf32>
    %792 = arith.addf %790, %791 : vector<8x64xf32>
    %793 = math.tanh %792 : vector<8x64xf32>
    %794 = arith.mulf %789, %793 : vector<8x64xf32>
    %795 = arith.index_cast %767 : i32 to index
    %c0_312 = arith.constant 0 : index
    %796 = vector.load %arg23[%795, %c0_312] : memref<64x64xf32, #tpu.memory_space<vmem>>, vector<8x64xf32>
    tpu.vector_store %arg23[%795, %c0_312], %794 {strides = array<i32>} : memref<64x64xf32, #tpu.memory_space<vmem>>, vector<8x64xf32>,
    %c8_i32_313 = arith.constant 8 : i32
    %c2_314 = arith.constant 2 : index
    %c0_315 = arith.constant 0 : index
    %c0_316 = arith.constant 0 : index
    %797 = vector.load %arg25[%c2_314, %c0_315, %c0_316] : memref<4x8x64xf32, #tpu.memory_space<vmem>>, vector<1x8x64xf32>
    %798 = vector.shape_cast %797 : vector<1x8x64xf32> to vector<8x64xf32>
    %c3_317 = arith.constant 3 : index
    %c0_318 = arith.constant 0 : index
    %c0_319 = arith.constant 0 : index
    %799 = vector.load %arg25[%c3_317, %c0_318, %c0_319] : memref<4x8x64xf32, #tpu.memory_space<vmem>>, vector<1x8x64xf32>
    %800 = vector.shape_cast %799 : vector<1x8x64xf32> to vector<8x64xf32>
    %c0_320 = arith.constant 0 : index
    %c0_321 = arith.constant 0 : index
    %801 = vector.load %arg23[%c0_320, %c0_321] : memref<64x64xf32, #tpu.memory_space<vmem>>, vector<64x64xf32>
    %c0_322 = arith.constant 0 : index
    %c0_323 = arith.constant 0 : index
    %802 = vector.load %arg13[%c0_322, %c0_323] : memref<64x256xf32, #tpu.memory_space<vmem>>, vector<64x256xf32>
    %cst_324 = arith.constant dense<0.000000e+00> : vector<64x256xf32>
    %803 = tpu.matmul %801, %802, %cst_324 {dimension_numbers = #tpu.dot_dimension_numbers<[1], [0], [0], [1], [0, 0, 1, 1], [], []>} : vector<64x64xf32>, vector<64x256xf32>, vector<64x256xf32> -> vector<64x256xf32>
    %c0_325 = arith.constant 0 : index
    %c0_326 = arith.constant 0 : index
    %804 = vector.load %arg16[%c0_325, %c0_326] : memref<1x256xf32, #tpu.memory_space<vmem>>, vector<1x256xf32>
    %805 = vector.broadcast %804 : vector<1x256xf32> to vector<64x256xf32>
    %806 = arith.addf %803, %805 : vector<64x256xf32>
    %c0_327 = arith.constant 0 : index
    %c0_328 = arith.constant 0 : index
    %807 = vector.load %arg21[%c0_327, %c0_328] : memref<64x256xf32, #tpu.memory_space<vmem>>, vector<64x256xf32>
    tpu.vector_store %arg21[%c0_327, %c0_328], %806 {strides = array<i32>} : memref<64x256xf32, #tpu.memory_space<vmem>>, vector<64x256xf32>,
    %c0_329 = arith.constant 0 : index
    %c0_330 = arith.constant 0 : index
    %808 = vector.load %arg14[%c0_329, %c0_330] : memref<64x256xf32, #tpu.memory_space<vmem>>, vector<64x256xf32>
    %cst_331 = arith.constant dense<0.000000e+00> : vector<64x256xf32>
    %809 = tpu.matmul %801, %808, %cst_331 {dimension_numbers = #tpu.dot_dimension_numbers<[1], [0], [0], [1], [0, 0, 1, 1], [], []>} : vector<64x64xf32>, vector<64x256xf32>, vector<64x256xf32> -> vector<64x256xf32>
    %c0_332 = arith.constant 0 : index
    %c0_333 = arith.constant 0 : index
    %810 = vector.load %arg22[%c0_332, %c0_333] : memref<64x256xf32, #tpu.memory_space<vmem>>, vector<64x256xf32>
    tpu.vector_store %arg22[%c0_332, %c0_333], %809 {strides = array<i32>} : memref<64x256xf32, #tpu.memory_space<vmem>>, vector<64x256xf32>,
    %c0_i32_334 = arith.constant 0 : i32
    %c8_i32_335 = arith.constant 8 : i32
    %811 = arith.muli %c0_i32_334, %c8_i32_335 : i32
    %812 = tpu.assume_multiple %811, 8 : i32
    %c7_i32_336 = arith.constant 7 : i32
    %813 = arith.subi %c7_i32_336, %c0_i32_334 : i32
    %c8_i32_337 = arith.constant 8 : i32
    %814 = arith.muli %813, %c8_i32_337 : i32
    %815 = tpu.assume_multiple %814, 8 : i32
    %816 = arith.index_cast %812 : i32 to index
    %c0_338 = arith.constant 0 : index
    %817 = vector.load %arg21[%816, %c0_338] : memref<64x256xf32, #tpu.memory_space<vmem>>, vector<8x256xf32>
    %818 = arith.index_cast %815 : i32 to index
    %c0_339 = arith.constant 0 : index
    %819 = vector.load %arg22[%818, %c0_339] : memref<64x256xf32, #tpu.memory_space<vmem>>, vector<8x256xf32>
    %820 = arith.addf %817, %819 : vector<8x256xf32>
    %c0_340 = arith.constant 0 : index
    %c0_341 = arith.constant 0 : index
    %821 = vector.load %arg15[%c0_340, %c0_341] : memref<64x256xf32, #tpu.memory_space<vmem>>, vector<64x256xf32>
    %cst_342 = arith.constant dense<0.000000e+00> : vector<8x256xf32>
    %822 = tpu.matmul %798, %821, %cst_342 {dimension_numbers = #tpu.dot_dimension_numbers<[1], [0], [0], [1], [0, 0, 1, 1], [], []>} : vector<8x64xf32>, vector<64x256xf32>, vector<8x256xf32> -> vector<8x256xf32>
    %823 = arith.addf %820, %822 : vector<8x256xf32>
    %824 = math.tanh %823 : vector<8x256xf32>
    %825 = arith.negf %823 : vector<8x256xf32>
    %826 = math.exp %825 : vector<8x256xf32>
    %cst_343 = arith.constant 1.000000e+00 : f32
    %827 = vector.broadcast %cst_343 : f32 to vector<8x256xf32>
    %828 = arith.addf %827, %826 : vector<8x256xf32>
    %829 = arith.divf %827, %828 : vector<8x256xf32>
    %830 = arith.select %5, %824, %829 : vector<8x256xi1>, vector<8x256xf32>
    %831 = vector.extract_strided_slice %830 {offsets = [0, 0], sizes = [8, 64], strides = [1, 1]} : vector<8x256xf32> to vector<8x64xf32>
    %832 = vector.extract_strided_slice %830 {offsets = [0, 64], sizes = [8, 64], strides = [1, 1]} : vector<8x256xf32> to vector<8x64xf32>
    %833 = vector.extract_strided_slice %830 {offsets = [0, 128], sizes = [8, 64], strides = [1, 1]} : vector<8x256xf32> to vector<8x64xf32>
    %834 = vector.extract_strided_slice %830 {offsets = [0, 192], sizes = [8, 64], strides = [1, 1]} : vector<8x256xf32> to vector<8x64xf32>
    %835 = arith.mulf %832, %800 : vector<8x64xf32>
    %836 = arith.mulf %831, %833 : vector<8x64xf32>
    %837 = arith.addf %835, %836 : vector<8x64xf32>
    %838 = math.tanh %837 : vector<8x64xf32>
    %839 = arith.mulf %834, %838 : vector<8x64xf32>
    %840 = arith.index_cast %812 : i32 to index
    %c0_344 = arith.constant 0 : index
    %841 = vector.load %arg24[%840, %c0_344] : memref<64x64xf32, #tpu.memory_space<vmem>>, vector<8x64xf32>
    tpu.vector_store %arg24[%840, %c0_344], %839 {strides = array<i32>} : memref<64x64xf32, #tpu.memory_space<vmem>>, vector<8x64xf32>,
    %c1_i32_345 = arith.constant 1 : i32
    %c8_i32_346 = arith.constant 8 : i32
    %842 = arith.muli %c1_i32_345, %c8_i32_346 : i32
    %843 = tpu.assume_multiple %842, 8 : i32
    %c7_i32_347 = arith.constant 7 : i32
    %844 = arith.subi %c7_i32_347, %c1_i32_345 : i32
    %c8_i32_348 = arith.constant 8 : i32
    %845 = arith.muli %844, %c8_i32_348 : i32
    %846 = tpu.assume_multiple %845, 8 : i32
    %847 = arith.index_cast %843 : i32 to index
    %c0_349 = arith.constant 0 : index
    %848 = vector.load %arg21[%847, %c0_349] : memref<64x256xf32, #tpu.memory_space<vmem>>, vector<8x256xf32>
    %849 = arith.index_cast %846 : i32 to index
    %c0_350 = arith.constant 0 : index
    %850 = vector.load %arg22[%849, %c0_350] : memref<64x256xf32, #tpu.memory_space<vmem>>, vector<8x256xf32>
    %851 = arith.addf %848, %850 : vector<8x256xf32>
    %c0_351 = arith.constant 0 : index
    %c0_352 = arith.constant 0 : index
    %852 = vector.load %arg15[%c0_351, %c0_352] : memref<64x256xf32, #tpu.memory_space<vmem>>, vector<64x256xf32>
    %cst_353 = arith.constant dense<0.000000e+00> : vector<8x256xf32>
    %853 = tpu.matmul %839, %852, %cst_353 {dimension_numbers = #tpu.dot_dimension_numbers<[1], [0], [0], [1], [0, 0, 1, 1], [], []>} : vector<8x64xf32>, vector<64x256xf32>, vector<8x256xf32> -> vector<8x256xf32>
    %854 = arith.addf %851, %853 : vector<8x256xf32>
    %855 = math.tanh %854 : vector<8x256xf32>
    %856 = arith.negf %854 : vector<8x256xf32>
    %857 = math.exp %856 : vector<8x256xf32>
    %cst_354 = arith.constant 1.000000e+00 : f32
    %858 = vector.broadcast %cst_354 : f32 to vector<8x256xf32>
    %859 = arith.addf %858, %857 : vector<8x256xf32>
    %860 = arith.divf %858, %859 : vector<8x256xf32>
    %861 = arith.select %5, %855, %860 : vector<8x256xi1>, vector<8x256xf32>
    %862 = vector.extract_strided_slice %861 {offsets = [0, 0], sizes = [8, 64], strides = [1, 1]} : vector<8x256xf32> to vector<8x64xf32>
    %863 = vector.extract_strided_slice %861 {offsets = [0, 64], sizes = [8, 64], strides = [1, 1]} : vector<8x256xf32> to vector<8x64xf32>
    %864 = vector.extract_strided_slice %861 {offsets = [0, 128], sizes = [8, 64], strides = [1, 1]} : vector<8x256xf32> to vector<8x64xf32>
    %865 = vector.extract_strided_slice %861 {offsets = [0, 192], sizes = [8, 64], strides = [1, 1]} : vector<8x256xf32> to vector<8x64xf32>
    %866 = arith.mulf %863, %837 : vector<8x64xf32>
    %867 = arith.mulf %862, %864 : vector<8x64xf32>
    %868 = arith.addf %866, %867 : vector<8x64xf32>
    %869 = math.tanh %868 : vector<8x64xf32>
    %870 = arith.mulf %865, %869 : vector<8x64xf32>
    %871 = arith.index_cast %843 : i32 to index
    %c0_355 = arith.constant 0 : index
    %872 = vector.load %arg24[%871, %c0_355] : memref<64x64xf32, #tpu.memory_space<vmem>>, vector<8x64xf32>
    tpu.vector_store %arg24[%871, %c0_355], %870 {strides = array<i32>} : memref<64x64xf32, #tpu.memory_space<vmem>>, vector<8x64xf32>,
    %c2_i32_356 = arith.constant 2 : i32
    %c8_i32_357 = arith.constant 8 : i32
    %873 = arith.muli %c2_i32_356, %c8_i32_357 : i32
    %874 = tpu.assume_multiple %873, 8 : i32
    %c7_i32_358 = arith.constant 7 : i32
    %875 = arith.subi %c7_i32_358, %c2_i32_356 : i32
    %c8_i32_359 = arith.constant 8 : i32
    %876 = arith.muli %875, %c8_i32_359 : i32
    %877 = tpu.assume_multiple %876, 8 : i32
    %878 = arith.index_cast %874 : i32 to index
    %c0_360 = arith.constant 0 : index
    %879 = vector.load %arg21[%878, %c0_360] : memref<64x256xf32, #tpu.memory_space<vmem>>, vector<8x256xf32>
    %880 = arith.index_cast %877 : i32 to index
    %c0_361 = arith.constant 0 : index
    %881 = vector.load %arg22[%880, %c0_361] : memref<64x256xf32, #tpu.memory_space<vmem>>, vector<8x256xf32>
    %882 = arith.addf %879, %881 : vector<8x256xf32>
    %c0_362 = arith.constant 0 : index
    %c0_363 = arith.constant 0 : index
    %883 = vector.load %arg15[%c0_362, %c0_363] : memref<64x256xf32, #tpu.memory_space<vmem>>, vector<64x256xf32>
    %cst_364 = arith.constant dense<0.000000e+00> : vector<8x256xf32>
    %884 = tpu.matmul %870, %883, %cst_364 {dimension_numbers = #tpu.dot_dimension_numbers<[1], [0], [0], [1], [0, 0, 1, 1], [], []>} : vector<8x64xf32>, vector<64x256xf32>, vector<8x256xf32> -> vector<8x256xf32>
    %885 = arith.addf %882, %884 : vector<8x256xf32>
    %886 = math.tanh %885 : vector<8x256xf32>
    %887 = arith.negf %885 : vector<8x256xf32>
    %888 = math.exp %887 : vector<8x256xf32>
    %cst_365 = arith.constant 1.000000e+00 : f32
    %889 = vector.broadcast %cst_365 : f32 to vector<8x256xf32>
    %890 = arith.addf %889, %888 : vector<8x256xf32>
    %891 = arith.divf %889, %890 : vector<8x256xf32>
    %892 = arith.select %5, %886, %891 : vector<8x256xi1>, vector<8x256xf32>
    %893 = vector.extract_strided_slice %892 {offsets = [0, 0], sizes = [8, 64], strides = [1, 1]} : vector<8x256xf32> to vector<8x64xf32>
    %894 = vector.extract_strided_slice %892 {offsets = [0, 64], sizes = [8, 64], strides = [1, 1]} : vector<8x256xf32> to vector<8x64xf32>
    %895 = vector.extract_strided_slice %892 {offsets = [0, 128], sizes = [8, 64], strides = [1, 1]} : vector<8x256xf32> to vector<8x64xf32>
    %896 = vector.extract_strided_slice %892 {offsets = [0, 192], sizes = [8, 64], strides = [1, 1]} : vector<8x256xf32> to vector<8x64xf32>
    %897 = arith.mulf %894, %868 : vector<8x64xf32>
    %898 = arith.mulf %893, %895 : vector<8x64xf32>
    %899 = arith.addf %897, %898 : vector<8x64xf32>
    %900 = math.tanh %899 : vector<8x64xf32>
    %901 = arith.mulf %896, %900 : vector<8x64xf32>
    %902 = arith.index_cast %874 : i32 to index
    %c0_366 = arith.constant 0 : index
    %903 = vector.load %arg24[%902, %c0_366] : memref<64x64xf32, #tpu.memory_space<vmem>>, vector<8x64xf32>
    tpu.vector_store %arg24[%902, %c0_366], %901 {strides = array<i32>} : memref<64x64xf32, #tpu.memory_space<vmem>>, vector<8x64xf32>,
    %c3_i32_367 = arith.constant 3 : i32
    %c8_i32_368 = arith.constant 8 : i32
    %904 = arith.muli %c3_i32_367, %c8_i32_368 : i32
    %905 = tpu.assume_multiple %904, 8 : i32
    %c7_i32_369 = arith.constant 7 : i32
    %906 = arith.subi %c7_i32_369, %c3_i32_367 : i32
    %c8_i32_370 = arith.constant 8 : i32
    %907 = arith.muli %906, %c8_i32_370 : i32
    %908 = tpu.assume_multiple %907, 8 : i32
    %909 = arith.index_cast %905 : i32 to index
    %c0_371 = arith.constant 0 : index
    %910 = vector.load %arg21[%909, %c0_371] : memref<64x256xf32, #tpu.memory_space<vmem>>, vector<8x256xf32>
    %911 = arith.index_cast %908 : i32 to index
    %c0_372 = arith.constant 0 : index
    %912 = vector.load %arg22[%911, %c0_372] : memref<64x256xf32, #tpu.memory_space<vmem>>, vector<8x256xf32>
    %913 = arith.addf %910, %912 : vector<8x256xf32>
    %c0_373 = arith.constant 0 : index
    %c0_374 = arith.constant 0 : index
    %914 = vector.load %arg15[%c0_373, %c0_374] : memref<64x256xf32, #tpu.memory_space<vmem>>, vector<64x256xf32>
    %cst_375 = arith.constant dense<0.000000e+00> : vector<8x256xf32>
    %915 = tpu.matmul %901, %914, %cst_375 {dimension_numbers = #tpu.dot_dimension_numbers<[1], [0], [0], [1], [0, 0, 1, 1], [], []>} : vector<8x64xf32>, vector<64x256xf32>, vector<8x256xf32> -> vector<8x256xf32>
    %916 = arith.addf %913, %915 : vector<8x256xf32>
    %917 = math.tanh %916 : vector<8x256xf32>
    %918 = arith.negf %916 : vector<8x256xf32>
    %919 = math.exp %918 : vector<8x256xf32>
    %cst_376 = arith.constant 1.000000e+00 : f32
    %920 = vector.broadcast %cst_376 : f32 to vector<8x256xf32>
    %921 = arith.addf %920, %919 : vector<8x256xf32>
    %922 = arith.divf %920, %921 : vector<8x256xf32>
    %923 = arith.select %5, %917, %922 : vector<8x256xi1>, vector<8x256xf32>
    %924 = vector.extract_strided_slice %923 {offsets = [0, 0], sizes = [8, 64], strides = [1, 1]} : vector<8x256xf32> to vector<8x64xf32>
    %925 = vector.extract_strided_slice %923 {offsets = [0, 64], sizes = [8, 64], strides = [1, 1]} : vector<8x256xf32> to vector<8x64xf32>
    %926 = vector.extract_strided_slice %923 {offsets = [0, 128], sizes = [8, 64], strides = [1, 1]} : vector<8x256xf32> to vector<8x64xf32>
    %927 = vector.extract_strided_slice %923 {offsets = [0, 192], sizes = [8, 64], strides = [1, 1]} : vector<8x256xf32> to vector<8x64xf32>
    %928 = arith.mulf %925, %899 : vector<8x64xf32>
    %929 = arith.mulf %924, %926 : vector<8x64xf32>
    %930 = arith.addf %928, %929 : vector<8x64xf32>
    %931 = math.tanh %930 : vector<8x64xf32>
    %932 = arith.mulf %927, %931 : vector<8x64xf32>
    %933 = arith.index_cast %905 : i32 to index
    %c0_377 = arith.constant 0 : index
    %934 = vector.load %arg24[%933, %c0_377] : memref<64x64xf32, #tpu.memory_space<vmem>>, vector<8x64xf32>
    tpu.vector_store %arg24[%933, %c0_377], %932 {strides = array<i32>} : memref<64x64xf32, #tpu.memory_space<vmem>>, vector<8x64xf32>,
    %c4_i32_378 = arith.constant 4 : i32
    %c8_i32_379 = arith.constant 8 : i32
    %935 = arith.muli %c4_i32_378, %c8_i32_379 : i32
    %936 = tpu.assume_multiple %935, 8 : i32
    %c7_i32_380 = arith.constant 7 : i32
    %937 = arith.subi %c7_i32_380, %c4_i32_378 : i32
    %c8_i32_381 = arith.constant 8 : i32
    %938 = arith.muli %937, %c8_i32_381 : i32
    %939 = tpu.assume_multiple %938, 8 : i32
    %940 = arith.index_cast %936 : i32 to index
    %c0_382 = arith.constant 0 : index
    %941 = vector.load %arg21[%940, %c0_382] : memref<64x256xf32, #tpu.memory_space<vmem>>, vector<8x256xf32>
    %942 = arith.index_cast %939 : i32 to index
    %c0_383 = arith.constant 0 : index
    %943 = vector.load %arg22[%942, %c0_383] : memref<64x256xf32, #tpu.memory_space<vmem>>, vector<8x256xf32>
    %944 = arith.addf %941, %943 : vector<8x256xf32>
    %c0_384 = arith.constant 0 : index
    %c0_385 = arith.constant 0 : index
    %945 = vector.load %arg15[%c0_384, %c0_385] : memref<64x256xf32, #tpu.memory_space<vmem>>, vector<64x256xf32>
    %cst_386 = arith.constant dense<0.000000e+00> : vector<8x256xf32>
    %946 = tpu.matmul %932, %945, %cst_386 {dimension_numbers = #tpu.dot_dimension_numbers<[1], [0], [0], [1], [0, 0, 1, 1], [], []>} : vector<8x64xf32>, vector<64x256xf32>, vector<8x256xf32> -> vector<8x256xf32>
    %947 = arith.addf %944, %946 : vector<8x256xf32>
    %948 = math.tanh %947 : vector<8x256xf32>
    %949 = arith.negf %947 : vector<8x256xf32>
    %950 = math.exp %949 : vector<8x256xf32>
    %cst_387 = arith.constant 1.000000e+00 : f32
    %951 = vector.broadcast %cst_387 : f32 to vector<8x256xf32>
    %952 = arith.addf %951, %950 : vector<8x256xf32>
    %953 = arith.divf %951, %952 : vector<8x256xf32>
    %954 = arith.select %5, %948, %953 : vector<8x256xi1>, vector<8x256xf32>
    %955 = vector.extract_strided_slice %954 {offsets = [0, 0], sizes = [8, 64], strides = [1, 1]} : vector<8x256xf32> to vector<8x64xf32>
    %956 = vector.extract_strided_slice %954 {offsets = [0, 64], sizes = [8, 64], strides = [1, 1]} : vector<8x256xf32> to vector<8x64xf32>
    %957 = vector.extract_strided_slice %954 {offsets = [0, 128], sizes = [8, 64], strides = [1, 1]} : vector<8x256xf32> to vector<8x64xf32>
    %958 = vector.extract_strided_slice %954 {offsets = [0, 192], sizes = [8, 64], strides = [1, 1]} : vector<8x256xf32> to vector<8x64xf32>
    %959 = arith.mulf %956, %930 : vector<8x64xf32>
    %960 = arith.mulf %955, %957 : vector<8x64xf32>
    %961 = arith.addf %959, %960 : vector<8x64xf32>
    %962 = math.tanh %961 : vector<8x64xf32>
    %963 = arith.mulf %958, %962 : vector<8x64xf32>
    %964 = arith.index_cast %936 : i32 to index
    %c0_388 = arith.constant 0 : index
    %965 = vector.load %arg24[%964, %c0_388] : memref<64x64xf32, #tpu.memory_space<vmem>>, vector<8x64xf32>
    tpu.vector_store %arg24[%964, %c0_388], %963 {strides = array<i32>} : memref<64x64xf32, #tpu.memory_space<vmem>>, vector<8x64xf32>,
    %c5_i32_389 = arith.constant 5 : i32
    %c8_i32_390 = arith.constant 8 : i32
    %966 = arith.muli %c5_i32_389, %c8_i32_390 : i32
    %967 = tpu.assume_multiple %966, 8 : i32
    %c7_i32_391 = arith.constant 7 : i32
    %968 = arith.subi %c7_i32_391, %c5_i32_389 : i32
    %c8_i32_392 = arith.constant 8 : i32
    %969 = arith.muli %968, %c8_i32_392 : i32
    %970 = tpu.assume_multiple %969, 8 : i32
    %971 = arith.index_cast %967 : i32 to index
    %c0_393 = arith.constant 0 : index
    %972 = vector.load %arg21[%971, %c0_393] : memref<64x256xf32, #tpu.memory_space<vmem>>, vector<8x256xf32>
    %973 = arith.index_cast %970 : i32 to index
    %c0_394 = arith.constant 0 : index
    %974 = vector.load %arg22[%973, %c0_394] : memref<64x256xf32, #tpu.memory_space<vmem>>, vector<8x256xf32>
    %975 = arith.addf %972, %974 : vector<8x256xf32>
    %c0_395 = arith.constant 0 : index
    %c0_396 = arith.constant 0 : index
    %976 = vector.load %arg15[%c0_395, %c0_396] : memref<64x256xf32, #tpu.memory_space<vmem>>, vector<64x256xf32>
    %cst_397 = arith.constant dense<0.000000e+00> : vector<8x256xf32>
    %977 = tpu.matmul %963, %976, %cst_397 {dimension_numbers = #tpu.dot_dimension_numbers<[1], [0], [0], [1], [0, 0, 1, 1], [], []>} : vector<8x64xf32>, vector<64x256xf32>, vector<8x256xf32> -> vector<8x256xf32>
    %978 = arith.addf %975, %977 : vector<8x256xf32>
    %979 = math.tanh %978 : vector<8x256xf32>
    %980 = arith.negf %978 : vector<8x256xf32>
    %981 = math.exp %980 : vector<8x256xf32>
    %cst_398 = arith.constant 1.000000e+00 : f32
    %982 = vector.broadcast %cst_398 : f32 to vector<8x256xf32>
    %983 = arith.addf %982, %981 : vector<8x256xf32>
    %984 = arith.divf %982, %983 : vector<8x256xf32>
    %985 = arith.select %5, %979, %984 : vector<8x256xi1>, vector<8x256xf32>
    %986 = vector.extract_strided_slice %985 {offsets = [0, 0], sizes = [8, 64], strides = [1, 1]} : vector<8x256xf32> to vector<8x64xf32>
    %987 = vector.extract_strided_slice %985 {offsets = [0, 64], sizes = [8, 64], strides = [1, 1]} : vector<8x256xf32> to vector<8x64xf32>
    %988 = vector.extract_strided_slice %985 {offsets = [0, 128], sizes = [8, 64], strides = [1, 1]} : vector<8x256xf32> to vector<8x64xf32>
    %989 = vector.extract_strided_slice %985 {offsets = [0, 192], sizes = [8, 64], strides = [1, 1]} : vector<8x256xf32> to vector<8x64xf32>
    %990 = arith.mulf %987, %961 : vector<8x64xf32>
    %991 = arith.mulf %986, %988 : vector<8x64xf32>
    %992 = arith.addf %990, %991 : vector<8x64xf32>
    %993 = math.tanh %992 : vector<8x64xf32>
    %994 = arith.mulf %989, %993 : vector<8x64xf32>
    %995 = arith.index_cast %967 : i32 to index
    %c0_399 = arith.constant 0 : index
    %996 = vector.load %arg24[%995, %c0_399] : memref<64x64xf32, #tpu.memory_space<vmem>>, vector<8x64xf32>
    tpu.vector_store %arg24[%995, %c0_399], %994 {strides = array<i32>} : memref<64x64xf32, #tpu.memory_space<vmem>>, vector<8x64xf32>,
    %c6_i32_400 = arith.constant 6 : i32
    %c8_i32_401 = arith.constant 8 : i32
    %997 = arith.muli %c6_i32_400, %c8_i32_401 : i32
    %998 = tpu.assume_multiple %997, 8 : i32
    %c7_i32_402 = arith.constant 7 : i32
    %999 = arith.subi %c7_i32_402, %c6_i32_400 : i32
    %c8_i32_403 = arith.constant 8 : i32
    %1000 = arith.muli %999, %c8_i32_403 : i32
    %1001 = tpu.assume_multiple %1000, 8 : i32
    %1002 = arith.index_cast %998 : i32 to index
    %c0_404 = arith.constant 0 : index
    %1003 = vector.load %arg21[%1002, %c0_404] : memref<64x256xf32, #tpu.memory_space<vmem>>, vector<8x256xf32>
    %1004 = arith.index_cast %1001 : i32 to index
    %c0_405 = arith.constant 0 : index
    %1005 = vector.load %arg22[%1004, %c0_405] : memref<64x256xf32, #tpu.memory_space<vmem>>, vector<8x256xf32>
    %1006 = arith.addf %1003, %1005 : vector<8x256xf32>
    %c0_406 = arith.constant 0 : index
    %c0_407 = arith.constant 0 : index
    %1007 = vector.load %arg15[%c0_406, %c0_407] : memref<64x256xf32, #tpu.memory_space<vmem>>, vector<64x256xf32>
    %cst_408 = arith.constant dense<0.000000e+00> : vector<8x256xf32>
    %1008 = tpu.matmul %994, %1007, %cst_408 {dimension_numbers = #tpu.dot_dimension_numbers<[1], [0], [0], [1], [0, 0, 1, 1], [], []>} : vector<8x64xf32>, vector<64x256xf32>, vector<8x256xf32> -> vector<8x256xf32>
    %1009 = arith.addf %1006, %1008 : vector<8x256xf32>
    %1010 = math.tanh %1009 : vector<8x256xf32>
    %1011 = arith.negf %1009 : vector<8x256xf32>
    %1012 = math.exp %1011 : vector<8x256xf32>
    %cst_409 = arith.constant 1.000000e+00 : f32
    %1013 = vector.broadcast %cst_409 : f32 to vector<8x256xf32>
    %1014 = arith.addf %1013, %1012 : vector<8x256xf32>
    %1015 = arith.divf %1013, %1014 : vector<8x256xf32>
    %1016 = arith.select %5, %1010, %1015 : vector<8x256xi1>, vector<8x256xf32>
    %1017 = vector.extract_strided_slice %1016 {offsets = [0, 0], sizes = [8, 64], strides = [1, 1]} : vector<8x256xf32> to vector<8x64xf32>
    %1018 = vector.extract_strided_slice %1016 {offsets = [0, 64], sizes = [8, 64], strides = [1, 1]} : vector<8x256xf32> to vector<8x64xf32>
    %1019 = vector.extract_strided_slice %1016 {offsets = [0, 128], sizes = [8, 64], strides = [1, 1]} : vector<8x256xf32> to vector<8x64xf32>
    %1020 = vector.extract_strided_slice %1016 {offsets = [0, 192], sizes = [8, 64], strides = [1, 1]} : vector<8x256xf32> to vector<8x64xf32>
    %1021 = arith.mulf %1018, %992 : vector<8x64xf32>
    %1022 = arith.mulf %1017, %1019 : vector<8x64xf32>
    %1023 = arith.addf %1021, %1022 : vector<8x64xf32>
    %1024 = math.tanh %1023 : vector<8x64xf32>
    %1025 = arith.mulf %1020, %1024 : vector<8x64xf32>
    %1026 = arith.index_cast %998 : i32 to index
    %c0_410 = arith.constant 0 : index
    %1027 = vector.load %arg24[%1026, %c0_410] : memref<64x64xf32, #tpu.memory_space<vmem>>, vector<8x64xf32>
    tpu.vector_store %arg24[%1026, %c0_410], %1025 {strides = array<i32>} : memref<64x64xf32, #tpu.memory_space<vmem>>, vector<8x64xf32>,
    %c7_i32_411 = arith.constant 7 : i32
    %c8_i32_412 = arith.constant 8 : i32
    %1028 = arith.muli %c7_i32_411, %c8_i32_412 : i32
    %1029 = tpu.assume_multiple %1028, 8 : i32
    %c7_i32_413 = arith.constant 7 : i32
    %1030 = arith.subi %c7_i32_413, %c7_i32_411 : i32
    %c8_i32_414 = arith.constant 8 : i32
    %1031 = arith.muli %1030, %c8_i32_414 : i32
    %1032 = tpu.assume_multiple %1031, 8 : i32
    %1033 = arith.index_cast %1029 : i32 to index
    %c0_415 = arith.constant 0 : index
    %1034 = vector.load %arg21[%1033, %c0_415] : memref<64x256xf32, #tpu.memory_space<vmem>>, vector<8x256xf32>
    %1035 = arith.index_cast %1032 : i32 to index
    %c0_416 = arith.constant 0 : index
    %1036 = vector.load %arg22[%1035, %c0_416] : memref<64x256xf32, #tpu.memory_space<vmem>>, vector<8x256xf32>
    %1037 = arith.addf %1034, %1036 : vector<8x256xf32>
    %c0_417 = arith.constant 0 : index
    %c0_418 = arith.constant 0 : index
    %1038 = vector.load %arg15[%c0_417, %c0_418] : memref<64x256xf32, #tpu.memory_space<vmem>>, vector<64x256xf32>
    %cst_419 = arith.constant dense<0.000000e+00> : vector<8x256xf32>
    %1039 = tpu.matmul %1025, %1038, %cst_419 {dimension_numbers = #tpu.dot_dimension_numbers<[1], [0], [0], [1], [0, 0, 1, 1], [], []>} : vector<8x64xf32>, vector<64x256xf32>, vector<8x256xf32> -> vector<8x256xf32>
    %1040 = arith.addf %1037, %1039 : vector<8x256xf32>
    %1041 = math.tanh %1040 : vector<8x256xf32>
    %1042 = arith.negf %1040 : vector<8x256xf32>
    %1043 = math.exp %1042 : vector<8x256xf32>
    %cst_420 = arith.constant 1.000000e+00 : f32
    %1044 = vector.broadcast %cst_420 : f32 to vector<8x256xf32>
    %1045 = arith.addf %1044, %1043 : vector<8x256xf32>
    %1046 = arith.divf %1044, %1045 : vector<8x256xf32>
    %1047 = arith.select %5, %1041, %1046 : vector<8x256xi1>, vector<8x256xf32>
    %1048 = vector.extract_strided_slice %1047 {offsets = [0, 0], sizes = [8, 64], strides = [1, 1]} : vector<8x256xf32> to vector<8x64xf32>
    %1049 = vector.extract_strided_slice %1047 {offsets = [0, 64], sizes = [8, 64], strides = [1, 1]} : vector<8x256xf32> to vector<8x64xf32>
    %1050 = vector.extract_strided_slice %1047 {offsets = [0, 128], sizes = [8, 64], strides = [1, 1]} : vector<8x256xf32> to vector<8x64xf32>
    %1051 = vector.extract_strided_slice %1047 {offsets = [0, 192], sizes = [8, 64], strides = [1, 1]} : vector<8x256xf32> to vector<8x64xf32>
    %1052 = arith.mulf %1049, %1023 : vector<8x64xf32>
    %1053 = arith.mulf %1048, %1050 : vector<8x64xf32>
    %1054 = arith.addf %1052, %1053 : vector<8x64xf32>
    %1055 = math.tanh %1054 : vector<8x64xf32>
    %1056 = arith.mulf %1051, %1055 : vector<8x64xf32>
    %1057 = arith.index_cast %1029 : i32 to index
    %c0_421 = arith.constant 0 : index
    %1058 = vector.load %arg24[%1057, %c0_421] : memref<64x64xf32, #tpu.memory_space<vmem>>, vector<8x64xf32>
    tpu.vector_store %arg24[%1057, %c0_421], %1056 {strides = array<i32>} : memref<64x64xf32, #tpu.memory_space<vmem>>, vector<8x64xf32>,
    %c8_i32_422 = arith.constant 8 : i32
    %c56 = arith.constant 56 : index
    %c0_423 = arith.constant 0 : index
    %1059 = vector.load %arg24[%c56, %c0_423] : memref<64x64xf32, #tpu.memory_space<vmem>>, vector<8x64xf32>
    %c0_424 = arith.constant 0 : index
    %c0_425 = arith.constant 0 : index
    %1060 = vector.load %arg24[%c0_424, %c0_425] : memref<64x64xf32, #tpu.memory_space<vmem>>, vector<8x64xf32>
    %c0_426 = arith.constant 0 : index
    %c0_427 = arith.constant 0 : index
    %1061 = vector.load %arg17[%c0_426, %c0_427] : memref<64x128xf32, #tpu.memory_space<vmem>>, vector<64x128xf32>
    %cst_428 = arith.constant dense<0.000000e+00> : vector<8x128xf32>
    %1062 = tpu.matmul %1059, %1061, %cst_428 {dimension_numbers = #tpu.dot_dimension_numbers<[1], [0], [0], [1], [0, 0, 1, 1], [], []>} : vector<8x64xf32>, vector<64x128xf32>, vector<8x128xf32> -> vector<8x128xf32>
    %c0_429 = arith.constant 0 : index
    %c0_430 = arith.constant 0 : index
    %1063 = vector.load %arg18[%c0_429, %c0_430] : memref<64x128xf32, #tpu.memory_space<vmem>>, vector<64x128xf32>
    %cst_431 = arith.constant dense<0.000000e+00> : vector<8x128xf32>
    %1064 = tpu.matmul %1060, %1063, %cst_431 {dimension_numbers = #tpu.dot_dimension_numbers<[1], [0], [0], [1], [0, 0, 1, 1], [], []>} : vector<8x64xf32>, vector<64x128xf32>, vector<8x128xf32> -> vector<8x128xf32>
    %1065 = arith.addf %1062, %1064 : vector<8x128xf32>
    %c0_432 = arith.constant 0 : index
    %c0_433 = arith.constant 0 : index
    %1066 = vector.load %arg19[%c0_432, %c0_433] : memref<1x128xf32, #tpu.memory_space<vmem>>, vector<1x128xf32>
    %1067 = vector.broadcast %1066 : vector<1x128xf32> to vector<8x128xf32>
    %1068 = arith.addf %1065, %1067 : vector<8x128xf32>
    %c0_434 = arith.constant 0 : index
    %c0_435 = arith.constant 0 : index
    %1069 = vector.load %arg20[%c0_434, %c0_435] : memref<8x128xf32, #tpu.memory_space<vmem>>, vector<8x128xf32>
    tpu.vector_store %arg20[%c0_434, %c0_435], %1068 {strides = array<i32>} : memref<8x128xf32, #tpu.memory_space<vmem>>, vector<8x128xf32>,
    return
  }
}

</mosaic_0001>

<bundles_post_ra>
// kernel: tpu_custom_call.1
= control target key start
LH: loop header
LB: loop body
LE: loop exit
PB: predicated region body
PF: predicated region fallthrough
CT: control target
= control target key end

     0   :  { %s8507_s0 = inlined_call_operand.vmem [shape: f32[64,16], index: 0, kind: input, shape index: {}]   ;;  %s8508_s1 = inlined_call_operand.vmem [shape: f32[16,256], index: 1, kind: input, shape index: {}]   ;;  %s8509_s2 = inlined_call_operand.hbm [shape: f32[16,256], index: 2, kind: input, shape index: {}]   ;;  %s8510_s3 = inlined_call_operand.hbm [shape: f32[64,256], index: 3, kind: input, shape index: {}]   ;;  %s8511_s4 = inlined_call_operand.vmem [shape: f32[1,256], index: 4, kind: input, shape index: {}]   ;;  %s8512_s5 = inlined_call_operand.hbm [shape: f32[64,256], index: 5, kind: input, shape index: {}]   ;;  %s8513_s6 = inlined_call_operand.hbm [shape: f32[64,256], index: 6, kind: input, shape index: {}]   ;;  %s8514_s7 = inlined_call_operand.hbm [shape: f32[64,256], index: 7, kind: input, shape index: {}]   ;;  %s8515_s8 = inlined_call_operand.vmem [shape: f32[1,256], index: 8, kind: input, shape index: {}]   ;;  %s8516_s9 = inlined_call_operand.hbm [shape: f32[64,256], index: 9, kind: input, shape index: {}]   ;;  %s8517_s10 = inlined_call_operand.hbm [shape: f32[64,256], index: 10, kind: input, shape index: {}]   ;;  %s8518_s11 = inlined_call_operand.hbm [shape: f32[64,256], index: 11, kind: input, shape index: {}]   ;;  %s8519_s12 = inlined_call_operand.vmem [shape: f32[1,256], index: 12, kind: input, shape index: {}]   ;;  %s8520_s13 = inlined_call_operand.hbm [shape: f32[64,256], index: 13, kind: input, shape index: {}]   ;;  %s8521_s14 = inlined_call_operand.hbm [shape: f32[64,256], index: 14, kind: input, shape index: {}]   ;;  %s8522_s15 = inlined_call_operand.hbm [shape: f32[64,256], index: 15, kind: input, shape index: {}]   ;;  %s8523_s16 = inlined_call_operand.vmem [shape: f32[1,256], index: 16, kind: input, shape index: {}]   ;;  %s8524_s17 = inlined_call_operand.vmem [shape: f32[64,128], index: 17, kind: input, shape index: {}]   ;;  %s8525_s18 = inlined_call_operand.hbm [shape: f32[64,128], index: 18, kind: input, shape index: {}]   ;;  %s8526_s19 = inlined_call_operand.vmem [shape: f32[1,128], index: 19, kind: input, shape index: {}]   ;;  %s8527_s20 = inlined_call_operand.hbm [shape: f32[8,128], index: 20, kind: output, shape index: {}]  }
   0x1   :  { %8530 = sst [smem:[#allocation36_spill]] %s8507_s0 }
   0x2   :  { %8531 = sst [smem:[#allocation37_spill]] %s8508_s1 }
   0x3   :  { %8532 = sst [smem:[#allocation38_spill]] %s8509_s2 }
   0x4   :  { %8533 = sst [smem:[#allocation39_spill]] %s8510_s3 }
   0x5   :  { %8534 = sst [smem:[#allocation40_spill]] %s8511_s4 }
   0x6   :  { %25 = vsyncpa [#allocation8], 0 }
   0x7   :  { %26 = vsyncpa [#allocation11], 0 }
   0x8   :  { %27 = vsyncpa [#allocation14], 0 }
   0x9   :  { %28 = vsyncpa [#allocation17], 0 }
   0xa   :  { %29 = vsyncpa [#allocation20], 0 }
   0xb   :  { %30 = vsyncpa [#allocation23], 0 }
   0xc   :  { %31 = vsyncpa [#allocation26], 0 }
   0xd   :  { %32 = vsyncpa [#allocation9], 0  ;;  %s6803_s1 = smov [#allocation10]   ;;  %s6804_s23 = smov [#allocation13]  }
   0xe   :  { %s54_s22 = sshll.u32 %s6803_s1, 4  ;;  %s80_s24 = sshll.u32 %s6804_s23, 4  ;;  %s55_s22 = int_to_ptr.vmem [resolvable:$true] %s54_s22  ;;  %s81_s24 = int_to_ptr.vmem [resolvable:$true] %s80_s24 }
   0xf   :  { %s6535_s2 = scalar_lea.vmem %s55_s22, 2048  ;;  %p6540_p1 = scmp.lt.s32.totalorder %s55_s22, %s55_s22 }
  0x10   :  { %p6536_p0 = scmp.ne.s32.totalorder %s55_s22, %s6535_s2  ;;  %p6541_p2 = scmp.lt.s32.totalorder %s6535_s2, %s6535_s2 }
  0x12   :  { %p6542_p3 = por %p6541_p2, %p6540_p1 }
  0x14   :  { %p6543_p4 = pnand %p6542_p3, %p6536_p0 }
  0x16   :  { %6546 = shalt.err (!%p6543_p4)
}
  0x17   :  { %s6805_s25 = smov 256   ;;  %s6806_s3 = smov 16  }
  0x18   :  { %s8535_s28 = sld [smem:[#allocation39_spill]]  ;;  %s6555_s4 = scalar_lea.vmem %s81_s24, 2048 }
  0x19   :  { %p6556_p5 = scmp.ne.s32.totalorder %s81_s24, %s6555_s4  ;;  %p6560_p6 = scmp.lt.s32.totalorder %s81_s24, %s81_s24 }
  0x1a   :  { %p6561_p7 = scmp.lt.s32.totalorder %s6555_s4, %s6555_s4 }
  0x1c   :  { %p6562_p8 = por %p6561_p7, %p6560_p6 }
  0x1e   :  { %60 = dma.hbm_to_vmem [thread:$0]  %s8535_s28, 2048, %s55_s22, [#allocation11], %s6805_s25, %s6805_s25, %s6806_s3  }
  0x1f   :  { %p6563_p9 = pnand %p6562_p8, %p6556_p5 }
  0x21   :  { %6566 = shalt.err (!%p6563_p9)
}
  0x22   :  { %86 = dma.hbm_to_vmem [thread:$0]  %s8513_s6, 2048, %s81_s24, [#allocation14], %s6805_s25, %s6805_s25, %s6806_s3  }
  0x23   :  { %s6807_s0 = smov [#allocation16]   ;;  %s6808_s1 = smov [#allocation19]  }
  0x24   :  { %s106_s21 = sshll.u32 %s6807_s0, 4  ;;  %s130_s23 = sshll.u32 %s6808_s1, 4  ;;  %s107_s21 = int_to_ptr.vmem [resolvable:$true] %s106_s21  ;;  %s131_s23 = int_to_ptr.vmem [resolvable:$true] %s130_s23 }
  0x25   :  { %s6575_s22 = scalar_lea.vmem %s107_s21, 2048  ;;  %p6580_p11 = scmp.lt.s32.totalorder %s107_s21, %s107_s21 }
  0x26   :  { %p6576_p10 = scmp.ne.s32.totalorder %s107_s21, %s6575_s22  ;;  %p6581_p12 = scmp.lt.s32.totalorder %s6575_s22, %s6575_s22 }
  0x28   :  { %p6582_p13 = por %p6581_p12, %p6580_p11 }
  0x2a   :  { %p6583_p0 = pnand %p6582_p13, %p6576_p10 }
  0x2c   :  { %6586 = shalt.err (!%p6583_p0)
}
  0x2d   :  { %112 = dma.hbm_to_vmem [thread:$0]  %s8516_s9, 2048, %s107_s21, [#allocation17], %s6805_s25, %s6805_s25, %s6806_s3  }
  0x2e   :  { %s6595_s6 = scalar_lea.vmem %s131_s23, 2048  ;;  %p6600_p2 = scmp.lt.s32.totalorder %s131_s23, %s131_s23 }
  0x2f   :  { %p6596_p1 = scmp.ne.s32.totalorder %s131_s23, %s6595_s6  ;;  %p6601_p3 = scmp.lt.s32.totalorder %s6595_s6, %s6595_s6 }
  0x31   :  { %p6602_p4 = por %p6601_p3, %p6600_p2 }
  0x33   :  { %p6603_p5 = pnand %p6602_p4, %p6596_p1 }
  0x35   :  { %6606 = shalt.err (!%p6603_p5)
}
  0x36   :  { %136 = dma.hbm_to_vmem [thread:$0]  %s8518_s11, 2048, %s131_s23, [#allocation20], %s6805_s25, %s6805_s25, %s6806_s3  }
  0x37   :  { %s6809_s28 = smov [#allocation22]   ;;  %s6810_s29 = smov [#allocation7]  }
  0x38   :  { %s156_s4 = sshll.u32 %s6809_s28, 4  ;;  %s42_s30 = sshll.u32 %s6810_s29, 4  ;;  %s157_s4 = int_to_ptr.vmem [resolvable:$true] %s156_s4  ;;  %s43_s30 = int_to_ptr.vmem [resolvable:$true] %s42_s30 }
  0x39   :  { %s6615_s9 = scalar_lea.vmem %s157_s4, 2048  ;;  %p6620_p7 = scmp.lt.s32.totalorder %s157_s4, %s157_s4 }
  0x3a   :  { %p6616_p6 = scmp.ne.s32.totalorder %s157_s4, %s6615_s9  ;;  %p6621_p8 = scmp.lt.s32.totalorder %s6615_s9, %s6615_s9 }
  0x3c   :  { %p6622_p9 = por %p6621_p8, %p6620_p7 }
  0x3e   :  { %p6623_p10 = pnand %p6622_p9, %p6616_p6 }
  0x40   :  { %6626 = shalt.err (!%p6623_p10)
}
  0x41   :  { %162 = dma.hbm_to_vmem [thread:$0]  %s8521_s14, 2048, %s157_s4, [#allocation23], %s6805_s25, %s6805_s25, %s6806_s3  }
  0x42   :  { %s6635_s11 = scalar_lea.vmem %s43_s30, 512  ;;  %p6640_p12 = scmp.lt.s32.totalorder %s43_s30, %s43_s30 }
  0x43   :  { %p6636_p11 = scmp.ne.s32.totalorder %s43_s30, %s6635_s11  ;;  %p6641_p13 = scmp.lt.s32.totalorder %s6635_s11, %s6635_s11 }
  0x45   :  { %p6642_p0 = por %p6641_p13, %p6640_p12 }
  0x47   :  { %p6643_p1 = pnand %p6642_p0, %p6636_p11 }
  0x49   :  { %6646 = shalt.err (!%p6643_p1)
}
  0x4a   :  { %s8536_s22 = sld [smem:[#allocation38_spill]]  ;;  %s6811_s2 = smov [#allocation12]  }
  0x4b   :  { %s68_s26 = sshll.u32 %s6811_s2, 4  ;;  %s6812_s6 = smov [#allocation15]   ;;  %s69_s26 = int_to_ptr.vmem [resolvable:$true] %s68_s26 }
  0x4c   :  { %s92_s24 = sshll.u32 %s6812_s6, 4  ;;  %s6655_s14 = scalar_lea.vmem %s69_s26, 2048  ;;  %s93_s24 = int_to_ptr.vmem [resolvable:$true] %s92_s24 }
  0x4d   :  { %p6656_p2 = scmp.ne.s32.totalorder %s69_s26, %s6655_s14  ;;  %p6660_p3 = scmp.lt.s32.totalorder %s69_s26, %s69_s26 }
  0x4e   :  { %p6661_p4 = scmp.lt.s32.totalorder %s6655_s14, %s6655_s14 }
  0x50   :  { %48 = dma.hbm_to_vmem [thread:$0]  %s8536_s22, 512, %s43_s30, [#allocation8], %s6805_s25, %s6805_s25, %s6806_s3  }
  0x51   :  { %p6662_p5 = por %p6661_p4, %p6660_p3 }
  0x53   :  { %p6663_p6 = pnand %p6662_p5, %p6656_p2 }
  0x55   :  { %6666 = shalt.err (!%p6663_p6)
}
  0x56   :  { %74 = dma.hbm_to_vmem [thread:$0]  %s8512_s5, 2048, %s69_s26, [#allocation11], %s6805_s25, %s6805_s25, %s6806_s3  }
  0x57   :  { %s6675_s4 = scalar_lea.vmem %s93_s24, 2048  ;;  %p6680_p8 = scmp.lt.s32.totalorder %s93_s24, %s93_s24 }
  0x58   :  { %p6676_p7 = scmp.ne.s32.totalorder %s93_s24, %s6675_s4  ;;  %p6681_p9 = scmp.lt.s32.totalorder %s6675_s4, %s6675_s4 }
  0x5a   :  { %p6682_p10 = por %p6681_p9, %p6680_p8 }
  0x5c   :  { %p6683_p11 = pnand %p6682_p10, %p6676_p7 }
  0x5e   :  { %6686 = shalt.err (!%p6683_p11)
}
  0x5f   :  { %98 = dma.hbm_to_vmem [thread:$0]  %s8514_s7, 2048, %s93_s24, [#allocation14], %s6805_s25, %s6805_s25, %s6806_s3  }
  0x60   :  { %s6813_s9 = smov [#allocation18]   ;;  %s6814_s21 = smov [#allocation21]  }
  0x61   :  { %s118_s0 = sshll.u32 %s6813_s9, 4  ;;  %s144_s11 = sshll.u32 %s6814_s21, 4  ;;  %s119_s0 = int_to_ptr.vmem [resolvable:$true] %s118_s0  ;;  %s145_s11 = int_to_ptr.vmem [resolvable:$true] %s144_s11 }
  0x62   :  { %s6695_s5 = scalar_lea.vmem %s119_s0, 2048  ;;  %p6700_p13 = scmp.lt.s32.totalorder %s119_s0, %s119_s0 }
  0x63   :  { %p6696_p12 = scmp.ne.s32.totalorder %s119_s0, %s6695_s5  ;;  %p6701_p0 = scmp.lt.s32.totalorder %s6695_s5, %s6695_s5 }
  0x65   :  { %p6702_p1 = por %p6701_p0, %p6700_p13 }
  0x67   :  { %p6703_p2 = pnand %p6702_p1, %p6696_p12 }
  0x69   :  { %6706 = shalt.err (!%p6703_p2)
}
  0x6a   :  { %124 = dma.hbm_to_vmem [thread:$0]  %s8517_s10, 2048, %s119_s0, [#allocation17], %s6805_s25, %s6805_s25, %s6806_s3  }
  0x6b   :  { %s6715_s7 = scalar_lea.vmem %s145_s11, 2048  ;;  %p6720_p4 = scmp.lt.s32.totalorder %s145_s11, %s145_s11 }
  0x6c   :  { %p6716_p3 = scmp.ne.s32.totalorder %s145_s11, %s6715_s7  ;;  %p6721_p5 = scmp.lt.s32.totalorder %s6715_s7, %s6715_s7 }
  0x6e   :  { %p6722_p6 = por %p6721_p5, %p6720_p4 }
  0x70   :  { %p6723_p7 = pnand %p6722_p6, %p6716_p3 }
  0x72   :  { %6726 = shalt.err (!%p6723_p7)
}
  0x73   :  { %150 = dma.hbm_to_vmem [thread:$0]  %s8520_s13, 2048, %s145_s11, [#allocation20], %s6805_s25, %s6805_s25, %s6806_s3  }
  0x74   :  { %s6815_s26 = smov [#allocation24]   ;;  %s6816_s24 = smov [#allocation25]  }
  0x75   :  { %s168_s6 = sshll.u32 %s6815_s26, 4  ;;  %s184_s14 = sshll.u32 %s6816_s24, 4  ;;  %s169_s6 = int_to_ptr.vmem [resolvable:$true] %s168_s6  ;;  %s185_s14 = int_to_ptr.vmem [resolvable:$true] %s184_s14 }
  0x76   :  { %s6735_s10 = scalar_lea.vmem %s169_s6, 2048  ;;  %p6740_p9 = scmp.lt.s32.totalorder %s169_s6, %s169_s6 }
  0x77   :  { %p6736_p8 = scmp.ne.s32.totalorder %s169_s6, %s6735_s10  ;;  %p6741_p10 = scmp.lt.s32.totalorder %s6735_s10, %s6735_s10 }
  0x79   :  { %p6742_p11 = por %p6741_p10, %p6740_p9 }
  0x7b   :  { %p6743_p12 = pnand %p6742_p11, %p6736_p8 }
  0x7d   :  { %6746 = shalt.err (!%p6743_p12)
}
  0x7e   :  { %174 = dma.hbm_to_vmem [thread:$0]  %s8522_s15, 2048, %s169_s6, [#allocation23], %s6805_s25, %s6805_s25, %s6806_s3  }
  0x7f   :  { %s6755_s13 = scalar_lea.vmem %s185_s14, 1024  ;;  %p6760_p0 = scmp.lt.s32.totalorder %s185_s14, %s185_s14 }
  0x80   :  { %p6756_p13 = scmp.ne.s32.totalorder %s185_s14, %s6755_s13  ;;  %p6761_p1 = scmp.lt.s32.totalorder %s6755_s13, %s6755_s13 }
  0x82   :  { %p6762_p2 = por %p6761_p1, %p6760_p0 }
  0x84   :  { %p6763_p3 = pnand %p6762_p2, %p6756_p13 }
  0x86   :  { %6766 = shalt.err (!%p6763_p3)
}
  0x87   :  { %s6817_s4 = smov 128   ;;  %s6818_s29 = smov 8  }
  0x88   :  { %190 = dma.hbm_to_vmem [thread:$0]  %s8525_s18, 1024, %s185_s14, [#allocation26], %s6817_s4, %s6817_s4, %s6818_s29  }
  0x89   :  { %6787 = dma.done.wait [#allocation8], 512  }
  0x8a   :  { %6788 = vsyncadd [#allocation8], 4294966784 }
  0x8b   :  { %6789 = dma.done.wait [#allocation11], 4096  }
  0x8c   :  { %6790 = vsyncadd [#allocation11], 4294963200 }
  0x8d   :  { %6791 = dma.done.wait [#allocation14], 4096  }
  0x8e   :  { %6792 = vsyncadd [#allocation14], 4294963200 }
  0x8f   :  { %6793 = dma.done.wait [#allocation17], 4096  }
  0x90   :  { %6794 = vsyncadd [#allocation17], 4294963200 }
  0x91   :  { %6795 = dma.done.wait [#allocation20], 4096  }
  0x92   :  { %6796 = vsyncadd [#allocation20], 4294963200 }
  0x93   :  { %6797 = dma.done.wait [#allocation23], 4096  }
  0x94   :  { %6798 = vsyncadd [#allocation23], 4294963200 }
  0x95   :  { %6799 = dma.done.wait [#allocation26], 1024  }
  0x96   :  { %6800 = vsyncadd [#allocation26], 4294966272  ;;  %v6819_v0 = vmov 0.0   ;;  %s8537_s25 = sld [smem:[#allocation37_spill]]  ;;  %v419_v2 = vld [vmem:[#allocation7 + $0x18] sm:$0xff]  ;;  %v418_v4 = vld [vmem:[#allocation7 + $0x10] sm:$0xff]  ;;  %v229_v33 = vlaneseq }
  0x97   :  { %351 = vmatprep.mubr.f32.mxu0 %v6819_v0  ;;  %484 = vmatprep.mubr.f32.mxu1 %v6819_v0  ;;  %v417_v6 = vld [vmem:[#allocation7 + $0x8] sm:$0xff]  ;;  %v416_v8 = vld [vmem:[#allocation7] sm:$0xff]  ;;  %s8538_s22 = sld [smem:[#allocation36_spill]]  ;;  %vm262_vm0 = vcmask 130048   ;;  %v7014_v10 = vld [vmem:[#allocation10 + $0x78] sm:$0xff]  ;;  %s6820_s0 = smov 64  }
  0x98   :  { %448 = vmatprep.subr.mxu1 %v419_v2  ;;  %v7016_v11 = vld [vmem:[#allocation10 + $0x70] sm:$0xff]  ;;  %v7020_v12 = vld [vmem:[#allocation10 + $0x68] sm:$0xff]  ;;  %v7029_v14 = vld [vmem:[#allocation10 + $0x60] sm:$0xff]  ;;  %v253_v34 = vshrl.u32 %v229_v33, 7  ;;  %s8539_s3 = sld [smem:[#allocation40_spill]]  ;;  %vm577_vm2 = vcmask 523264  }
  0x99   :  { %449 = vmatpush1.msra.mxu1 %v418_v4  ;;  %v7032_v15 = vld [vmem:[#allocation10 + $0x58] sm:$0xff]  ;;  %v7037_v16 = vld [vmem:[#allocation10 + $0x50] sm:$0xff]  ;;  %v7047_v18 = vld [vmem:[#allocation10 + $0x48] sm:$0xff]  ;;  %vm6821_vm3 = vmmov 0  }
  0x9a   :  { %450 = vmatprep.subr.mxu1 %v417_v6  ;;  %v7052_v19 = vld [vmem:[#allocation10 + $0x40] sm:$0xff]  ;;  %v7062_v21 = vld [vmem:[#allocation10 + $0x38] sm:$0xff]  ;;  %v7067_v22 = vld [vmem:[#allocation10 + $0x30] sm:$0xff]  ;;  %v7152_v35 = vsub.s32 0, %v253_v34  ;;  %v7159_v39 = vsub.s32 1, %v253_v34 }
  0x9b   :  { %451 = vmatpush1.msra.mxu1 %v416_v8  ;;  %v7077_v24 = vld [vmem:[#allocation10 + $0x28] sm:$0xff]  ;;  %v7082_v25 = vld [vmem:[#allocation10 + $0x20] sm:$0xff]  ;;  %v7092_v27 = vld [vmem:[#allocation10 + $0x18] sm:$0xff] }
  0x9c   :  { %v249_v1 = vld [vmem:[%s8537_s25 + $0x18] sm:$0xff]  ;;  %v248_v3 = vld [vmem:[%s8537_s25 + $0x10] sm:$0xff]  ;;  %v247_v5 = vld [vmem:[%s8537_s25 + $0x8] sm:$0xff]  ;;  %730 = vmatprep.subr.mxu1 %v7014_v10 }
  0x9d   :  { %315 = vmatprep.subr.mxu0 %v249_v1  ;;  %v246_v7 = vld [vmem:[%s8537_s25] sm:$0xff]  ;;  %v239_v13 = vld [vmem:[%s8538_s22 + $0x8] sm:$0xff]  ;;  %v240_v17 = vld [vmem:[%s8538_s22 + $0x10] sm:$0xff] }
  0x9e   :  { %316 = vmatpush1.msra.mxu0 %v248_v3  ;;  %v238_v9 = vld [vmem:[%s8538_s22] sm:$0xff]  ;;  %v241_v20 = vld [vmem:[%s8538_s22 + $0x18] sm:$0xff]  ;;  %v243_v26 = vld [vmem:[%s8538_s22 + $0x28] sm:$0xff] }
  0x9f   :  { %317 = vmatprep.subr.mxu0 %v247_v5  ;;  %5914 = vmatmul.mubr.msk.f32.vlgmr.msra.gmra.mxu1 %vm262_vm0, %v238_v9  ;;  %v242_v23 = vld [vmem:[%s8538_s22 + $0x20] sm:$0xff]  ;;  %v7097_v28 = vld [vmem:[#allocation10 + $0x10] sm:$0xff]  ;;  %v7107_v30 = vld [vmem:[#allocation10 + $0x8] sm:$0xff] }
  0xa0   :  { %318 = vmatpush1.msra.mxu0 %v246_v7  ;;  %490 = vmatprep.mubr.f32.mxu1 %v6819_v0  ;;  %v244_v29 = vld [vmem:[%s8538_s22 + $0x30] sm:$0xff]  ;;  %v7112_v31 = vld [vmem:[#allocation10] sm:$0xff]  ;;  %v245_v32 = vld [vmem:[%s8538_s22 + $0x38] sm:$0xff] }
  0xa1   :  { %5906 = vmatmul.mubr.msk.f32.vlgmr.msra.gmra.mxu0 %vm262_vm0, %v238_v9  ;;  %597 = vmatprep.subr.mxu0 %v7014_v10  ;;  %v250_v36 = vld [vmem:[%s8539_s3] sm:$0x3] }
  0xa2   :  { %357 = vmatprep.mubr.f32.mxu0 %v6819_v0  ;;  %598 = vmatpush1.msra.mxu0 %v7016_v11  ;;  %v255_v42 = vrot.slane %v250_v36, %v7152_v35  ;;  %v259_v45 = vrot.slane %v250_v36, %v7159_v39 }
  0xa3   :  { %599 = vmatprep.subr.mxu0 %v7020_v12  ;;  %5915 = vmatmul.mubr.msk.f32.gmra.mxu1 %vm262_vm0, %v239_v13 }
  0xa4   :  { %600 = vmatpush1.msra.mxu0 %v7029_v14  ;;  %496 = vmatprep.mubr.f32.mxu1 %v6819_v0 }
  0xa5   :  { %5907 = vmatmul.mubr.msk.f32.gmra.mxu0 %vm262_vm0, %v239_v13  ;;  %601 = vmatprep.subr.mxu0 %v7032_v15 }
  0xa6   :  { %363 = vmatprep.mubr.f32.mxu0 %v6819_v0  ;;  %602 = vmatpush1.msra.mxu0 %v7037_v16 }
  0xa7   :  { %731 = vmatpush1.msra.mxu1 %v7016_v11  ;;  %603 = vmatprep.subr.mxu0 %v7047_v18 }
  0xa8   :  { %5916 = vmatmul.mubr.msk.f32.gmra.mxu1 %vm262_vm0, %v240_v17  ;;  %732 = vmatprep.subr.mxu1 %v7020_v12 }
  0xa9   :  { %5908 = vmatmul.mubr.msk.f32.gmra.mxu0 %vm262_vm0, %v240_v17  ;;  %502 = vmatprep.mubr.f32.mxu1 %v6819_v0 }
  0xaa   :  { %369 = vmatprep.mubr.f32.mxu0 %v6819_v0  ;;  %604 = vmatpush1.msra.mxu0 %v7052_v19 }
  0xab   :  { %733 = vmatpush1.msra.mxu1 %v7029_v14  ;;  %605 = vmatprep.subr.mxu0 %v7062_v21 }
  0xac   :  { %5917 = vmatmul.mubr.msk.f32.gmra.mxu1 %vm262_vm0, %v241_v20  ;;  %734 = vmatprep.subr.mxu1 %v7032_v15 }
  0xad   :  { %5909 = vmatmul.mubr.msk.f32.gmra.mxu0 %vm262_vm0, %v241_v20  ;;  %508 = vmatprep.mubr.f32.mxu1 %v6819_v0 }
  0xae   :  { %375 = vmatprep.mubr.f32.mxu0 %v6819_v0  ;;  %606 = vmatpush1.msra.mxu0 %v7067_v22 }
  0xaf   :  { %735 = vmatpush1.msra.mxu1 %v7037_v16  ;;  %607 = vmatprep.subr.mxu0 %v7077_v24 }
  0xb0   :  { %5918 = vmatmul.mubr.msk.f32.gmra.mxu1 %vm262_vm0, %v242_v23  ;;  %736 = vmatprep.subr.mxu1 %v7047_v18 }
  0xb1   :  { %5910 = vmatmul.mubr.msk.f32.gmra.mxu0 %vm262_vm0, %v242_v23  ;;  %514 = vmatprep.mubr.f32.mxu1 %v6819_v0 }
  0xb2   :  { %381 = vmatprep.mubr.f32.mxu0 %v6819_v0  ;;  %608 = vmatpush1.msra.mxu0 %v7082_v25 }
  0xb3   :  { %737 = vmatpush1.msra.mxu1 %v7052_v19  ;;  %609 = vmatprep.subr.mxu0 %v7092_v27 }
  0xb4   :  { %5919 = vmatmul.mubr.msk.f32.gmra.mxu1 %vm262_vm0, %v243_v26  ;;  %738 = vmatprep.subr.mxu1 %v7062_v21 }
  0xb5   :  { %5911 = vmatmul.mubr.msk.f32.gmra.mxu0 %vm262_vm0, %v243_v26  ;;  %520 = vmatprep.mubr.f32.mxu1 %v6819_v0 }
  0xb6   :  { %387 = vmatprep.mubr.f32.mxu0 %v6819_v0  ;;  %610 = vmatpush1.msra.mxu0 %v7097_v28 }
  0xb7   :  { %739 = vmatpush1.msra.mxu1 %v7067_v22  ;;  %611 = vmatprep.subr.mxu0 %v7107_v30 }
  0xb8   :  { %5920 = vmatmul.mubr.msk.f32.gmra.mxu1 %vm262_vm0, %v244_v29  ;;  %740 = vmatprep.subr.mxu1 %v7077_v24 }
  0xb9   :  { %5912 = vmatmul.mubr.msk.f32.gmra.mxu0 %vm262_vm0, %v244_v29  ;;  %526 = vmatprep.mubr.f32.mxu1 %v6819_v0 }
  0xba   :  { %393 = vmatprep.mubr.f32.mxu0 %v6819_v0  ;;  %612 = vmatpush1.msra.mxu0 %v7112_v31 }
  0xbb   :  { %741 = vmatpush1.msra.mxu1 %v7082_v25  ;;  %864 = vmatprep.subr.mxu0 %v7014_v10 }
  0xbc   :  { %5921 = vmatmul.mubr.msk.f32.gmra.mxu1 %vm262_vm0, %v245_v32  ;;  %742 = vmatprep.subr.mxu1 %v7092_v27 }
  0xbd   :  { %5913 = vmatmul.mubr.msk.f32.gmra.mxu0 %vm262_vm0, %v245_v32  ;;  %743 = vmatpush1.msra.mxu1 %v7097_v28 }
  0xbe   :  { %645 = vmatprep.mubr.f32.mxu0 %v6819_v0  ;;  %778 = vmatprep.mubr.f32.mxu1 %v6819_v0 }
  0xbf   :  { %744 = vmatprep.subr.mxu1 %v7107_v30 }
  0xc0   :  { %745 = vmatpush1.msra.mxu1 %v7112_v31 }
  0xc1   :  { %646 = vmatmul.mubr.f32.vlgmr.msra.gmra.mxu0 %v6819_v0  ;;  %998 = vmatprep.subr.mxu1 %v7014_v10 }
  0xc2   :  { %865 = vmatpush1.msra.mxu0 %v7016_v11  ;;  %912 = vmatprep.mubr.f32.mxu0 %v6819_v0 }
  0xc3   :  { %866 = vmatprep.subr.mxu0 %v7020_v12 }
  0xc4   :  { %867 = vmatpush1.msra.mxu0 %v7029_v14 }
  0xc5   :  { %868 = vmatprep.subr.mxu0 %v7032_v15 }
  0xc6   :  { %869 = vmatpush1.msra.mxu0 %v7037_v16 }
  0xc7   :  { %870 = vmatprep.subr.mxu0 %v7047_v18 }
  0xc8   :  { %871 = vmatpush1.msra.mxu0 %v7052_v19 }
  0xc9   :  { %872 = vmatprep.subr.mxu0 %v7062_v21 }
  0xca   :  { %873 = vmatpush1.msra.mxu0 %v7067_v22 }
  0xcb   :  { %874 = vmatprep.subr.mxu0 %v7077_v24 }
  0xcc   :  { %875 = vmatpush1.msra.mxu0 %v7082_v25 }
  0xcd   :  { %876 = vmatprep.subr.mxu0 %v7092_v27 }
  0xce   :  { %877 = vmatpush1.msra.mxu0 %v7097_v28 }
  0xcf   :  { %878 = vmatprep.subr.mxu0 %v7107_v30 }
  0xd0   :  { %879 = vmatpush1.msra.mxu0 %v7112_v31 }
  0xd1   :  { %1130 = vmatprep.subr.mxu0 %v7014_v10 }
 0x15f   :  { %v7157_v38 = vpop.f32.mrf.mxu1 }
 0x161   :  { %v353_v37 = vpop.f32.mrf.mxu0  ;;  %v7161_v41 = vpop.f32.mrf.mxu1 }
 0x163   :  { %v355_v40 = vpop.f32.mrf.mxu0  ;;  %v492_v44 = vpop.f32.mrf.mxu1 }
 0x165   :  { %v359_v43 = vpop.f32.mrf.mxu0  ;;  %v494_v48 = vpop.f32.mrf.mxu1 }
 0x166   :  { %v360_v46 = vadd.f32 %v359_v43, %v255_v42 }
 0x167   :  { %v361_v47 = vpop.f32.mrf.mxu0 }
 0x168   :  { %v362_v49 = vadd.f32 %v361_v47, %v259_v45  ;;  %v498_v51 = vpop.f32.mrf.mxu1 }
 0x169   :  { %v365_v50 = vpop.f32.mrf.mxu0 }
 0x16a   :  { %v366_v52 = vadd.f32 %v365_v50, %v255_v42  ;;  %v500_v54 = vpop.f32.mrf.mxu1 }
 0x16b   :  { %v367_v53 = vpop.f32.mrf.mxu0 }
 0x16c   :  { %v368_v55 = vadd.f32 %v367_v53, %v259_v45  ;;  %v504_v57 = vpop.f32.mrf.mxu1 }
 0x16d   :  { %v371_v56 = vpop.f32.mrf.mxu0 }
 0x16e   :  { %v372_v58 = vadd.f32 %v371_v56, %v255_v42  ;;  %v506_v60 = vpop.f32.mrf.mxu1 }
 0x16f   :  { %v373_v59 = vpop.f32.mrf.mxu0 }
 0x170   :  { %v374_v61 = vadd.f32 %v373_v59, %v259_v45  ;;  %v510_v63 = vpop.f32.mrf.mxu1 }
 0x171   :  { %v377_v62 = vpop.f32.mrf.mxu0  ;;  %v7165_v2 = vadd.f32 %v510_v63, %v372_v58 }
 0x172   :  { %v378_v1 = vadd.f32 %v377_v62, %v255_v42  ;;  %v512_v4 = vpop.f32.mrf.mxu1 }
 0x173   :  { %v379_v3 = vpop.f32.mrf.mxu0  ;;  %v7167_v6 = vadd.f32 %v512_v4, %v374_v61 }
 0x174   :  { %v380_v5 = vadd.f32 %v379_v3, %v259_v45  ;;  %v7169_v7 = vadd.f32 %v504_v57, %v378_v1  ;;  %v516_v9 = vpop.f32.mrf.mxu1  ;;  %v356_v3 = vadd.f32 %v355_v40, %v259_v45 }
 0x175   :  { %v383_v8 = vpop.f32.mrf.mxu0  ;;  %v7171_v17 = vadd.f32 %v516_v9, %v366_v52 }
 0x176   :  { %v384_v13 = vadd.f32 %v383_v8, %v255_v42  ;;  %v7173_v20 = vadd.f32 %v506_v60, %v380_v5  ;;  %v518_v26 = vpop.f32.mrf.mxu1 }
 0x177   :  { %v385_v23 = vpop.f32.mrf.mxu0  ;;  %v7175_v32 = vadd.f32 %v518_v26, %v368_v55  ;;  %v354_v55 = vadd.f32 %v353_v37, %v255_v42 }
 0x178   :  { %v386_v29 = vadd.f32 %v385_v23, %v259_v45  ;;  %v7177_v34 = vadd.f32 %v498_v51, %v384_v13  ;;  %v522_v43 = vpop.f32.mrf.mxu1 }
 0x179   :  { %v389_v36 = vpop.f32.mrf.mxu0  ;;  %v7179_v50 = vadd.f32 %v522_v43, %v360_v46 }
 0x17a   :  { %v390_v47 = vadd.f32 %v389_v36, %v255_v42  ;;  %v7181_v53 = vadd.f32 %v500_v54, %v386_v29  ;;  %v524_v57 = vpop.f32.mrf.mxu1 }
 0x17b   :  { %v391_v56 = vpop.f32.mrf.mxu0  ;;  %v7183_v58 = vadd.f32 %v524_v57, %v362_v49 }
 0x17c   :  { %v392_v52 = vadd.f32 %v391_v56, %v259_v45  ;;  %v7185_v59 = vadd.f32 %v492_v44, %v390_v47  ;;  %v528_v61 = vpop.f32.mrf.mxu1 }
 0x17d   :  { %v395_v60 = vpop.f32.mrf.mxu0  ;;  %v559_v46 = vadd.f32 %v528_v61, %v354_v55 }
 0x17e   :  { %v396_v62 = vadd.f32 %v395_v60, %v255_v42  ;;  %v7187_v51 = vadd.f32 %v494_v48, %v392_v52  ;;  %v530_v1 = vpop.f32.mrf.mxu1 }
 0x17f   :  { %v397_v63 = vpop.f32.mrf.mxu0  ;;  %v560_v8 = vadd.f32 %v530_v1, %v356_v3 }
 0x180   :  { %v398_v4 = vadd.f32 %v397_v63, %v259_v45  ;;  %v7190_v54 = vadd.f32 %v7157_v38, %v396_v62  ;;  %v230_v38 = vand.u32 127, %v229_v33 }
 0x181   :  { %v647_v5 = vpop.f32.mrf.mxu0 }
 0x182   :  { %v652_v49 = vadd.f32 %v647_v5, %v559_v46  ;;  %v7193_v44 = vadd.f32 %v7161_v41, %v398_v4  ;;  %v7196_v45 = vadd.s32 128, %v230_v38 }
 0x183   :  { %v649_v9 = vpop.f32.mrf.mxu0 }
 0x184   :  { %v5922_v13 = vmul.f32 -1.442695, %v652_v49  ;;  %v653_v37 = vadd.f32 %v649_v9, %v560_v8  ;;  %vm235_vm1 = vcmp.lt.s32.totalorder %v7196_v45, 192  ;;  %v5704_v45 = vld [vmem:[%s8524_s17 + $0x20] sm:$0xff] }
 0x186   :  { %6143 = vpow2.f32 %v5922_v13  ;;  %v5923_v42 = vmul.f32 -1.442695, %v653_v37 }
 0x188   :  { %6145 = vpow2.f32 %v5923_v42 }
 0x189   :  { %6147 = vtanh.f32 %v653_v37 }
 0x193   :  { %v6144_v48 = vpop.eup %6143 }
 0x194   :  { %v662_v40 = vadd.f32 1.0, %v6144_v48 }
 0x195   :  { %v6146_v23 = vpop.eup %6145 }
 0x196   :  { %v663_v26 = vadd.f32 1.0, %v6146_v23  ;;  %v6148_v41 = vpop.eup %6147 }
 0x198   :  { %6149 = vrcp.f32 %v663_v26 }
 0x199   :  { %6151 = vrcp.f32 %v662_v40 }
 0x1a5   :  { %v6150_v29 = vpop.eup %6149 }
 0x1a6   :  { %v6152_v36 = vpop.eup %6151  ;;  %v669_v43 = vsel %vm235_vm1, %v6148_v41, %v6150_v29 }
 0x1a7   :  { %v671_v47 = vmul.f32 %v6152_v36, %v669_v43  ;;  %v670_v56 = vmul.f32 0.0, %v6152_v36 }
 0x1a9   :  { %673 = vrot.lane.b32.xlu0 %v671_v47, %s6820_s0 }
 0x21b   :  { %v674_v57 = vpop.permute.xlu0 %673 }
 0x21c   :  { %v676_v52 = vadd.f32 %v674_v57, %v670_v56 }
 0x21e   :  { %6153 = vtanh.f32 %v676_v52 }
 0x22b   :  { %v6154_v60 = vpop.eup %6153 }
 0x22c   :  { %v678_v33 = vmul.f32 %v6154_v60, %v669_v43 }
 0x22e   :  { %680 = vrot.lane.b32.xlu0 %v678_v33, %s6820_s0 }
 0x2a0   :  { %v681_v61 = vpop.permute.xlu0 %680 }
 0x2a1   :  { %683 = vst.msk [vmem:[#allocation4] sm:$0xff] %vm577_vm2, %v681_v61  ;;  %5924 = vmatmul.mubr.msk.f32.vlgmr.msra.gmra.mxu1 %vm577_vm2, %v681_v61 }
 0x2a2   :  { %999 = vmatpush1.msra.mxu1 %v7016_v11  ;;  %1046 = vmatprep.mubr.f32.mxu1 %v6819_v0 }
 0x2a3   :  { %1000 = vmatprep.subr.mxu1 %v7020_v12 }
 0x2a4   :  { %1001 = vmatpush1.msra.mxu1 %v7029_v14 }
 0x2a5   :  { %1002 = vmatprep.subr.mxu1 %v7032_v15 }
 0x2a6   :  { %1003 = vmatpush1.msra.mxu1 %v7037_v16 }
 0x2a7   :  { %1004 = vmatprep.subr.mxu1 %v7047_v18 }
 0x2a8   :  { %1005 = vmatpush1.msra.mxu1 %v7052_v19 }
 0x2a9   :  { %1006 = vmatprep.subr.mxu1 %v7062_v21 }
 0x2aa   :  { %1007 = vmatpush1.msra.mxu1 %v7067_v22 }
 0x2ab   :  { %1008 = vmatprep.subr.mxu1 %v7077_v24 }
 0x2ac   :  { %1009 = vmatpush1.msra.mxu1 %v7082_v25 }
 0x2ad   :  { %1010 = vmatprep.subr.mxu1 %v7092_v27 }
 0x2ae   :  { %1011 = vmatpush1.msra.mxu1 %v7097_v28 }
 0x2af   :  { %1012 = vmatprep.subr.mxu1 %v7107_v30 }
 0x2b0   :  { %1013 = vmatpush1.msra.mxu1 %v7112_v31 }
 0x2b1   :  { %1262 = vmatprep.subr.mxu1 %v7014_v10 }
 0x361   :  { %v780_v55 = vpop.f32.mrf.mxu1 }
 0x362   :  { %v785_v62 = vadd.f32 %v780_v55, %v7179_v50 }
 0x363   :  { %v782_v63 = vpop.f32.mrf.mxu1 }
 0x364   :  { %v5925_v1 = vmul.f32 -1.442695, %v785_v62  ;;  %v786_v3 = vadd.f32 %v782_v63, %v7183_v58 }
 0x366   :  { %6155 = vpow2.f32 %v5925_v1  ;;  %v5926_v46 = vmul.f32 -1.442695, %v786_v3 }
 0x368   :  { %6157 = vpow2.f32 %v5926_v46 }
 0x369   :  { %6159 = vtanh.f32 %v786_v3 }
 0x373   :  { %v6156_v4 = vpop.eup %6155 }
 0x374   :  { %v795_v8 = vadd.f32 1.0, %v6156_v4 }
 0x375   :  { %v6158_v5 = vpop.eup %6157 }
 0x376   :  { %v796_v49 = vadd.f32 1.0, %v6158_v5  ;;  %v6160_v9 = vpop.eup %6159 }
 0x378   :  { %6161 = vrcp.f32 %v796_v49 }
 0x379   :  { %6163 = vrcp.f32 %v795_v8 }
 0x385   :  { %v6162_v13 = vpop.eup %6161 }
 0x386   :  { %v6164_v37 = vpop.eup %6163  ;;  %v802_v50 = vsel %vm235_vm1, %v6160_v9, %v6162_v13 }
 0x387   :  { %v804_v42 = vmul.f32 %v6164_v37, %v802_v50  ;;  %v803_v58 = vmul.f32 %v6164_v37, %v676_v52 }
 0x389   :  { %806 = vrot.lane.b32.xlu1 %v804_v42, %s6820_s0 }
 0x3fb   :  { %v807_v48 = vpop.permute.xlu1 %806 }
 0x3fc   :  { %v809_v23 = vadd.f32 %v807_v48, %v803_v58 }
 0x3fe   :  { %6165 = vtanh.f32 %v809_v23 }
 0x40b   :  { %v6166_v40 = vpop.eup %6165 }
 0x40c   :  { %v811_v26 = vmul.f32 %v6166_v40, %v802_v50 }
 0x40e   :  { %813 = vrot.lane.b32.xlu1 %v811_v26, %s6820_s0 }
 0x480   :  { %v814_v38 = vpop.permute.xlu1 %813 }
 0x481   :  { %817 = vst.msk [vmem:[#allocation4 + $0x8] sm:$0xff] %vm577_vm2, %v814_v38  ;;  %5927 = vmatmul.mubr.msk.f32.vlgmr.msra.gmra.mxu0 %vm577_vm2, %v814_v38 }
 0x482   :  { %1131 = vmatpush1.msra.mxu0 %v7016_v11  ;;  %1178 = vmatprep.mubr.f32.mxu0 %v6819_v0 }
 0x483   :  { %1132 = vmatprep.subr.mxu0 %v7020_v12 }
 0x484   :  { %1133 = vmatpush1.msra.mxu0 %v7029_v14 }
 0x485   :  { %1134 = vmatprep.subr.mxu0 %v7032_v15 }
 0x486   :  { %1135 = vmatpush1.msra.mxu0 %v7037_v16 }
 0x487   :  { %1136 = vmatprep.subr.mxu0 %v7047_v18 }
 0x488   :  { %1137 = vmatpush1.msra.mxu0 %v7052_v19 }
 0x489   :  { %1138 = vmatprep.subr.mxu0 %v7062_v21 }
 0x48a   :  { %1139 = vmatpush1.msra.mxu0 %v7067_v22 }
 0x48b   :  { %1140 = vmatprep.subr.mxu0 %v7077_v24 }
 0x48c   :  { %1141 = vmatpush1.msra.mxu0 %v7082_v25 }
 0x48d   :  { %1142 = vmatprep.subr.mxu0 %v7092_v27 }
 0x48e   :  { %1143 = vmatpush1.msra.mxu0 %v7097_v28 }
 0x48f   :  { %1144 = vmatprep.subr.mxu0 %v7107_v30 }
 0x490   :  { %1145 = vmatpush1.msra.mxu0 %v7112_v31 }
 0x491   :  { %1394 = vmatprep.subr.mxu0 %v7014_v10 }
 0x541   :  { %v914_v41 = vpop.f32.mrf.mxu0 }
 0x542   :  { %v919_v29 = vadd.f32 %v914_v41, %v7171_v17 }
 0x543   :  { %v916_v36 = vpop.f32.mrf.mxu0 }
 0x544   :  { %v5928_v43 = vmul.f32 -1.442695, %v919_v29  ;;  %v920_v47 = vadd.f32 %v916_v36, %v7175_v32 }
 0x546   :  { %6167 = vpow2.f32 %v5928_v43  ;;  %v5929_v56 = vmul.f32 -1.442695, %v920_v47 }
 0x548   :  { %6169 = vpow2.f32 %v5929_v56 }
 0x549   :  { %6171 = vtanh.f32 %v920_v47 }
 0x553   :  { %v6168_v57 = vpop.eup %6167 }
 0x554   :  { %v929_v60 = vadd.f32 1.0, %v6168_v57 }
 0x555   :  { %v6170_v52 = vpop.eup %6169 }
 0x556   :  { %v930_v33 = vadd.f32 1.0, %v6170_v52  ;;  %v6172_v61 = vpop.eup %6171 }
 0x558   :  { %6173 = vrcp.f32 %v930_v33 }
 0x559   :  { %6175 = vrcp.f32 %v929_v60 }
 0x565   :  { %v6174_v55 = vpop.eup %6173 }
 0x566   :  { %v6176_v10 = vpop.eup %6175  ;;  %v936_v17 = vsel %vm235_vm1, %v6172_v61, %v6174_v55 }
 0x567   :  { %v938_v62 = vmul.f32 %v6176_v10, %v936_v17  ;;  %v937_v32 = vmul.f32 %v6176_v10, %v809_v23 }
 0x569   :  { %940 = vrot.lane.b32.xlu0 %v938_v62, %s6820_s0 }
 0x5db   :  { %v941_v63 = vpop.permute.xlu0 %940 }
 0x5dc   :  { %v943_v1 = vadd.f32 %v941_v63, %v937_v32 }
 0x5de   :  { %6177 = vtanh.f32 %v943_v1 }
 0x5eb   :  { %v6178_v3 = vpop.eup %6177 }
 0x5ec   :  { %v945_v46 = vmul.f32 %v6178_v3, %v936_v17 }
 0x5ee   :  { %947 = vrot.lane.b32.xlu1 %v945_v46, %s6820_s0 }
 0x660   :  { %v948_v4 = vpop.permute.xlu1 %947 }
 0x661   :  { %951 = vst.msk [vmem:[#allocation4 + $0x10] sm:$0xff] %vm577_vm2, %v948_v4  ;;  %5930 = vmatmul.mubr.msk.f32.vlgmr.msra.gmra.mxu1 %vm577_vm2, %v948_v4 }
 0x662   :  { %1263 = vmatpush1.msra.mxu1 %v7016_v11  ;;  %1310 = vmatprep.mubr.f32.mxu1 %v6819_v0 }
 0x663   :  { %1264 = vmatprep.subr.mxu1 %v7020_v12 }
 0x664   :  { %1265 = vmatpush1.msra.mxu1 %v7029_v14 }
 0x665   :  { %1266 = vmatprep.subr.mxu1 %v7032_v15 }
 0x666   :  { %1267 = vmatpush1.msra.mxu1 %v7037_v16 }
 0x667   :  { %1268 = vmatprep.subr.mxu1 %v7047_v18 }
 0x668   :  { %1269 = vmatpush1.msra.mxu1 %v7052_v19 }
 0x669   :  { %1270 = vmatprep.subr.mxu1 %v7062_v21 }
 0x66a   :  { %1271 = vmatpush1.msra.mxu1 %v7067_v22 }
 0x66b   :  { %1272 = vmatprep.subr.mxu1 %v7077_v24 }
 0x66c   :  { %1273 = vmatpush1.msra.mxu1 %v7082_v25 }
 0x66d   :  { %1274 = vmatprep.subr.mxu1 %v7092_v27 }
 0x66e   :  { %1275 = vmatpush1.msra.mxu1 %v7097_v28 }
 0x66f   :  { %1276 = vmatprep.subr.mxu1 %v7107_v30 }
 0x670   :  { %1277 = vmatpush1.msra.mxu1 %v7112_v31 }
 0x721   :  { %v1048_v5 = vpop.f32.mrf.mxu1 }
 0x722   :  { %v1053_v8 = vadd.f32 %v1048_v5, %v7165_v2 }
 0x723   :  { %v1050_v49 = vpop.f32.mrf.mxu1 }
 0x724   :  { %v5931_v9 = vmul.f32 -1.442695, %v1053_v8  ;;  %v1054_v13 = vadd.f32 %v1050_v49, %v7167_v6 }
 0x726   :  { %6179 = vpow2.f32 %v5931_v9  ;;  %v5932_v37 = vmul.f32 -1.442695, %v1054_v13 }
 0x728   :  { %6181 = vpow2.f32 %v5932_v37 }
 0x729   :  { %6183 = vtanh.f32 %v1054_v13 }
 0x733   :  { %v6180_v50 = vpop.eup %6179 }
 0x734   :  { %v1063_v58 = vadd.f32 1.0, %v6180_v50 }
 0x735   :  { %v6182_v42 = vpop.eup %6181 }
 0x736   :  { %v1064_v48 = vadd.f32 1.0, %v6182_v42  ;;  %v6184_v23 = vpop.eup %6183  ;;  %v1643_v42 = vld [vmem:[#allocation12 + $0x70] sm:$0xff] }
 0x738   :  { %6185 = vrcp.f32 %v1064_v48  ;;  %v1642_v48 = vld [vmem:[#allocation12 + $0x68] sm:$0xff] }
 0x739   :  { %6187 = vrcp.f32 %v1063_v58 }
 0x745   :  { %v6186_v40 = vpop.eup %6185 }
 0x746   :  { %v6188_v26 = vpop.eup %6187  ;;  %v1070_v2 = vsel %vm235_vm1, %v6184_v23, %v6186_v40  ;;  %v1641_v23 = vld [vmem:[#allocation12 + $0x60] sm:$0xff]  ;;  %v1640_v40 = vld [vmem:[#allocation12 + $0x58] sm:$0xff] }
 0x747   :  { %v1072_v38 = vmul.f32 %v6188_v26, %v1070_v2  ;;  %v1071_v6 = vmul.f32 %v6188_v26, %v943_v1  ;;  %v1639_v26 = vld [vmem:[#allocation12 + $0x50] sm:$0xff] }
 0x749   :  { %1074 = vrot.lane.b32.xlu0 %v1072_v38, %s6820_s0  ;;  %v1637_v38 = vld [vmem:[#allocation12 + $0x40] sm:$0xff] }
 0x7bb   :  { %v1075_v41 = vpop.permute.xlu0 %1074 }
 0x7bc   :  { %v1077_v29 = vadd.f32 %v1075_v41, %v1071_v6  ;;  %v1636_v6 = vld [vmem:[#allocation12 + $0x38] sm:$0xff]  ;;  %v1635_v41 = vld [vmem:[#allocation12 + $0x30] sm:$0xff] }
 0x7be   :  { %6189 = vtanh.f32 %v1077_v29 }
 0x7cb   :  { %v6190_v36 = vpop.eup %6189 }
 0x7cc   :  { %v1079_v43 = vmul.f32 %v6190_v36, %v1070_v2  ;;  %v1638_v2 = vld [vmem:[#allocation12 + $0x48] sm:$0xff]  ;;  %v1633_v36 = vld [vmem:[#allocation12 + $0x20] sm:$0xff] }
 0x7ce   :  { %1081 = vrot.lane.b32.xlu1 %v1079_v43, %s6820_s0  ;;  %v1632_v43 = vld [vmem:[#allocation12 + $0x18] sm:$0xff] }
 0x840   :  { %v1082_v47 = vpop.permute.xlu1 %1081 }
 0x841   :  { %1085 = vst.msk [vmem:[#allocation4 + $0x18] sm:$0xff] %vm577_vm2, %v1082_v47  ;;  %5933 = vmatmul.mubr.msk.f32.vlgmr.msra.gmra.mxu0 %vm577_vm2, %v1082_v47  ;;  %v1631_v47 = vld [vmem:[#allocation12 + $0x10] sm:$0xff] }
 0x842   :  { %1395 = vmatpush1.msra.mxu0 %v7016_v11  ;;  %1442 = vmatprep.mubr.f32.mxu0 %v6819_v0 }
 0x843   :  { %1396 = vmatprep.subr.mxu0 %v7020_v12 }
 0x844   :  { %1397 = vmatpush1.msra.mxu0 %v7029_v14 }
 0x845   :  { %1398 = vmatprep.subr.mxu0 %v7032_v15 }
 0x846   :  { %1399 = vmatpush1.msra.mxu0 %v7037_v16 }
 0x847   :  { %1400 = vmatprep.subr.mxu0 %v7047_v18 }
 0x848   :  { %1401 = vmatpush1.msra.mxu0 %v7052_v19 }
 0x849   :  { %1402 = vmatprep.subr.mxu0 %v7062_v21 }
 0x84a   :  { %1403 = vmatpush1.msra.mxu0 %v7067_v22 }
 0x84b   :  { %1404 = vmatprep.subr.mxu0 %v7077_v24 }
 0x84c   :  { %1405 = vmatpush1.msra.mxu0 %v7082_v25 }
 0x84d   :  { %1406 = vmatprep.subr.mxu0 %v7092_v27 }
 0x84e   :  { %1407 = vmatpush1.msra.mxu0 %v7097_v28 }
 0x84f   :  { %1408 = vmatprep.subr.mxu0 %v7107_v30 }
 0x850   :  { %1409 = vmatpush1.msra.mxu0 %v7112_v31 }
 0x901   :  { %v1180_v11 = vpop.f32.mrf.mxu0 }
 0x902   :  { %v1185_v12 = vadd.f32 %v1180_v11, %v7169_v7  ;;  %v1630_v11 = vld [vmem:[#allocation12 + $0x8] sm:$0xff] }
 0x903   :  { %v1182_v14 = vpop.f32.mrf.mxu0 }
 0x904   :  { %v5934_v15 = vmul.f32 -1.442695, %v1185_v12  ;;  %v1186_v16 = vadd.f32 %v1182_v14, %v7173_v20  ;;  %v1629_v12 = vld [vmem:[#allocation12] sm:$0xff] }
 0x905   :  { %v7316_v14 = vld [vmem:[#allocation4] sm:$0xff] }
 0x906   :  { %6191 = vpow2.f32 %v5934_v15  ;;  %v5935_v18 = vmul.f32 -1.442695, %v1186_v16  ;;  %v7321_v15 = vld [vmem:[#allocation4 + $0x8] sm:$0xff] }
 0x908   :  { %6193 = vpow2.f32 %v5935_v18  ;;  %v7331_v18 = vld [vmem:[#allocation4 + $0x18] sm:$0xff] }
 0x909   :  { %6195 = vtanh.f32 %v1186_v16  ;;  %v7326_v16 = vld [vmem:[#allocation4 + $0x10] sm:$0xff] }
 0x913   :  { %v6192_v19 = vpop.eup %6191 }
 0x914   :  { %v1195_v22 = vadd.f32 1.0, %v6192_v19 }
 0x915   :  { %v6194_v21 = vpop.eup %6193 }
 0x916   :  { %v1196_v24 = vadd.f32 1.0, %v6194_v21  ;;  %v6196_v25 = vpop.eup %6195 }
 0x918   :  { %6197 = vrcp.f32 %v1196_v24 }
 0x919   :  { %6199 = vrcp.f32 %v1195_v22 }
 0x925   :  { %v6198_v27 = vpop.eup %6197 }
 0x926   :  { %v6200_v28 = vpop.eup %6199  ;;  %v1202_v30 = vsel %vm235_vm1, %v6196_v25, %v6198_v27 }
 0x927   :  { %v1204_v31 = vmul.f32 %v6200_v28, %v1202_v30  ;;  %v1203_v7 = vmul.f32 %v6200_v28, %v1077_v29  ;;  %v1634_v29 = vld [vmem:[#allocation12 + $0x28] sm:$0xff] }
 0x929   :  { %1206 = vrot.lane.b32.xlu0 %v1204_v31, %s6820_s0 }
 0x99b   :  { %v1207_v20 = vpop.permute.xlu0 %1206 }
 0x99c   :  { %v1209_v56 = vadd.f32 %v1207_v20, %v1203_v7 }
 0x99e   :  { %6201 = vtanh.f32 %v1209_v56 }
 0x9ab   :  { %v6202_v57 = vpop.eup %6201 }
 0x9ac   :  { %v1211_v52 = vmul.f32 %v6202_v57, %v1202_v30 }
 0x9ae   :  { %1213 = vrot.lane.b32.xlu1 %v1211_v52, %s6820_s0 }
 0xa20   :  { %v1214_v60 = vpop.permute.xlu1 %1213 }
 0xa21   :  { %1217 = vst.msk [vmem:[#allocation4 + $0x20] sm:$0xff] %vm577_vm2, %v1214_v60  ;;  %5936 = vmatmul.mubr.msk.f32.vlgmr.msra.gmra.mxu1 %vm577_vm2, %v1214_v60 }
 0xa22   :  { %1574 = vmatprep.mubr.f32.mxu1 %v6819_v0 }
 0xa28   :  { %v7336_v19 = vld [vmem:[#allocation4 + $0x20] sm:$0xff] }
 0xae1   :  { %v1312_v33 = vpop.f32.mrf.mxu1 }
 0xae2   :  { %v1317_v61 = vadd.f32 %v1312_v33, %v7177_v34 }
 0xae3   :  { %v1314_v55 = vpop.f32.mrf.mxu1 }
 0xae4   :  { %v5937_v10 = vmul.f32 -1.442695, %v1317_v61  ;;  %v1318_v17 = vadd.f32 %v1314_v55, %v7181_v53  ;;  %v1644_v53 = vld [vmem:[#allocation12 + $0x78] sm:$0xff]  ;;  %v1506_v61 = vld [vmem:[#allocation10 + $0x70] sm:$0xff]  ;;  %v1505_v55 = vld [vmem:[#allocation10 + $0x68] sm:$0xff] }
 0xae5   :  { %1697 = vmatprep.subr.mxu0 %v1644_v53  ;;  %v1492_v53 = vld [vmem:[#allocation10] sm:$0xff] }
 0xae6   :  { %6203 = vpow2.f32 %v5937_v10  ;;  %v5938_v62 = vmul.f32 -1.442695, %v1318_v17  ;;  %v1504_v10 = vld [vmem:[#allocation10 + $0x60] sm:$0xff] }
 0xae8   :  { %6205 = vpow2.f32 %v5938_v62  ;;  %v1502_v62 = vld [vmem:[#allocation10 + $0x50] sm:$0xff] }
 0xae9   :  { %6207 = vtanh.f32 %v1318_v17  ;;  %v1503_v17 = vld [vmem:[#allocation10 + $0x58] sm:$0xff] }
 0xaf3   :  { %v6204_v32 = vpop.eup %6203 }
 0xaf4   :  { %v1327_v1 = vadd.f32 1.0, %v6204_v32  ;;  %v1501_v32 = vld [vmem:[#allocation10 + $0x48] sm:$0xff] }
 0xaf5   :  { %v6206_v63 = vpop.eup %6205 }
 0xaf6   :  { %v1328_v3 = vadd.f32 1.0, %v6206_v63  ;;  %v6208_v46 = vpop.eup %6207  ;;  %v1500_v63 = vld [vmem:[#allocation10 + $0x40] sm:$0xff] }
 0xaf8   :  { %6209 = vrcp.f32 %v1328_v3  ;;  %v1498_v3 = vld [vmem:[#allocation10 + $0x30] sm:$0xff] }
 0xaf9   :  { %6211 = vrcp.f32 %v1327_v1  ;;  %v1499_v1 = vld [vmem:[#allocation10 + $0x38] sm:$0xff] }
 0xb05   :  { %v6210_v4 = vpop.eup %6209 }
 0xb06   :  { %v6212_v5 = vpop.eup %6211  ;;  %v1334_v34 = vsel %vm235_vm1, %v6208_v46, %v6210_v4  ;;  %v1497_v46 = vld [vmem:[#allocation10 + $0x28] sm:$0xff]  ;;  %v1496_v4 = vld [vmem:[#allocation10 + $0x20] sm:$0xff] }
 0xb07   :  { %v1336_v8 = vmul.f32 %v6212_v5, %v1334_v34  ;;  %v1335_v49 = vmul.f32 %v6212_v5, %v1209_v56  ;;  %v1495_v5 = vld [vmem:[#allocation10 + $0x18] sm:$0xff] }
 0xb09   :  { %1338 = vrot.lane.b32.xlu0 %v1336_v8, %s6820_s0  ;;  %v1493_v8 = vld [vmem:[#allocation10 + $0x8] sm:$0xff] }
 0xb7b   :  { %v1339_v9 = vpop.permute.xlu0 %1338 }
 0xb7c   :  { %v7309_v13 = vadd.f32 %v1339_v9, %v1335_v49  ;;  %v1825_v49 = vld [vmem:[#allocation13 + $0x78] sm:$0xff] }
 0xb7e   :  { %6213 = vtanh.f32 %v7309_v13 }
 0xb8b   :  { %v6214_v37 = vpop.eup %6213 }
 0xb8c   :  { %v1343_v50 = vmul.f32 %v6214_v37, %v1334_v34  ;;  %v1494_v34 = vld [vmem:[#allocation10 + $0x10] sm:$0xff] }
 0xb8e   :  { %1345 = vrot.lane.b32.xlu1 %v1343_v50, %s6820_s0 }
 0xc00   :  { %v1346_v58 = vpop.permute.xlu1 %1345 }
 0xc01   :  { %1349 = vst.msk [vmem:[#allocation4 + $0x28] sm:$0xff] %vm577_vm2, %v1346_v58  ;;  %5939 = vmatmul.mubr.msk.f32.vlgmr.msra.gmra.mxu0 %vm577_vm2, %v1346_v58 }
 0xc02   :  { %1698 = vmatpush1.msra.mxu0 %v1643_v42  ;;  %1745 = vmatprep.mubr.f32.mxu0 %v6819_v0 }
 0xc03   :  { %1699 = vmatprep.subr.mxu0 %v1642_v48  ;;  %v1824_v48 = vld [vmem:[#allocation13 + $0x70] sm:$0xff] }
 0xc04   :  { %1700 = vmatpush1.msra.mxu0 %v1641_v23 }
 0xc05   :  { %1701 = vmatprep.subr.mxu0 %v1640_v40  ;;  %v1823_v40 = vld [vmem:[#allocation13 + $0x68] sm:$0xff] }
 0xc06   :  { %1702 = vmatpush1.msra.mxu0 %v1639_v26  ;;  %v1822_v26 = vld [vmem:[#allocation13 + $0x60] sm:$0xff] }
 0xc07   :  { %1703 = vmatprep.subr.mxu0 %v1638_v2  ;;  %v1821_v2 = vld [vmem:[#allocation13 + $0x58] sm:$0xff] }
 0xc08   :  { %1704 = vmatpush1.msra.mxu0 %v1637_v38  ;;  %v7341_v21 = vld [vmem:[#allocation4 + $0x28] sm:$0xff] }
 0xc09   :  { %1705 = vmatprep.subr.mxu0 %v1636_v6  ;;  %v1819_v38 = vld [vmem:[#allocation13 + $0x48] sm:$0xff]  ;;  %v1818_v6 = vld [vmem:[#allocation13 + $0x40] sm:$0xff] }
 0xc0a   :  { %1706 = vmatpush1.msra.mxu0 %v1635_v41  ;;  %v1817_v41 = vld [vmem:[#allocation13 + $0x38] sm:$0xff] }
 0xc0b   :  { %1707 = vmatprep.subr.mxu0 %v1634_v29  ;;  %v1816_v29 = vld [vmem:[#allocation13 + $0x30] sm:$0xff] }
 0xc0c   :  { %1708 = vmatpush1.msra.mxu0 %v1633_v36 }
 0xc0d   :  { %1709 = vmatprep.subr.mxu0 %v1632_v43  ;;  %v1815_v43 = vld [vmem:[#allocation13 + $0x28] sm:$0xff] }
 0xc0e   :  { %1710 = vmatpush1.msra.mxu0 %v1631_v47  ;;  %v1814_v47 = vld [vmem:[#allocation13 + $0x20] sm:$0xff] }
 0xc0f   :  { %1711 = vmatprep.subr.mxu0 %v1630_v11  ;;  %v1813_v11 = vld [vmem:[#allocation13 + $0x18] sm:$0xff] }
 0xc10   :  { %1712 = vmatpush1.msra.mxu0 %v1629_v12  ;;  %v1812_v12 = vld [vmem:[#allocation13 + $0x10] sm:$0xff] }
 0xc11   :  { %5945 = vmatmul.mubr.msk.f32.vlgmr.msra.gmra.mxu0 %vm577_vm2, %v7316_v14 }
 0xc12   :  { %1751 = vmatprep.mubr.f32.mxu0 %v6819_v0 }
 0xc15   :  { %5946 = vmatmul.mubr.msk.f32.gmra.mxu0 %vm577_vm2, %v7321_v15 }
 0xc16   :  { %1757 = vmatprep.mubr.f32.mxu0 %v6819_v0 }
 0xc19   :  { %5947 = vmatmul.mubr.msk.f32.gmra.mxu0 %vm577_vm2, %v7326_v16 }
 0xc1a   :  { %1763 = vmatprep.mubr.f32.mxu0 %v6819_v0 }
 0xc1d   :  { %5948 = vmatmul.mubr.msk.f32.gmra.mxu0 %vm577_vm2, %v7331_v18 }
 0xc1e   :  { %1769 = vmatprep.mubr.f32.mxu0 %v6819_v0 }
 0xc21   :  { %5949 = vmatmul.mubr.msk.f32.gmra.mxu0 %vm577_vm2, %v7336_v19 }
 0xc22   :  { %1775 = vmatprep.mubr.f32.mxu0 %v6819_v0 }
 0xc25   :  { %5950 = vmatmul.mubr.msk.f32.gmra.mxu0 %vm577_vm2, %v7341_v21 }
 0xc26   :  { %1781 = vmatprep.mubr.f32.mxu0 %v6819_v0 }
 0xcc1   :  { %v1444_v22 = vpop.f32.mrf.mxu0 }
 0xcc2   :  { %v1449_v24 = vadd.f32 %v1444_v22, %v7185_v59  ;;  %v1811_v22 = vld [vmem:[#allocation13 + $0x8] sm:$0xff] }
 0xcc3   :  { %v1446_v25 = vpop.f32.mrf.mxu0 }
 0xcc4   :  { %v5940_v27 = vmul.f32 -1.442695, %v1449_v24  ;;  %v1450_v28 = vadd.f32 %v1446_v25, %v7187_v51  ;;  %v1507_v51 = vld [vmem:[#allocation10 + $0x78] sm:$0xff]  ;;  %v1810_v24 = vld [vmem:[#allocation13] sm:$0xff] }
 0xcc5   :  { %1526 = vmatprep.subr.mxu1 %v1507_v51 }
 0xcc6   :  { %6215 = vpow2.f32 %v5940_v27  ;;  %v5941_v30 = vmul.f32 -1.442695, %v1450_v28  ;;  %1527 = vmatpush1.msra.mxu1 %v1506_v61 }
 0xcc7   :  { %1528 = vmatprep.subr.mxu1 %v1505_v55 }
 0xcc8   :  { %6217 = vpow2.f32 %v5941_v30  ;;  %1529 = vmatpush1.msra.mxu1 %v1504_v10 }
 0xcc9   :  { %6219 = vtanh.f32 %v1450_v28  ;;  %1530 = vmatprep.subr.mxu1 %v1503_v17 }
 0xcca   :  { %1531 = vmatpush1.msra.mxu1 %v1502_v62 }
 0xccb   :  { %1532 = vmatprep.subr.mxu1 %v1501_v32 }
 0xccc   :  { %1533 = vmatpush1.msra.mxu1 %v1500_v63 }
 0xccd   :  { %1534 = vmatprep.subr.mxu1 %v1499_v1 }
 0xcce   :  { %1535 = vmatpush1.msra.mxu1 %v1498_v3 }
 0xccf   :  { %1536 = vmatprep.subr.mxu1 %v1497_v46 }
 0xcd0   :  { %1537 = vmatpush1.msra.mxu1 %v1496_v4 }
 0xcd1   :  { %1538 = vmatprep.subr.mxu1 %v1495_v5 }
 0xcd2   :  { %1539 = vmatpush1.msra.mxu1 %v1494_v34 }
 0xcd3   :  { %v6216_v31 = vpop.eup %6215  ;;  %1540 = vmatprep.subr.mxu1 %v1493_v8 }
 0xcd4   :  { %v1459_v20 = vadd.f32 1.0, %v6216_v31  ;;  %1541 = vmatpush1.msra.mxu1 %v1492_v53 }
 0xcd5   :  { %v6218_v7 = vpop.eup %6217  ;;  %1842 = vmatprep.subr.mxu1 %v1825_v49 }
 0xcd6   :  { %v1460_v56 = vadd.f32 1.0, %v6218_v7  ;;  %v6220_v57 = vpop.eup %6219 }
 0xcd8   :  { %6221 = vrcp.f32 %v1460_v56 }
 0xcd9   :  { %6223 = vrcp.f32 %v1459_v20 }
 0xce5   :  { %v6222_v52 = vpop.eup %6221 }
 0xce6   :  { %v6224_v60 = vpop.eup %6223  ;;  %v1466_v59 = vsel %vm235_vm1, %v6220_v57, %v6222_v52 }
 0xce7   :  { %v1468_v33 = vmul.f32 %v6224_v60, %v1466_v59  ;;  %v1467_v9 = vmul.f32 %v6224_v60, %v7309_v13  ;;  %v1820_v13 = vld [vmem:[#allocation13 + $0x50] sm:$0xff] }
 0xce9   :  { %1470 = vrot.lane.b32.xlu0 %v1468_v33, %s6820_s0 }
 0xd5b   :  { %v1471_v37 = vpop.permute.xlu0 %1470 }
 0xd5c   :  { %v7352_v50 = vadd.f32 %v1471_v37, %v1467_v9 }
 0xd5e   :  { %6225 = vtanh.f32 %v7352_v50 }
 0xd6b   :  { %v6226_v42 = vpop.eup %6225 }
 0xd6c   :  { %v1475_v58 = vmul.f32 %v6226_v42, %v1466_v59  ;;  %v1645_v59 = vld [vmem:[%s8515_s8] sm:$0x3] }
 0xd6d   :  { %v7412_v8 = vrot.slane %v1645_v59, %v7159_v39 }
 0xd6e   :  { %1477 = vrot.lane.b32.xlu1 %v1475_v58, %s6820_s0 }
 0xde0   :  { %v1478_v23 = vpop.permute.xlu1 %1477 }
 0xde1   :  { %1481 = vst.msk [vmem:[#allocation4 + $0x30] sm:$0xff] %vm577_vm2, %v1478_v23  ;;  %5942 = vmatmul.mubr.msk.f32.vlgmr.msra.gmra.mxu1 %vm577_vm2, %v1478_v23 }
 0xde2   :  { %1843 = vmatpush1.msra.mxu1 %v1824_v48  ;;  %1890 = vmatprep.mubr.f32.mxu1 %v6819_v0 }
 0xde3   :  { %1844 = vmatprep.subr.mxu1 %v1823_v40 }
 0xde4   :  { %1845 = vmatpush1.msra.mxu1 %v1822_v26 }
 0xde5   :  { %1846 = vmatprep.subr.mxu1 %v1821_v2 }
 0xde6   :  { %1847 = vmatpush1.msra.mxu1 %v1820_v13 }
 0xde7   :  { %1848 = vmatprep.subr.mxu1 %v1819_v38 }
 0xde8   :  { %1849 = vmatpush1.msra.mxu1 %v1818_v6  ;;  %v1627_v36 = vld [vmem:[#allocation4 + $0x30] sm:$0xff] }
 0xde9   :  { %1850 = vmatprep.subr.mxu1 %v1817_v41  ;;  %5951 = vmatmul.mubr.msk.f32.gmra.mxu0 %vm577_vm2, %v1627_v36 }
 0xdea   :  { %1851 = vmatpush1.msra.mxu1 %v1816_v29  ;;  %1787 = vmatprep.mubr.f32.mxu0 %v6819_v0 }
 0xdeb   :  { %1852 = vmatprep.subr.mxu1 %v1815_v43 }
 0xdec   :  { %1853 = vmatpush1.msra.mxu1 %v1814_v47 }
 0xded   :  { %1854 = vmatprep.subr.mxu1 %v1813_v11 }
 0xdee   :  { %1855 = vmatpush1.msra.mxu1 %v1812_v12 }
 0xdef   :  { %1856 = vmatprep.subr.mxu1 %v1811_v22 }
 0xdf0   :  { %1857 = vmatpush1.msra.mxu1 %v1810_v24 }
 0xdf1   :  { %5953 = vmatmul.mubr.msk.f32.vlgmr.msra.gmra.mxu1 %vm577_vm2, %v7316_v14  ;;  %v7381_v14 = vpop.f32.mrf.mxu0 }
 0xdf2   :  { %1896 = vmatprep.mubr.f32.mxu1 %v6819_v0 }
 0xdf5   :  { %5954 = vmatmul.mubr.msk.f32.gmra.mxu1 %vm577_vm2, %v7321_v15  ;;  %v7383_v15 = vpop.f32.mrf.mxu0 }
 0xdf6   :  { %1902 = vmatprep.mubr.f32.mxu1 %v6819_v0 }
 0xdf9   :  { %5955 = vmatmul.mubr.msk.f32.gmra.mxu1 %vm577_vm2, %v7326_v16  ;;  %v1753_v16 = vpop.f32.mrf.mxu0 }
 0xdfa   :  { %1908 = vmatprep.mubr.f32.mxu1 %v6819_v0 }
 0xdfd   :  { %5956 = vmatmul.mubr.msk.f32.gmra.mxu1 %vm577_vm2, %v7331_v18  ;;  %v7385_v18 = vpop.f32.mrf.mxu0 }
 0xdfe   :  { %1914 = vmatprep.mubr.f32.mxu1 %v6819_v0 }
 0xdff   :  { %v1759_v25 = vpop.f32.mrf.mxu0 }
 0xe01   :  { %5957 = vmatmul.mubr.msk.f32.gmra.mxu1 %vm577_vm2, %v7336_v19  ;;  %v1761_v19 = vpop.f32.mrf.mxu0 }
 0xe02   :  { %1920 = vmatprep.mubr.f32.mxu1 %v6819_v0  ;;  %v1762_v43 = vadd.f32 %v1761_v19, %v7412_v8  ;;  %v7442_v19 = vld [vmem:[#allocation15 + $0x68] sm:$0xff] }
 0xe03   :  { %v1765_v27 = vpop.f32.mrf.mxu0 }
 0xe05   :  { %5958 = vmatmul.mubr.msk.f32.gmra.mxu1 %vm577_vm2, %v7341_v21  ;;  %v1767_v28 = vpop.f32.mrf.mxu0 }
 0xe06   :  { %1926 = vmatprep.mubr.f32.mxu1 %v6819_v0  ;;  %v1768_v40 = vadd.f32 %v1767_v28, %v7412_v8 }
 0xe07   :  { %v1771_v31 = vpop.f32.mrf.mxu0 }
 0xe09   :  { %5959 = vmatmul.mubr.msk.f32.gmra.mxu1 %vm577_vm2, %v1627_v36  ;;  %v1773_v52 = vpop.f32.mrf.mxu0 }
 0xe0a   :  { %1932 = vmatprep.mubr.f32.mxu1 %v6819_v0  ;;  %v1774_v9 = vadd.f32 %v1773_v52, %v7412_v8  ;;  %v7469_v52 = vld [vmem:[#allocation15 + $0x30] sm:$0xff] }
 0xe0b   :  { %v1777_v60 = vpop.f32.mrf.mxu0 }
 0xe0d   :  { %v7392_v33 = vpop.f32.mrf.mxu0 }
 0xea1   :  { %v1576_v30 = vpop.f32.mrf.mxu1 }
 0xea2   :  { %v1581_v21 = vadd.f32 %v1576_v30, %v7190_v54  ;;  %v7397_v54 = vrot.slane %v1645_v59, %v7152_v35  ;;  %v7438_v30 = vld [vmem:[#allocation15 + $0x78] sm:$0xff] }
 0xea3   :  { %v1578_v7 = vpop.f32.mrf.mxu1  ;;  %1993 = vmatprep.subr.mxu0 %v7438_v30  ;;  %2120 = vmatprep.subr.mxu1 %v7438_v30 }
 0xea4   :  { %v5943_v20 = vmul.f32 -1.442695, %v1581_v21  ;;  %v1582_v56 = vadd.f32 %v1578_v7, %v7193_v44  ;;  %v1778_v46 = vadd.f32 %v1777_v60, %v7397_v54  ;;  %v1772_v53 = vadd.f32 %v1771_v31, %v7397_v54  ;;  %v7440_v21 = vld [vmem:[#allocation15 + $0x70] sm:$0xff]  ;;  %v7445_v31 = vld [vmem:[#allocation15 + $0x60] sm:$0xff] }
 0xea5   :  { %v1766_v58 = vadd.f32 %v1765_v27, %v7397_v54  ;;  %v1760_v38 = vadd.f32 %v1759_v25, %v7397_v54  ;;  %v1754_v24 = vadd.f32 %v1753_v16, %v7397_v54  ;;  %1994 = vmatpush1.msra.mxu0 %v7440_v21  ;;  %v7449_v16 = vld [vmem:[#allocation15 + $0x58] sm:$0xff]  ;;  %2121 = vmatpush1.msra.mxu1 %v7440_v21  ;;  %v7453_v7 = vld [vmem:[#allocation15 + $0x50] sm:$0xff] }
 0xea6   :  { %6227 = vpow2.f32 %v5943_v20  ;;  %v5944_v57 = vmul.f32 -1.442695, %v1582_v56  ;;  %1995 = vmatprep.subr.mxu0 %v7442_v19  ;;  %2122 = vmatprep.subr.mxu1 %v7442_v19  ;;  %v7457_v20 = vld [vmem:[#allocation15 + $0x48] sm:$0xff] }
 0xea7   :  { %1996 = vmatpush1.msra.mxu0 %v7445_v31  ;;  %2123 = vmatpush1.msra.mxu1 %v7445_v31 }
 0xea8   :  { %6229 = vpow2.f32 %v5944_v57  ;;  %1997 = vmatprep.subr.mxu0 %v7449_v16  ;;  %2124 = vmatprep.subr.mxu1 %v7449_v16  ;;  %v7465_v57 = vld [vmem:[#allocation15 + $0x38] sm:$0xff] }
 0xea9   :  { %v1783_v51 = vpop.f32.mrf.mxu0  ;;  %6231 = vtanh.f32 %v1582_v56  ;;  %v7461_v56 = vld [vmem:[#allocation15 + $0x40] sm:$0xff]  ;;  %1998 = vmatpush1.msra.mxu0 %v7453_v7  ;;  %2125 = vmatpush1.msra.mxu1 %v7453_v7 }
 0xeaa   :  { %v1784_v44 = vadd.f32 %v1783_v51, %v7397_v54  ;;  %1999 = vmatprep.subr.mxu0 %v7457_v20  ;;  %2126 = vmatprep.subr.mxu1 %v7457_v20 }
 0xeab   :  { %2000 = vmatpush1.msra.mxu0 %v7461_v56  ;;  %2127 = vmatpush1.msra.mxu1 %v7461_v56 }
 0xeac   :  { %2001 = vmatprep.subr.mxu0 %v7465_v57  ;;  %2128 = vmatprep.subr.mxu1 %v7465_v57 }
 0xead   :  { %2002 = vmatpush1.msra.mxu0 %v7469_v52  ;;  %2129 = vmatpush1.msra.mxu1 %v7469_v52 }
 0xeb1   :  { %v7394_v61 = vpop.f32.mrf.mxu1 }
 0xeb3   :  { %v6228_v55 = vpop.eup %6227  ;;  %v7399_v10 = vpop.f32.mrf.mxu1 }
 0xeb4   :  { %v1591_v62 = vadd.f32 1.0, %v6228_v55  ;;  %v7482_v55 = vld [vmem:[#allocation15 + $0x28] sm:$0xff] }
 0xeb5   :  { %v6230_v17 = vpop.eup %6229  ;;  %v1898_v32 = vpop.f32.mrf.mxu1  ;;  %2003 = vmatprep.subr.mxu0 %v7482_v55  ;;  %2130 = vmatprep.subr.mxu1 %v7482_v55 }
 0xeb6   :  { %v1592_v63 = vadd.f32 1.0, %v6230_v17  ;;  %v7402_v1 = vadd.f32 %v1898_v32, %v1784_v44  ;;  %v6232_v13 = vpop.eup %6231  ;;  %v7484_v44 = vld [vmem:[#allocation15 + $0x20] sm:$0xff]  ;;  %v7486_v17 = vld [vmem:[#allocation15 + $0x18] sm:$0xff] }
 0xeb7   :  { %v7404_v3 = vpop.f32.mrf.mxu1  ;;  %2004 = vmatpush1.msra.mxu0 %v7484_v44  ;;  %2131 = vmatpush1.msra.mxu1 %v7484_v44  ;;  %v7500_v32 = vld [vmem:[#allocation15] sm:$0xff] }
 0xeb8   :  { %6233 = vrcp.f32 %v1592_v63  ;;  %2005 = vmatprep.subr.mxu0 %v7486_v17  ;;  %2132 = vmatprep.subr.mxu1 %v7486_v17 }
 0xeb9   :  { %6235 = vrcp.f32 %v1591_v62  ;;  %v1904_v4 = vpop.f32.mrf.mxu1  ;;  %v7489_v62 = vld [vmem:[#allocation15 + $0x10] sm:$0xff] }
 0xeba   :  { %v7407_v5 = vadd.f32 %v1904_v4, %v1778_v46  ;;  %2006 = vmatpush1.msra.mxu0 %v7489_v62  ;;  %2133 = vmatpush1.msra.mxu1 %v7489_v62 }
 0xebb   :  { %v7409_v34 = vpop.f32.mrf.mxu1 }
 0xebd   :  { %v1910_v49 = vpop.f32.mrf.mxu1 }
 0xebe   :  { %v7416_v37 = vadd.f32 %v1910_v49, %v1772_v53  ;;  %v7533_v49 = vpop.f32.mrf.mxu0 }
 0xebf   :  { %v1912_v42 = vpop.f32.mrf.mxu1 }
 0xec0   :  { %v7419_v48 = vadd.f32 %v1912_v42, %v1774_v9 }
 0xec1   :  { %v1916_v23 = vpop.f32.mrf.mxu1 }
 0xec2   :  { %v7422_v26 = vadd.f32 %v1916_v23, %v1766_v58  ;;  %v1748_v23 = vadd.f32 %v7381_v14, %v7397_v54 }
 0xec3   :  { %v1918_v2 = vpop.f32.mrf.mxu1 }
 0xec4   :  { %v7425_v6 = vadd.f32 %v1918_v2, %v1768_v40 }
 0xec5   :  { %v6234_v41 = vpop.eup %6233  ;;  %v1922_v29 = vpop.f32.mrf.mxu1 }
 0xec6   :  { %v6236_v36 = vpop.eup %6235  ;;  %v7428_v47 = vadd.f32 %v1922_v29, %v1760_v38  ;;  %v1598_v11 = vsel %vm235_vm1, %v6232_v13, %v6234_v41  ;;  %v1750_v13 = vadd.f32 %v7383_v15, %v7412_v8 }
 0xec7   :  { %v1924_v12 = vpop.f32.mrf.mxu1  ;;  %v1600_v22 = vmul.f32 %v6236_v36, %v1598_v11  ;;  %v1599_v60 = vmul.f32 %v6236_v36, %v7352_v50  ;;  %v7498_v50 = vld [vmem:[#allocation15 + $0x8] sm:$0xff] }
 0xec8   :  { %v7433_v27 = vadd.f32 %v1924_v12, %v1762_v43  ;;  %2007 = vmatprep.subr.mxu0 %v7498_v50  ;;  %2134 = vmatprep.subr.mxu1 %v7498_v50 }
 0xec9   :  { %v1928_v28 = vpop.f32.mrf.mxu1  ;;  %1602 = vrot.lane.b32.xlu0 %v1600_v22, %s6820_s0  ;;  %2008 = vmatpush1.msra.mxu0 %v7500_v32 }
 0xeca   :  { %v7436_v25 = vadd.f32 %v1928_v28, %v1754_v24  ;;  %2135 = vmatpush1.msra.mxu1 %v7500_v32  ;;  %2248 = vmatprep.subr.mxu0 %v7438_v30 }
 0xecb   :  { %2376 = vmatprep.subr.mxu1 %v7438_v30  ;;  %v1930_v9 = vpop.f32.mrf.mxu1 }
 0xf3b   :  { %v1603_v59 = vpop.permute.xlu0 %1602 }
 0xf3c   :  { %v7479_v51 = vadd.f32 %v1603_v59, %v1599_v60 }
 0xf3e   :  { %6237 = vtanh.f32 %v7479_v51 }
 0xf4b   :  { %v6238_v63 = vpop.eup %6237 }
 0xf4c   :  { %v1607_v46 = vmul.f32 %v6238_v63, %v1598_v11 }
 0xf4e   :  { %1609 = vrot.lane.b32.xlu1 %v1607_v46, %s6820_s0 }
 0xfc0   :  { %v1610_v4 = vpop.permute.xlu1 %1609 }
 0xfc1   :  { %1613 = vst.msk [vmem:[#allocation4 + $0x38] sm:$0xff] %vm577_vm2, %v1610_v4  ;;  %1614 = vst.msk [vmem:[#allocation6] sm:$0xff] %vm577_vm2, %v1610_v4 }
 0xfc8   :  { %v1628_v53 = vld [vmem:[#allocation4 + $0x38] sm:$0xff] }
 0xfc9   :  { %5952 = vmatmul.mubr.msk.f32.gmra.mxu0 %vm577_vm2, %v1628_v53  ;;  %5960 = vmatmul.mubr.msk.f32.gmra.mxu1 %vm577_vm2, %v1628_v53 }
 0xfca   :  { %2041 = vmatprep.mubr.f32.mxu0 %v6819_v0  ;;  %2168 = vmatprep.mubr.f32.mxu1 %v6819_v0 }
 0xfcd   :  { %2042 = vmatmul.mubr.f32.vlgmr.msra.gmra.mxu0 %v6819_v0 }
 0xfce   :  { %2249 = vmatpush1.msra.mxu0 %v7440_v21  ;;  %2296 = vmatprep.mubr.f32.mxu0 %v6819_v0 }
 0xfcf   :  { %2250 = vmatprep.subr.mxu0 %v7442_v19 }
 0xfd0   :  { %2251 = vmatpush1.msra.mxu0 %v7445_v31 }
 0xfd1   :  { %2252 = vmatprep.subr.mxu0 %v7449_v16 }
 0xfd2   :  { %2253 = vmatpush1.msra.mxu0 %v7453_v7 }
 0xfd3   :  { %2254 = vmatprep.subr.mxu0 %v7457_v20 }
 0xfd4   :  { %2255 = vmatpush1.msra.mxu0 %v7461_v56 }
 0xfd5   :  { %2256 = vmatprep.subr.mxu0 %v7465_v57 }
 0xfd6   :  { %2257 = vmatpush1.msra.mxu0 %v7469_v52 }
 0xfd7   :  { %2258 = vmatprep.subr.mxu0 %v7482_v55 }
 0xfd8   :  { %2259 = vmatpush1.msra.mxu0 %v7484_v44 }
 0xfd9   :  { %2260 = vmatprep.subr.mxu0 %v7486_v17 }
 0xfda   :  { %2261 = vmatpush1.msra.mxu0 %v7489_v62 }
 0xfdb   :  { %2262 = vmatprep.subr.mxu0 %v7498_v50 }
 0xfdc   :  { %2263 = vmatpush1.msra.mxu0 %v7500_v32 }
 0xfdd   :  { %2504 = vmatprep.subr.mxu0 %v7438_v30 }
0x1089   :  { %v7535_v42 = vpop.f32.mrf.mxu0  ;;  %v1934_v58 = vpop.f32.mrf.mxu1 }
0x108a   :  { %v1959_v38 = vadd.f32 %v1934_v58, %v1748_v23 }
0x108b   :  { %v7539_v40 = vpop.f32.mrf.mxu0  ;;  %v1936_v2 = vpop.f32.mrf.mxu1 }
0x108c   :  { %v1960_v29 = vadd.f32 %v1936_v2, %v1750_v13 }
0x108d   :  { %v2043_v41 = vpop.f32.mrf.mxu0 }
0x108e   :  { %v2048_v36 = vadd.f32 %v2043_v41, %v1959_v38  ;;  %v1756_v41 = vadd.f32 %v7385_v18, %v7412_v8 }
0x108f   :  { %v2045_v43 = vpop.f32.mrf.mxu0 }
0x1090   :  { %v5961_v11 = vmul.f32 -1.442695, %v2048_v36  ;;  %v2049_v12 = vadd.f32 %v2045_v43, %v1960_v29  ;;  %v2085_v36 = vadd.f32 %v1930_v9, %v1756_v41 }
0x1092   :  { %6239 = vpow2.f32 %v5961_v11  ;;  %v5962_v22 = vmul.f32 -1.442695, %v2049_v12 }
0x1094   :  { %6241 = vpow2.f32 %v5962_v22 }
0x1095   :  { %6243 = vtanh.f32 %v2049_v12 }
0x109f   :  { %v6240_v24 = vpop.eup %6239 }
0x10a0   :  { %v2058_v60 = vadd.f32 1.0, %v6240_v24 }
0x10a1   :  { %v6242_v28 = vpop.eup %6241 }
0x10a2   :  { %v2059_v14 = vadd.f32 1.0, %v6242_v28  ;;  %v6244_v59 = vpop.eup %6243 }
0x10a4   :  { %6245 = vrcp.f32 %v2059_v14 }
0x10a5   :  { %6247 = vrcp.f32 %v2058_v60 }
0x10b1   :  { %v6246_v63 = vpop.eup %6245 }
0x10b2   :  { %v6248_v15 = vpop.eup %6247  ;;  %v2065_v46 = vsel %vm235_vm1, %v6244_v59, %v6246_v63 }
0x10b3   :  { %v2067_v4 = vmul.f32 %v6248_v15, %v2065_v46  ;;  %v2066_v53 = vmul.f32 0.0, %v6248_v15 }
0x10b5   :  { %2069 = vrot.lane.b32.xlu0 %v2067_v4, %s6820_s0 }
0x1127   :  { %v2070_v58 = vpop.permute.xlu0 %2069 }
0x1128   :  { %v2072_v23 = vadd.f32 %v2070_v58, %v2066_v53 }
0x112a   :  { %6249 = vtanh.f32 %v2072_v23 }
0x1137   :  { %v6250_v2 = vpop.eup %6249 }
0x1138   :  { %v2074_v13 = vmul.f32 %v6250_v2, %v2065_v46 }
0x113a   :  { %2076 = vrot.lane.b32.xlu1 %v2074_v13, %s6820_s0 }
0x11ac   :  { %v2077_v38 = vpop.permute.xlu1 %2076 }
0x11ad   :  { %2079 = vst.msk [vmem:[#allocation5] sm:$0xff] %vm577_vm2, %v2077_v38  ;;  %5963 = vmatmul.mubr.msk.f32.vlgmr.msra.gmra.mxu1 %vm577_vm2, %v2077_v38 }
0x11ae   :  { %2377 = vmatpush1.msra.mxu1 %v7440_v21  ;;  %2424 = vmatprep.mubr.f32.mxu1 %v6819_v0 }
0x11af   :  { %2378 = vmatprep.subr.mxu1 %v7442_v19 }
0x11b0   :  { %2379 = vmatpush1.msra.mxu1 %v7445_v31 }
0x11b1   :  { %2380 = vmatprep.subr.mxu1 %v7449_v16 }
0x11b2   :  { %2381 = vmatpush1.msra.mxu1 %v7453_v7 }
0x11b3   :  { %2382 = vmatprep.subr.mxu1 %v7457_v20 }
0x11b4   :  { %2383 = vmatpush1.msra.mxu1 %v7461_v56 }
0x11b5   :  { %2384 = vmatprep.subr.mxu1 %v7465_v57 }
0x11b6   :  { %2385 = vmatpush1.msra.mxu1 %v7469_v52 }
0x11b7   :  { %2386 = vmatprep.subr.mxu1 %v7482_v55 }
0x11b8   :  { %2387 = vmatpush1.msra.mxu1 %v7484_v44 }
0x11b9   :  { %2388 = vmatprep.subr.mxu1 %v7486_v17 }
0x11ba   :  { %2389 = vmatpush1.msra.mxu1 %v7489_v62 }
0x11bb   :  { %2390 = vmatprep.subr.mxu1 %v7498_v50 }
0x11bc   :  { %2391 = vmatpush1.msra.mxu1 %v7500_v32 }
0x11bd   :  { %2632 = vmatprep.subr.mxu1 %v7438_v30 }
0x126d   :  { %v2170_v29 = vpop.f32.mrf.mxu1 }
0x126e   :  { %v2175_v43 = vadd.f32 %v2170_v29, %v7436_v25 }
0x126f   :  { %v2172_v11 = vpop.f32.mrf.mxu1 }
0x1270   :  { %v5964_v12 = vmul.f32 -1.442695, %v2175_v43  ;;  %v2176_v22 = vadd.f32 %v2172_v11, %v2085_v36 }
0x1272   :  { %6251 = vpow2.f32 %v5964_v12  ;;  %v5965_v24 = vmul.f32 -1.442695, %v2176_v22 }
0x1274   :  { %6253 = vpow2.f32 %v5965_v24 }
0x1275   :  { %6255 = vtanh.f32 %v2176_v22 }
0x127f   :  { %v6252_v28 = vpop.eup %6251 }
0x1280   :  { %v2185_v14 = vadd.f32 1.0, %v6252_v28 }
0x1281   :  { %v6254_v60 = vpop.eup %6253 }
0x1282   :  { %v2186_v59 = vadd.f32 1.0, %v6254_v60  ;;  %v6256_v63 = vpop.eup %6255 }
0x1284   :  { %6257 = vrcp.f32 %v2186_v59 }
0x1285   :  { %6259 = vrcp.f32 %v2185_v14 }
0x1291   :  { %v6258_v15 = vpop.eup %6257 }
0x1292   :  { %v6260_v18 = vpop.eup %6259  ;;  %v2192_v9 = vsel %vm235_vm1, %v6256_v63, %v6258_v15 }
0x1293   :  { %v2194_v25 = vmul.f32 %v6260_v18, %v2192_v9  ;;  %v2193_v46 = vmul.f32 %v6260_v18, %v2072_v23 }
0x1295   :  { %2196 = vrot.lane.b32.xlu0 %v2194_v25, %s6820_s0 }
0x1307   :  { %v2197_v4 = vpop.permute.xlu0 %2196 }
0x1308   :  { %v2199_v53 = vadd.f32 %v2197_v4, %v2193_v46 }
0x130a   :  { %6261 = vtanh.f32 %v2199_v53 }
0x1317   :  { %v6262_v58 = vpop.eup %6261 }
0x1318   :  { %v2201_v2 = vmul.f32 %v6262_v58, %v2192_v9 }
0x131a   :  { %2203 = vrot.lane.b32.xlu1 %v2201_v2, %s6820_s0 }
0x138c   :  { %v2204_v13 = vpop.permute.xlu1 %2203 }
0x138d   :  { %2207 = vst.msk [vmem:[#allocation5 + $0x8] sm:$0xff] %vm577_vm2, %v2204_v13  ;;  %5966 = vmatmul.mubr.msk.f32.vlgmr.msra.gmra.mxu0 %vm577_vm2, %v2204_v13 }
0x138e   :  { %2505 = vmatpush1.msra.mxu0 %v7440_v21  ;;  %2552 = vmatprep.mubr.f32.mxu0 %v6819_v0 }
0x138f   :  { %2506 = vmatprep.subr.mxu0 %v7442_v19 }
0x1390   :  { %2507 = vmatpush1.msra.mxu0 %v7445_v31 }
0x1391   :  { %2508 = vmatprep.subr.mxu0 %v7449_v16 }
0x1392   :  { %2509 = vmatpush1.msra.mxu0 %v7453_v7 }
0x1393   :  { %2510 = vmatprep.subr.mxu0 %v7457_v20 }
0x1394   :  { %2511 = vmatpush1.msra.mxu0 %v7461_v56 }
0x1395   :  { %2512 = vmatprep.subr.mxu0 %v7465_v57 }
0x1396   :  { %2513 = vmatpush1.msra.mxu0 %v7469_v52 }
0x1397   :  { %2514 = vmatprep.subr.mxu0 %v7482_v55 }
0x1398   :  { %2515 = vmatpush1.msra.mxu0 %v7484_v44 }
0x1399   :  { %2516 = vmatprep.subr.mxu0 %v7486_v17 }
0x139a   :  { %2517 = vmatpush1.msra.mxu0 %v7489_v62 }
0x139b   :  { %2518 = vmatprep.subr.mxu0 %v7498_v50 }
0x139c   :  { %2519 = vmatpush1.msra.mxu0 %v7500_v32 }
0x139d   :  { %2760 = vmatprep.subr.mxu0 %v7438_v30 }
0x144d   :  { %v2298_v23 = vpop.f32.mrf.mxu0 }
0x144e   :  { %v2303_v38 = vadd.f32 %v2298_v23, %v7428_v47 }
0x144f   :  { %v2300_v41 = vpop.f32.mrf.mxu0 }
0x1450   :  { %v5967_v29 = vmul.f32 -1.442695, %v2303_v38  ;;  %v2304_v36 = vadd.f32 %v2300_v41, %v7433_v27 }
0x1452   :  { %6263 = vpow2.f32 %v5967_v29  ;;  %v5968_v43 = vmul.f32 -1.442695, %v2304_v36 }
0x1454   :  { %6265 = vpow2.f32 %v5968_v43 }
0x1455   :  { %6267 = vtanh.f32 %v2304_v36 }
0x145f   :  { %v6264_v11 = vpop.eup %6263 }
0x1460   :  { %v2313_v22 = vadd.f32 1.0, %v6264_v11 }
0x1461   :  { %v6266_v12 = vpop.eup %6265 }
0x1462   :  { %v2314_v24 = vadd.f32 1.0, %v6266_v12  ;;  %v6268_v28 = vpop.eup %6267 }
0x1464   :  { %6269 = vrcp.f32 %v2314_v24 }
0x1465   :  { %6271 = vrcp.f32 %v2313_v22 }
0x1471   :  { %v6270_v60 = vpop.eup %6269 }
0x1472   :  { %v6272_v14 = vpop.eup %6271  ;;  %v2320_v47 = vsel %vm235_vm1, %v6268_v28, %v6270_v60 }
0x1473   :  { %v2322_v59 = vmul.f32 %v6272_v14, %v2320_v47  ;;  %v2321_v27 = vmul.f32 %v6272_v14, %v2199_v53 }
0x1475   :  { %2324 = vrot.lane.b32.xlu0 %v2322_v59, %s6820_s0 }
0x14e7   :  { %v2325_v63 = vpop.permute.xlu0 %2324 }
0x14e8   :  { %v2327_v15 = vadd.f32 %v2325_v63, %v2321_v27 }
0x14ea   :  { %6273 = vtanh.f32 %v2327_v15 }
0x14f7   :  { %v6274_v18 = vpop.eup %6273 }
0x14f8   :  { %v2329_v9 = vmul.f32 %v6274_v18, %v2320_v47 }
0x14fa   :  { %2331 = vrot.lane.b32.xlu1 %v2329_v9, %s6820_s0 }
0x156c   :  { %v2332_v25 = vpop.permute.xlu1 %2331 }
0x156d   :  { %2335 = vst.msk [vmem:[#allocation5 + $0x10] sm:$0xff] %vm577_vm2, %v2332_v25  ;;  %5969 = vmatmul.mubr.msk.f32.vlgmr.msra.gmra.mxu1 %vm577_vm2, %v2332_v25 }
0x156e   :  { %2633 = vmatpush1.msra.mxu1 %v7440_v21  ;;  %2680 = vmatprep.mubr.f32.mxu1 %v6819_v0 }
0x156f   :  { %2634 = vmatprep.subr.mxu1 %v7442_v19 }
0x1570   :  { %2635 = vmatpush1.msra.mxu1 %v7445_v31 }
0x1571   :  { %2636 = vmatprep.subr.mxu1 %v7449_v16 }
0x1572   :  { %2637 = vmatpush1.msra.mxu1 %v7453_v7 }
0x1573   :  { %2638 = vmatprep.subr.mxu1 %v7457_v20 }
0x1574   :  { %2639 = vmatpush1.msra.mxu1 %v7461_v56 }
0x1575   :  { %2640 = vmatprep.subr.mxu1 %v7465_v57 }
0x1576   :  { %2641 = vmatpush1.msra.mxu1 %v7469_v52 }
0x1577   :  { %2642 = vmatprep.subr.mxu1 %v7482_v55 }
0x1578   :  { %2643 = vmatpush1.msra.mxu1 %v7484_v44 }
0x1579   :  { %2644 = vmatprep.subr.mxu1 %v7486_v17 }
0x157a   :  { %2645 = vmatpush1.msra.mxu1 %v7489_v62 }
0x157b   :  { %2646 = vmatprep.subr.mxu1 %v7498_v50 }
0x157c   :  { %2647 = vmatpush1.msra.mxu1 %v7500_v32 }
0x157d   :  { %2888 = vmatprep.subr.mxu1 %v7438_v30 }
0x162d   :  { %v2426_v46 = vpop.f32.mrf.mxu1 }
0x162e   :  { %v2431_v4 = vadd.f32 %v2426_v46, %v7422_v26 }
0x162f   :  { %v2428_v53 = vpop.f32.mrf.mxu1 }
0x1630   :  { %v5970_v58 = vmul.f32 -1.442695, %v2431_v4  ;;  %v2432_v2 = vadd.f32 %v2428_v53, %v7425_v6 }
0x1632   :  { %6275 = vpow2.f32 %v5970_v58  ;;  %v5971_v13 = vmul.f32 -1.442695, %v2432_v2 }
0x1634   :  { %6277 = vpow2.f32 %v5971_v13 }
0x1635   :  { %6279 = vtanh.f32 %v2432_v2 }
0x163f   :  { %v6276_v23 = vpop.eup %6275 }
0x1640   :  { %v2441_v41 = vadd.f32 1.0, %v6276_v23 }
0x1641   :  { %v6278_v38 = vpop.eup %6277 }
0x1642   :  { %v2442_v29 = vadd.f32 1.0, %v6278_v38  ;;  %v6280_v36 = vpop.eup %6279 }
0x1644   :  { %6281 = vrcp.f32 %v2442_v29 }
0x1645   :  { %6283 = vrcp.f32 %v2441_v41 }
0x1651   :  { %v6282_v43 = vpop.eup %6281 }
0x1652   :  { %v6284_v30 = vpop.eup %6283  ;;  %v2448_v26 = vsel %vm235_vm1, %v6280_v36, %v6282_v43 }
0x1653   :  { %v2450_v11 = vmul.f32 %v6284_v30, %v2448_v26  ;;  %v2449_v6 = vmul.f32 %v6284_v30, %v2327_v15 }
0x1655   :  { %2452 = vrot.lane.b32.xlu0 %v2450_v11, %s6820_s0 }
0x16c7   :  { %v2453_v12 = vpop.permute.xlu0 %2452 }
0x16c8   :  { %v2455_v22 = vadd.f32 %v2453_v12, %v2449_v6  ;;  %v3008_v6 = vld [vmem:[#allocation16 + $0x70] sm:$0xff] }
0x16ca   :  { %6285 = vtanh.f32 %v2455_v22 }
0x16d7   :  { %v6286_v24 = vpop.eup %6285 }
0x16d8   :  { %v2457_v28 = vmul.f32 %v6286_v24, %v2448_v26  ;;  %v3006_v24 = vld [vmem:[#allocation16 + $0x60] sm:$0xff] }
0x16da   :  { %2459 = vrot.lane.b32.xlu1 %v2457_v28, %s6820_s0  ;;  %v3005_v28 = vld [vmem:[#allocation16 + $0x58] sm:$0xff] }
0x174c   :  { %v2460_v60 = vpop.permute.xlu1 %2459 }
0x174d   :  { %2463 = vst.msk [vmem:[#allocation5 + $0x18] sm:$0xff] %vm577_vm2, %v2460_v60  ;;  %5972 = vmatmul.mubr.msk.f32.vlgmr.msra.gmra.mxu0 %vm577_vm2, %v2460_v60  ;;  %v3004_v60 = vld [vmem:[#allocation16 + $0x50] sm:$0xff] }
0x174e   :  { %2761 = vmatpush1.msra.mxu0 %v7440_v21  ;;  %2808 = vmatprep.mubr.f32.mxu0 %v6819_v0 }
0x174f   :  { %2762 = vmatprep.subr.mxu0 %v7442_v19 }
0x1750   :  { %2763 = vmatpush1.msra.mxu0 %v7445_v31 }
0x1751   :  { %2764 = vmatprep.subr.mxu0 %v7449_v16 }
0x1752   :  { %2765 = vmatpush1.msra.mxu0 %v7453_v7 }
0x1753   :  { %2766 = vmatprep.subr.mxu0 %v7457_v20 }
0x1754   :  { %2767 = vmatpush1.msra.mxu0 %v7461_v56 }
0x1755   :  { %2768 = vmatprep.subr.mxu0 %v7465_v57 }
0x1756   :  { %2769 = vmatpush1.msra.mxu0 %v7469_v52 }
0x1757   :  { %2770 = vmatprep.subr.mxu0 %v7482_v55 }
0x1758   :  { %2771 = vmatpush1.msra.mxu0 %v7484_v44 }
0x1759   :  { %2772 = vmatprep.subr.mxu0 %v7486_v17 }
0x175a   :  { %2773 = vmatpush1.msra.mxu0 %v7489_v62 }
0x175b   :  { %2774 = vmatprep.subr.mxu0 %v7498_v50 }
0x175c   :  { %2775 = vmatpush1.msra.mxu0 %v7500_v32 }
0x180d   :  { %v2554_v14 = vpop.f32.mrf.mxu0 }
0x180e   :  { %v2559_v47 = vadd.f32 %v2554_v14, %v7416_v37  ;;  %v3003_v14 = vld [vmem:[#allocation16 + $0x48] sm:$0xff] }
0x180f   :  { %v2556_v59 = vpop.f32.mrf.mxu0 }
0x1810   :  { %v5973_v27 = vmul.f32 -1.442695, %v2559_v47  ;;  %v2560_v63 = vadd.f32 %v2556_v59, %v7419_v48  ;;  %v3002_v47 = vld [vmem:[#allocation16 + $0x40] sm:$0xff]  ;;  %v3001_v59 = vld [vmem:[#allocation16 + $0x38] sm:$0xff] }
0x1812   :  { %6287 = vpow2.f32 %v5973_v27  ;;  %v5974_v15 = vmul.f32 -1.442695, %v2560_v63  ;;  %v3000_v27 = vld [vmem:[#allocation16 + $0x30] sm:$0xff] }
0x1814   :  { %6289 = vpow2.f32 %v5974_v15  ;;  %v2998_v15 = vld [vmem:[#allocation16 + $0x20] sm:$0xff] }
0x1815   :  { %6291 = vtanh.f32 %v2560_v63  ;;  %v2999_v63 = vld [vmem:[#allocation16 + $0x28] sm:$0xff] }
0x181f   :  { %v6288_v18 = vpop.eup %6287 }
0x1820   :  { %v2569_v25 = vadd.f32 1.0, %v6288_v18  ;;  %v2997_v18 = vld [vmem:[#allocation16 + $0x18] sm:$0xff] }
0x1821   :  { %v6290_v9 = vpop.eup %6289 }
0x1822   :  { %v2570_v46 = vadd.f32 1.0, %v6290_v9  ;;  %v6292_v4 = vpop.eup %6291  ;;  %v2996_v9 = vld [vmem:[#allocation16 + $0x10] sm:$0xff] }
0x1824   :  { %6293 = vrcp.f32 %v2570_v46  ;;  %v2994_v46 = vld [vmem:[#allocation16] sm:$0xff] }
0x1825   :  { %6295 = vrcp.f32 %v2569_v25  ;;  %v2995_v25 = vld [vmem:[#allocation16 + $0x8] sm:$0xff] }
0x1831   :  { %v6294_v53 = vpop.eup %6293 }
0x1832   :  { %v6296_v58 = vpop.eup %6295  ;;  %v2576_v37 = vsel %vm235_vm1, %v6292_v4, %v6294_v53  ;;  %v7679_v4 = vld [vmem:[#allocation5] sm:$0xff]  ;;  %v7684_v53 = vld [vmem:[#allocation5 + $0x8] sm:$0xff] }
0x1833   :  { %v2578_v2 = vmul.f32 %v6296_v58, %v2576_v37  ;;  %v2577_v48 = vmul.f32 %v6296_v58, %v2455_v22  ;;  %v3007_v22 = vld [vmem:[#allocation16 + $0x68] sm:$0xff]  ;;  %v7689_v58 = vld [vmem:[#allocation5 + $0x10] sm:$0xff] }
0x1835   :  { %2580 = vrot.lane.b32.xlu0 %v2578_v2, %s6820_s0 }
0x18a7   :  { %v2581_v13 = vpop.permute.xlu0 %2580 }
0x18a8   :  { %v2583_v23 = vadd.f32 %v2581_v13, %v2577_v48  ;;  %v1786_v13 = vadd.f32 %v7533_v49, %v7412_v8 }
0x18aa   :  { %6297 = vtanh.f32 %v2583_v23 }
0x18b7   :  { %v6298_v38 = vpop.eup %6297 }
0x18b8   :  { %v2585_v41 = vmul.f32 %v6298_v38, %v2576_v37  ;;  %v7694_v37 = vld [vmem:[#allocation5 + $0x18] sm:$0xff]  ;;  %v2725_v38 = vadd.f32 %v7404_v3, %v1786_v13 }
0x18ba   :  { %2587 = vrot.lane.b32.xlu1 %v2585_v41, %s6820_s0 }
0x192c   :  { %v2588_v29 = vpop.permute.xlu1 %2587 }
0x192d   :  { %2591 = vst.msk [vmem:[#allocation5 + $0x20] sm:$0xff] %vm577_vm2, %v2588_v29  ;;  %5975 = vmatmul.mubr.msk.f32.vlgmr.msra.gmra.mxu1 %vm577_vm2, %v2588_v29 }
0x192e   :  { %2889 = vmatpush1.msra.mxu1 %v7440_v21  ;;  %2936 = vmatprep.mubr.f32.mxu1 %v6819_v0  ;;  %v1780_v21 = vadd.f32 %v7392_v33, %v7412_v8 }
0x192f   :  { %2890 = vmatprep.subr.mxu1 %v7442_v19 }
0x1930   :  { %2891 = vmatpush1.msra.mxu1 %v7445_v31  ;;  %v2597_v31 = vadd.f32 %v7409_v34, %v1780_v21 }
0x1931   :  { %2892 = vmatprep.subr.mxu1 %v7449_v16 }
0x1932   :  { %2893 = vmatpush1.msra.mxu1 %v7453_v7 }
0x1933   :  { %2894 = vmatprep.subr.mxu1 %v7457_v20 }
0x1934   :  { %2895 = vmatpush1.msra.mxu1 %v7461_v56  ;;  %v7699_v2 = vld [vmem:[#allocation5 + $0x20] sm:$0xff] }
0x1935   :  { %2896 = vmatprep.subr.mxu1 %v7465_v57 }
0x1936   :  { %2897 = vmatpush1.msra.mxu1 %v7469_v52 }
0x1937   :  { %2898 = vmatprep.subr.mxu1 %v7482_v55 }
0x1938   :  { %2899 = vmatpush1.msra.mxu1 %v7484_v44 }
0x1939   :  { %2900 = vmatprep.subr.mxu1 %v7486_v17 }
0x193a   :  { %2901 = vmatpush1.msra.mxu1 %v7489_v62 }
0x193b   :  { %2902 = vmatprep.subr.mxu1 %v7498_v50 }
0x193c   :  { %2903 = vmatpush1.msra.mxu1 %v7500_v32  ;;  %v3009_v32 = vld [vmem:[#allocation16 + $0x78] sm:$0xff] }
0x193d   :  { %3062 = vmatprep.subr.mxu0 %v3009_v32  ;;  %v3188_v32 = vld [vmem:[#allocation18 + $0x68] sm:$0xff] }
0x19ed   :  { %v2682_v19 = vpop.f32.mrf.mxu1 }
0x19ee   :  { %v2687_v16 = vadd.f32 %v2682_v19, %v7407_v5 }
0x19ef   :  { %v2684_v7 = vpop.f32.mrf.mxu1 }
0x19f0   :  { %v5976_v20 = vmul.f32 -1.442695, %v2687_v16  ;;  %v2688_v56 = vadd.f32 %v2684_v7, %v2597_v31 }
0x19f2   :  { %6299 = vpow2.f32 %v5976_v20  ;;  %v5977_v57 = vmul.f32 -1.442695, %v2688_v56 }
0x19f4   :  { %6301 = vpow2.f32 %v5977_v57 }
0x19f5   :  { %6303 = vtanh.f32 %v2688_v56 }
0x19ff   :  { %v6300_v52 = vpop.eup %6299 }
0x1a00   :  { %v2697_v44 = vadd.f32 1.0, %v6300_v52 }
0x1a01   :  { %v6302_v55 = vpop.eup %6301 }
0x1a02   :  { %v2698_v17 = vadd.f32 1.0, %v6302_v55  ;;  %v6304_v62 = vpop.eup %6303  ;;  %v3190_v55 = vld [vmem:[#allocation18 + $0x78] sm:$0xff] }
0x1a03   :  { %3207 = vmatprep.subr.mxu1 %v3190_v55 }
0x1a04   :  { %6305 = vrcp.f32 %v2698_v17 }
0x1a05   :  { %6307 = vrcp.f32 %v2697_v44 }
0x1a11   :  { %v6306_v33 = vpop.eup %6305 }
0x1a12   :  { %v6308_v50 = vpop.eup %6307  ;;  %v2704_v34 = vsel %vm235_vm1, %v6304_v62, %v6306_v33 }
0x1a13   :  { %v2706_v5 = vmul.f32 %v6308_v50, %v2704_v34  ;;  %v2705_v36 = vmul.f32 %v6308_v50, %v2583_v23 }
0x1a15   :  { %2708 = vrot.lane.b32.xlu0 %v2706_v5, %s6820_s0 }
0x1a87   :  { %v2709_v43 = vpop.permute.xlu0 %2708 }
0x1a88   :  { %v7672_v30 = vadd.f32 %v2709_v43, %v2705_v36  ;;  %v3187_v36 = vld [vmem:[#allocation18 + $0x60] sm:$0xff]  ;;  %v3186_v43 = vld [vmem:[#allocation18 + $0x58] sm:$0xff] }
0x1a8a   :  { %6309 = vtanh.f32 %v7672_v30 }
0x1a97   :  { %v6310_v26 = vpop.eup %6309 }
0x1a98   :  { %v2713_v11 = vmul.f32 %v6310_v26, %v2704_v34  ;;  %v3189_v34 = vld [vmem:[#allocation18 + $0x70] sm:$0xff]  ;;  %v3184_v26 = vld [vmem:[#allocation18 + $0x48] sm:$0xff] }
0x1a9a   :  { %2715 = vrot.lane.b32.xlu1 %v2713_v11, %s6820_s0  ;;  %v3183_v11 = vld [vmem:[#allocation18 + $0x40] sm:$0xff] }
0x1b0c   :  { %v2716_v12 = vpop.permute.xlu1 %2715 }
0x1b0d   :  { %2719 = vst.msk [vmem:[#allocation5 + $0x28] sm:$0xff] %vm577_vm2, %v2716_v12  ;;  %5978 = vmatmul.mubr.msk.f32.vlgmr.msra.gmra.mxu0 %vm577_vm2, %v2716_v12  ;;  %v3181_v12 = vld [vmem:[#allocation18 + $0x30] sm:$0xff] }
0x1b0e   :  { %3063 = vmatpush1.msra.mxu0 %v3008_v6  ;;  %3110 = vmatprep.mubr.f32.mxu0 %v6819_v0  ;;  %v3182_v6 = vld [vmem:[#allocation18 + $0x38] sm:$0xff] }
0x1b0f   :  { %3064 = vmatprep.subr.mxu0 %v3007_v22 }
0x1b10   :  { %3065 = vmatpush1.msra.mxu0 %v3006_v24  ;;  %v3180_v24 = vld [vmem:[#allocation18 + $0x28] sm:$0xff] }
0x1b11   :  { %3066 = vmatprep.subr.mxu0 %v3005_v28  ;;  %v3179_v28 = vld [vmem:[#allocation18 + $0x20] sm:$0xff] }
0x1b12   :  { %3067 = vmatpush1.msra.mxu0 %v3004_v60  ;;  %v3178_v60 = vld [vmem:[#allocation18 + $0x18] sm:$0xff] }
0x1b13   :  { %3068 = vmatprep.subr.mxu0 %v3003_v14  ;;  %v3177_v14 = vld [vmem:[#allocation18 + $0x10] sm:$0xff] }
0x1b14   :  { %3069 = vmatpush1.msra.mxu0 %v3002_v47  ;;  %v7704_v48 = vld [vmem:[#allocation5 + $0x28] sm:$0xff] }
0x1b15   :  { %3070 = vmatprep.subr.mxu0 %v3001_v59  ;;  %v3176_v47 = vld [vmem:[#allocation18 + $0x8] sm:$0xff]  ;;  %v3175_v59 = vld [vmem:[#allocation18] sm:$0xff] }
0x1b16   :  { %3071 = vmatpush1.msra.mxu0 %v3000_v27 }
0x1b17   :  { %3072 = vmatprep.subr.mxu0 %v2999_v63 }
0x1b18   :  { %3073 = vmatpush1.msra.mxu0 %v2998_v15 }
0x1b19   :  { %3074 = vmatprep.subr.mxu0 %v2997_v18 }
0x1b1a   :  { %3075 = vmatpush1.msra.mxu0 %v2996_v9 }
0x1b1b   :  { %3076 = vmatprep.subr.mxu0 %v2995_v25 }
0x1b1c   :  { %3077 = vmatpush1.msra.mxu0 %v2994_v46 }
0x1b1d   :  { %5984 = vmatmul.mubr.msk.f32.vlgmr.msra.gmra.mxu0 %vm577_vm2, %v7679_v4 }
0x1b1e   :  { %3116 = vmatprep.mubr.f32.mxu0 %v6819_v0 }
0x1b21   :  { %5985 = vmatmul.mubr.msk.f32.gmra.mxu0 %vm577_vm2, %v7684_v53 }
0x1b22   :  { %3122 = vmatprep.mubr.f32.mxu0 %v6819_v0 }
0x1b25   :  { %5986 = vmatmul.mubr.msk.f32.gmra.mxu0 %vm577_vm2, %v7689_v58 }
0x1b26   :  { %3128 = vmatprep.mubr.f32.mxu0 %v6819_v0 }
0x1b29   :  { %5987 = vmatmul.mubr.msk.f32.gmra.mxu0 %vm577_vm2, %v7694_v37 }
0x1b2a   :  { %3134 = vmatprep.mubr.f32.mxu0 %v6819_v0 }
0x1b2d   :  { %5988 = vmatmul.mubr.msk.f32.gmra.mxu0 %vm577_vm2, %v7699_v2 }
0x1b2e   :  { %3140 = vmatprep.mubr.f32.mxu0 %v6819_v0 }
0x1b31   :  { %5989 = vmatmul.mubr.msk.f32.gmra.mxu0 %vm577_vm2, %v7704_v48 }
0x1b32   :  { %3146 = vmatprep.mubr.f32.mxu0 %v6819_v0 }
0x1bcd   :  { %v2810_v23 = vpop.f32.mrf.mxu0 }
0x1bce   :  { %v2815_v41 = vadd.f32 %v2810_v23, %v7402_v1 }
0x1bcf   :  { %v2812_v29 = vpop.f32.mrf.mxu0 }
0x1bd0   :  { %v5979_v21 = vmul.f32 -1.442695, %v2815_v41  ;;  %v2816_v19 = vadd.f32 %v2812_v29, %v2725_v38 }
0x1bd2   :  { %6311 = vpow2.f32 %v5979_v21  ;;  %v5980_v31 = vmul.f32 -1.442695, %v2816_v19 }
0x1bd4   :  { %6313 = vpow2.f32 %v5980_v31 }
0x1bd5   :  { %6315 = vtanh.f32 %v2816_v19 }
0x1bdd   :  { %v7746_v27 = vpop.f32.mrf.mxu0 }
0x1bdf   :  { %v6312_v16 = vpop.eup %6311  ;;  %v7748_v63 = vpop.f32.mrf.mxu0 }
0x1be0   :  { %v2825_v20 = vadd.f32 1.0, %v6312_v16 }
0x1be1   :  { %v6314_v7 = vpop.eup %6313  ;;  %v7750_v15 = vpop.f32.mrf.mxu0 }
0x1be2   :  { %v2826_v56 = vadd.f32 1.0, %v6314_v7  ;;  %v6316_v57 = vpop.eup %6315 }
0x1be3   :  { %v7752_v18 = vpop.f32.mrf.mxu0 }
0x1be4   :  { %6317 = vrcp.f32 %v2826_v56 }
0x1be5   :  { %6319 = vrcp.f32 %v2825_v20  ;;  %v3124_v9 = vpop.f32.mrf.mxu0 }
0x1be7   :  { %v3126_v25 = vpop.f32.mrf.mxu0 }
0x1be9   :  { %v3130_v46 = vpop.f32.mrf.mxu0 }
0x1bf1   :  { %v6318_v49 = vpop.eup %6317 }
0x1bf2   :  { %v6320_v52 = vpop.eup %6319  ;;  %v2832_v3 = vsel %vm235_vm1, %v6316_v57, %v6318_v49 }
0x1bf3   :  { %v2834_v1 = vmul.f32 %v6320_v52, %v2832_v3  ;;  %v2833_v44 = vmul.f32 %v6320_v52, %v7672_v30  ;;  %v3185_v30 = vld [vmem:[#allocation18 + $0x50] sm:$0xff] }
0x1bf5   :  { %2836 = vrot.lane.b32.xlu0 %v2834_v1, %s6820_s0 }
0x1c67   :  { %v2837_v17 = vpop.permute.xlu0 %2836 }
0x1c68   :  { %v7717_v62 = vadd.f32 %v2837_v17, %v2833_v44 }
0x1c6a   :  { %6321 = vtanh.f32 %v7717_v62 }
0x1c77   :  { %v6322_v33 = vpop.eup %6321 }
0x1c78   :  { %v2841_v50 = vmul.f32 %v6322_v33, %v2832_v3 }
0x1c7a   :  { %2843 = vrot.lane.b32.xlu1 %v2841_v50, %s6820_s0 }
0x1cec   :  { %v2844_v5 = vpop.permute.xlu1 %2843 }
0x1ced   :  { %2847 = vst.msk [vmem:[#allocation5 + $0x30] sm:$0xff] %vm577_vm2, %v2844_v5  ;;  %5981 = vmatmul.mubr.msk.f32.vlgmr.msra.gmra.mxu1 %vm577_vm2, %v2844_v5 }
0x1cee   :  { %3208 = vmatpush1.msra.mxu1 %v3189_v34  ;;  %3255 = vmatprep.mubr.f32.mxu1 %v6819_v0 }
0x1cef   :  { %3209 = vmatprep.subr.mxu1 %v3188_v32 }
0x1cf0   :  { %3210 = vmatpush1.msra.mxu1 %v3187_v36 }
0x1cf1   :  { %3211 = vmatprep.subr.mxu1 %v3186_v43 }
0x1cf2   :  { %3212 = vmatpush1.msra.mxu1 %v3185_v30 }
0x1cf3   :  { %3213 = vmatprep.subr.mxu1 %v3184_v26 }
0x1cf4   :  { %3214 = vmatpush1.msra.mxu1 %v3183_v11  ;;  %v2992_v22 = vld [vmem:[#allocation5 + $0x30] sm:$0xff] }
0x1cf5   :  { %3215 = vmatprep.subr.mxu1 %v3182_v6  ;;  %5990 = vmatmul.mubr.msk.f32.gmra.mxu0 %vm577_vm2, %v2992_v22 }
0x1cf6   :  { %3216 = vmatpush1.msra.mxu1 %v3181_v12  ;;  %3152 = vmatprep.mubr.f32.mxu0 %v6819_v0 }
0x1cf7   :  { %3217 = vmatprep.subr.mxu1 %v3180_v24 }
0x1cf8   :  { %3218 = vmatpush1.msra.mxu1 %v3179_v28 }
0x1cf9   :  { %3219 = vmatprep.subr.mxu1 %v3178_v60 }
0x1cfa   :  { %3220 = vmatpush1.msra.mxu1 %v3177_v14 }
0x1cfb   :  { %3221 = vmatprep.subr.mxu1 %v3176_v47 }
0x1cfc   :  { %3222 = vmatpush1.msra.mxu1 %v3175_v59 }
0x1cfd   :  { %5992 = vmatmul.mubr.msk.f32.vlgmr.msra.gmra.mxu1 %vm577_vm2, %v7679_v4  ;;  %v1790_v4 = vadd.f32 %v7535_v42, %v7397_v54  ;;  %v3010_v54 = vld [vmem:[%s8519_s12] sm:$0x3] }
0x1cfe   :  { %3261 = vmatprep.mubr.f32.mxu1 %v6819_v0  ;;  %v7783_v33 = vrot.slane %v3010_v54, %v7159_v39 }
0x1d00   :  { %v3127_v59 = vadd.f32 %v3126_v25, %v7783_v33  ;;  %v7815_v25 = vld [vmem:[#allocation19 + $0x78] sm:$0xff] }
0x1d01   :  { %5993 = vmatmul.mubr.msk.f32.gmra.mxu1 %vm577_vm2, %v7684_v53  ;;  %v1792_v53 = vadd.f32 %v7539_v40, %v7412_v8  ;;  %3361 = vmatprep.subr.mxu0 %v7815_v25 }
0x1d02   :  { %3267 = vmatprep.mubr.f32.mxu1 %v6819_v0  ;;  %3492 = vmatprep.subr.mxu1 %v7815_v25 }
0x1d03   :  { %v2853_v13 = vadd.f32 %v7399_v10, %v1792_v53  ;;  %v7768_v10 = vrot.slane %v3010_v54, %v7152_v35 }
0x1d05   :  { %5994 = vmatmul.mubr.msk.f32.gmra.mxu1 %vm577_vm2, %v7689_v58  ;;  %v3132_v58 = vpop.f32.mrf.mxu0  ;;  %v3131_v43 = vadd.f32 %v3130_v46, %v7768_v10  ;;  %v3125_v24 = vadd.f32 %v3124_v9, %v7768_v10 }
0x1d06   :  { %3273 = vmatprep.mubr.f32.mxu1 %v6819_v0  ;;  %v3133_v11 = vadd.f32 %v3132_v58, %v7783_v33 }
0x1d07   :  { %v3136_v23 = vpop.f32.mrf.mxu0 }
0x1d08   :  { %v3137_v50 = vadd.f32 %v3136_v23, %v7768_v10  ;;  %v7819_v23 = vld [vmem:[#allocation19 + $0x68] sm:$0xff] }
0x1d09   :  { %5995 = vmatmul.mubr.msk.f32.gmra.mxu1 %vm577_vm2, %v7694_v37  ;;  %v2852_v37 = vadd.f32 %v7394_v61, %v1790_v4  ;;  %v3138_v19 = vpop.f32.mrf.mxu0 }
0x1d0a   :  { %3279 = vmatprep.mubr.f32.mxu1 %v6819_v0  ;;  %v3139_v5 = vadd.f32 %v3138_v19, %v7783_v33  ;;  %v7846_v19 = vld [vmem:[#allocation19 + $0x30] sm:$0xff] }
0x1d0b   :  { %v3142_v31 = vpop.f32.mrf.mxu0 }
0x1d0c   :  { %v3143_v1 = vadd.f32 %v3142_v31, %v7768_v10 }
0x1d0d   :  { %5996 = vmatmul.mubr.msk.f32.gmra.mxu1 %vm577_vm2, %v7699_v2  ;;  %v7763_v8 = vpop.f32.mrf.mxu0 }
0x1d0e   :  { %3285 = vmatprep.mubr.f32.mxu1 %v6819_v0 }
0x1d11   :  { %5997 = vmatmul.mubr.msk.f32.gmra.mxu1 %vm577_vm2, %v7704_v48 }
0x1d12   :  { %3291 = vmatprep.mubr.f32.mxu1 %v6819_v0 }
0x1d15   :  { %5998 = vmatmul.mubr.msk.f32.gmra.mxu1 %vm577_vm2, %v2992_v22 }
0x1d16   :  { %3297 = vmatprep.mubr.f32.mxu1 %v6819_v0 }
0x1dad   :  { %v2938_v2 = vpop.f32.mrf.mxu1 }
0x1dae   :  { %v2943_v48 = vadd.f32 %v2938_v2, %v2852_v37  ;;  %v3119_v37 = vadd.f32 %v7750_v15, %v7768_v10  ;;  %v7826_v15 = vld [vmem:[#allocation19 + $0x58] sm:$0xff] }
0x1daf   :  { %v2940_v38 = vpop.f32.mrf.mxu1 }
0x1db0   :  { %v5982_v41 = vmul.f32 -1.442695, %v2943_v48  ;;  %v2944_v29 = vadd.f32 %v2940_v38, %v2853_v13  ;;  %v7817_v13 = vld [vmem:[#allocation19 + $0x70] sm:$0xff]  ;;  %v7822_v38 = vld [vmem:[#allocation19 + $0x60] sm:$0xff] }
0x1db1   :  { %3362 = vmatpush1.msra.mxu0 %v7817_v13  ;;  %3493 = vmatpush1.msra.mxu1 %v7817_v13 }
0x1db2   :  { %6323 = vpow2.f32 %v5982_v41  ;;  %v5983_v21 = vmul.f32 -1.442695, %v2944_v29  ;;  %3363 = vmatprep.subr.mxu0 %v7819_v23  ;;  %3494 = vmatprep.subr.mxu1 %v7819_v23  ;;  %v7834_v41 = vld [vmem:[#allocation19 + $0x48] sm:$0xff] }
0x1db3   :  { %3364 = vmatpush1.msra.mxu0 %v7822_v38  ;;  %3495 = vmatpush1.msra.mxu1 %v7822_v38 }
0x1db4   :  { %6325 = vpow2.f32 %v5983_v21  ;;  %3365 = vmatprep.subr.mxu0 %v7826_v15  ;;  %3496 = vmatprep.subr.mxu1 %v7826_v15  ;;  %v7842_v21 = vld [vmem:[#allocation19 + $0x38] sm:$0xff] }
0x1db5   :  { %v3148_v61 = vpop.f32.mrf.mxu0  ;;  %6327 = vtanh.f32 %v2944_v29  ;;  %v7838_v29 = vld [vmem:[#allocation19 + $0x40] sm:$0xff] }
0x1db6   :  { %v3149_v7 = vadd.f32 %v3148_v61, %v7768_v10 }
0x1dbd   :  { %v7765_v42 = vpop.f32.mrf.mxu1 }
0x1dbf   :  { %v6324_v40 = vpop.eup %6323  ;;  %v7770_v16 = vpop.f32.mrf.mxu1 }
0x1dc0   :  { %v2953_v56 = vadd.f32 1.0, %v6324_v40 }
0x1dc1   :  { %v6326_v20 = vpop.eup %6325  ;;  %v3263_v57 = vpop.f32.mrf.mxu1 }
0x1dc2   :  { %v2954_v49 = vadd.f32 1.0, %v6326_v20  ;;  %v7773_v52 = vadd.f32 %v3263_v57, %v3149_v7  ;;  %v6328_v22 = vpop.eup %6327  ;;  %v7860_v7 = vld [vmem:[#allocation19 + $0x28] sm:$0xff]  ;;  %v7862_v20 = vld [vmem:[#allocation19 + $0x20] sm:$0xff] }
0x1dc3   :  { %v7775_v3 = vpop.f32.mrf.mxu1  ;;  %v7876_v57 = vld [vmem:[#allocation19 + $0x8] sm:$0xff] }
0x1dc4   :  { %6329 = vrcp.f32 %v2954_v49  ;;  %v7878_v49 = vld [vmem:[#allocation19] sm:$0xff] }
0x1dc5   :  { %6331 = vrcp.f32 %v2953_v56  ;;  %v3269_v55 = vpop.f32.mrf.mxu1  ;;  %v7870_v56 = vld [vmem:[#allocation19 + $0x10] sm:$0xff] }
0x1dc6   :  { %v7778_v44 = vadd.f32 %v3269_v55, %v3143_v1 }
0x1dc7   :  { %v7780_v17 = vpop.f32.mrf.mxu1 }
0x1dc9   :  { %v3275_v34 = vpop.f32.mrf.mxu1 }
0x1dca   :  { %v7787_v32 = vadd.f32 %v3275_v34, %v3137_v50 }
0x1dcb   :  { %v3277_v36 = vpop.f32.mrf.mxu1 }
0x1dcc   :  { %v7790_v30 = vadd.f32 %v3277_v36, %v3139_v5  ;;  %v2984_v36 = vld [vmem:[#allocation6] sm:$0xff] }
0x1dcd   :  { %v3281_v26 = vpop.f32.mrf.mxu1 }
0x1dce   :  { %v7793_v6 = vadd.f32 %v3281_v26, %v3131_v43  ;;  %v7913_v43 = vpop.f32.mrf.mxu0 }
0x1dcf   :  { %v3283_v12 = vpop.f32.mrf.mxu1 }
0x1dd0   :  { %v7796_v28 = vadd.f32 %v3283_v12, %v3133_v11 }
0x1dd1   :  { %v6330_v60 = vpop.eup %6329  ;;  %v3287_v14 = vpop.f32.mrf.mxu1 }
0x1dd2   :  { %v6332_v47 = vpop.eup %6331  ;;  %v7799_v4 = vadd.f32 %v3287_v14, %v3125_v24  ;;  %v7803_v46 = vsel %vm235_vm1, %v6328_v22, %v6330_v60  ;;  %v3113_v22 = vadd.f32 %v7746_v27, %v7768_v10  ;;  %v3115_v14 = vadd.f32 %v7748_v63, %v7783_v33 }
0x1dd3   :  { %v3289_v53 = vpop.f32.mrf.mxu1  ;;  %v2962_v58 = vmul.f32 %v6332_v47, %v7803_v46  ;;  %v2961_v31 = vmul.f32 %v6332_v47, %v7717_v62  ;;  %v7868_v62 = vld [vmem:[#allocation19 + $0x18] sm:$0xff] }
0x1dd4   :  { %v7808_v9 = vadd.f32 %v3289_v53, %v3127_v59 }
0x1dd5   :  { %v3293_v2 = vpop.f32.mrf.mxu1  ;;  %2964 = vrot.lane.b32.xlu0 %v2962_v58, %s6820_s0 }
0x1dd6   :  { %v7811_v48 = vadd.f32 %v3293_v2, %v3119_v37 }
0x1dd7   :  { %v3295_v26 = vpop.f32.mrf.mxu1 }
0x1dd9   :  { %1616 = vrot.lane.b32.xlu0 %v7479_v51, %s6820_s0  ;;  %v7830_v51 = vld [vmem:[#allocation19 + $0x50] sm:$0xff] }
0x1dda   :  { %3366 = vmatpush1.msra.mxu0 %v7830_v51  ;;  %3497 = vmatpush1.msra.mxu1 %v7830_v51 }
0x1ddb   :  { %3367 = vmatprep.subr.mxu0 %v7834_v41  ;;  %3498 = vmatprep.subr.mxu1 %v7834_v41 }
0x1ddc   :  { %3368 = vmatpush1.msra.mxu0 %v7838_v29  ;;  %3499 = vmatpush1.msra.mxu1 %v7838_v29 }
0x1ddd   :  { %3369 = vmatprep.subr.mxu0 %v7842_v21  ;;  %3500 = vmatprep.subr.mxu1 %v7842_v21 }
0x1dde   :  { %3370 = vmatpush1.msra.mxu0 %v7846_v19  ;;  %3501 = vmatpush1.msra.mxu1 %v7846_v19 }
0x1ddf   :  { %3371 = vmatprep.subr.mxu0 %v7860_v7  ;;  %3502 = vmatprep.subr.mxu1 %v7860_v7 }
0x1de0   :  { %3372 = vmatpush1.msra.mxu0 %v7862_v20  ;;  %3503 = vmatpush1.msra.mxu1 %v7862_v20 }
0x1de1   :  { %3373 = vmatprep.subr.mxu0 %v7868_v62  ;;  %3504 = vmatprep.subr.mxu1 %v7868_v62 }
0x1de2   :  { %3374 = vmatpush1.msra.mxu0 %v7870_v56  ;;  %3505 = vmatpush1.msra.mxu1 %v7870_v56 }
0x1de3   :  { %3375 = vmatprep.subr.mxu0 %v7876_v57  ;;  %3506 = vmatprep.subr.mxu1 %v7876_v57 }
0x1de4   :  { %3376 = vmatpush1.msra.mxu0 %v7878_v49  ;;  %3507 = vmatpush1.msra.mxu1 %v7878_v49 }
0x1de5   :  { %3619 = vmatprep.subr.mxu0 %v7815_v25  ;;  %3746 = vmatprep.subr.mxu1 %v7815_v25 }
0x1e47   :  { %v2965_v54 = vpop.permute.xlu0 %2964 }
0x1e48   :  { %v7856_v61 = vadd.f32 %v2965_v54, %v2961_v31 }
0x1e4a   :  { %6333 = vtanh.f32 %v7856_v61 }
0x1e4b   :  { %v1617_v40 = vpop.permute.xlu0 %1616 }
0x1e4c   :  { %1620 = vst.msk [vmem:[#allocation6 + $0x8] sm:$0xff] %vm577_vm2, %v1617_v40 }
0x1e53   :  { %v2985_v50 = vld [vmem:[#allocation6 + $0x8] sm:$0xff] }
0x1e57   :  { %v6334_v1 = vpop.eup %6333 }
0x1e58   :  { %v2969_v55 = vmul.f32 %v6334_v1, %v7803_v46 }
0x1e5a   :  { %2971 = vrot.lane.b32.xlu1 %v2969_v55, %s6820_s0 }
0x1e5e   :  { %3435 = vrot.lane.b32.xlu1 %v2985_v50, %s6820_s0 }
0x1ecc   :  { %v2972_v34 = vpop.permute.xlu1 %2971 }
0x1ecd   :  { %2975 = vst.msk [vmem:[#allocation5 + $0x38] sm:$0xff] %vm577_vm2, %v2972_v34  ;;  %2977 = vst.msk [vmem:[#allocation6 + $0x10] sm:$0xff] %vm577_vm2, %v2972_v34 }
0x1ed4   :  { %v2993_v5 = vld [vmem:[#allocation5 + $0x38] sm:$0xff] }
0x1ed5   :  { %5991 = vmatmul.mubr.msk.f32.gmra.mxu0 %vm577_vm2, %v2993_v5  ;;  %5999 = vmatmul.mubr.msk.f32.gmra.mxu1 %vm577_vm2, %v2993_v5 }
0x1ed6   :  { %3409 = vmatprep.mubr.f32.mxu0 %v6819_v0  ;;  %3540 = vmatprep.mubr.f32.mxu1 %v6819_v0 }
0x1ed9   :  { %6000 = vmatmul.mubr.msk.f32.vlgmr.msra.gmra.mxu0 %vm577_vm2, %v2984_v36  ;;  %v3436_v36 = vpop.permute.xlu1 %3435 }
0x1eda   :  { %3620 = vmatpush1.msra.mxu0 %v7817_v13  ;;  %3667 = vmatprep.mubr.f32.mxu0 %v6819_v0 }
0x1edb   :  { %3621 = vmatprep.subr.mxu0 %v7819_v23 }
0x1edc   :  { %3622 = vmatpush1.msra.mxu0 %v7822_v38 }
0x1edd   :  { %3623 = vmatprep.subr.mxu0 %v7826_v15 }
0x1ede   :  { %3624 = vmatpush1.msra.mxu0 %v7830_v51 }
0x1edf   :  { %3625 = vmatprep.subr.mxu0 %v7834_v41 }
0x1ee0   :  { %3626 = vmatpush1.msra.mxu0 %v7838_v29 }
0x1ee1   :  { %3627 = vmatprep.subr.mxu0 %v7842_v21 }
0x1ee2   :  { %3628 = vmatpush1.msra.mxu0 %v7846_v19 }
0x1ee3   :  { %3629 = vmatprep.subr.mxu0 %v7860_v7 }
0x1ee4   :  { %3630 = vmatpush1.msra.mxu0 %v7862_v20 }
0x1ee5   :  { %3631 = vmatprep.subr.mxu0 %v7868_v62 }
0x1ee6   :  { %3632 = vmatpush1.msra.mxu0 %v7870_v56 }
0x1ee7   :  { %3633 = vmatprep.subr.mxu0 %v7876_v57 }
0x1ee8   :  { %3634 = vmatpush1.msra.mxu0 %v7878_v49 }
0x1ee9   :  { %3873 = vmatprep.subr.mxu0 %v7815_v25 }
0x1f95   :  { %v7915_v11 = vpop.f32.mrf.mxu0  ;;  %v3299_v12 = vpop.f32.mrf.mxu1 }
0x1f96   :  { %v3324_v47 = vadd.f32 %v3299_v12, %v3113_v22 }
0x1f97   :  { %v7919_v24 = vpop.f32.mrf.mxu0  ;;  %v3301_v60 = vpop.f32.mrf.mxu1 }
0x1f98   :  { %v3325_v46 = vadd.f32 %v3301_v60, %v3115_v14 }
0x1f99   :  { %v3411_v59 = vpop.f32.mrf.mxu0 }
0x1f9a   :  { %v3416_v53 = vadd.f32 %v3411_v59, %v3324_v47 }
0x1f9b   :  { %v3413_v58 = vpop.f32.mrf.mxu0 }
0x1f9c   :  { %v6001_v37 = vmul.f32 -1.442695, %v3416_v53  ;;  %v3417_v2 = vadd.f32 %v3413_v58, %v3325_v46  ;;  %v3121_v46 = vadd.f32 %v7752_v18, %v7783_v33 }
0x1f9e   :  { %6335 = vpow2.f32 %v6001_v37  ;;  %v6002_v31 = vmul.f32 -1.442695, %v3417_v2  ;;  %v3457_v58 = vadd.f32 %v3295_v26, %v3121_v46 }
0x1fa0   :  { %6337 = vpow2.f32 %v6002_v31 }
0x1fa1   :  { %6339 = vtanh.f32 %v3417_v2 }
0x1fab   :  { %v6336_v54 = vpop.eup %6335 }
0x1fac   :  { %v3426_v1 = vadd.f32 1.0, %v6336_v54 }
0x1fad   :  { %v6338_v40 = vpop.eup %6337 }
0x1fae   :  { %v3427_v27 = vadd.f32 1.0, %v6338_v40  ;;  %v6340_v55 = vpop.eup %6339 }
0x1fb0   :  { %6341 = vrcp.f32 %v3427_v27 }
0x1fb1   :  { %6343 = vrcp.f32 %v3426_v1 }
0x1fbd   :  { %v6342_v50 = vpop.eup %6341 }
0x1fbe   :  { %v6344_v63 = vpop.eup %6343  ;;  %v3433_v34 = vsel %vm235_vm1, %v6340_v55, %v6342_v50 }
0x1fbf   :  { %v3439_v5 = vmul.f32 %v6344_v63, %v3433_v34  ;;  %v3438_v12 = vmul.f32 %v6344_v63, %v3436_v36 }
0x1fc1   :  { %3441 = vrot.lane.b32.xlu0 %v3439_v5, %s6820_s0 }
0x2033   :  { %v3442_v22 = vpop.permute.xlu0 %3441 }
0x2034   :  { %v3444_v60 = vadd.f32 %v3442_v22, %v3438_v12 }
0x2036   :  { %6345 = vtanh.f32 %v3444_v60 }
0x2043   :  { %v6346_v14 = vpop.eup %6345 }
0x2044   :  { %v3446_v47 = vmul.f32 %v6346_v14, %v3433_v34 }
0x2046   :  { %3448 = vrot.lane.b32.xlu1 %v3446_v47, %s6820_s0 }
0x20b8   :  { %v3449_v59 = vpop.permute.xlu1 %3448 }
0x20b9   :  { %3451 = vst.msk [vmem:[#allocation4] sm:$0xff] %vm577_vm2, %v3449_v59  ;;  %6003 = vmatmul.mubr.msk.f32.vlgmr.msra.gmra.mxu1 %vm577_vm2, %v3449_v59 }
0x20ba   :  { %3747 = vmatpush1.msra.mxu1 %v7817_v13  ;;  %3794 = vmatprep.mubr.f32.mxu1 %v6819_v0 }
0x20bb   :  { %3748 = vmatprep.subr.mxu1 %v7819_v23 }
0x20bc   :  { %3749 = vmatpush1.msra.mxu1 %v7822_v38 }
0x20bd   :  { %3750 = vmatprep.subr.mxu1 %v7826_v15 }
0x20be   :  { %3751 = vmatpush1.msra.mxu1 %v7830_v51 }
0x20bf   :  { %3752 = vmatprep.subr.mxu1 %v7834_v41 }
0x20c0   :  { %3753 = vmatpush1.msra.mxu1 %v7838_v29 }
0x20c1   :  { %3754 = vmatprep.subr.mxu1 %v7842_v21 }
0x20c2   :  { %3755 = vmatpush1.msra.mxu1 %v7846_v19 }
0x20c3   :  { %3756 = vmatprep.subr.mxu1 %v7860_v7 }
0x20c4   :  { %3757 = vmatpush1.msra.mxu1 %v7862_v20 }
0x20c5   :  { %3758 = vmatprep.subr.mxu1 %v7868_v62 }
0x20c6   :  { %3759 = vmatpush1.msra.mxu1 %v7870_v56 }
0x20c7   :  { %3760 = vmatprep.subr.mxu1 %v7876_v57 }
0x20c8   :  { %3761 = vmatpush1.msra.mxu1 %v7878_v49 }
0x20c9   :  { %4000 = vmatprep.subr.mxu1 %v7815_v25 }
0x2179   :  { %v3542_v53 = vpop.f32.mrf.mxu1 }
0x217a   :  { %v3547_v37 = vadd.f32 %v3542_v53, %v7811_v48 }
0x217b   :  { %v3544_v2 = vpop.f32.mrf.mxu1 }
0x217c   :  { %v6004_v31 = vmul.f32 -1.442695, %v3547_v37  ;;  %v3548_v54 = vadd.f32 %v3544_v2, %v3457_v58 }
0x217e   :  { %6347 = vpow2.f32 %v6004_v31  ;;  %v6005_v40 = vmul.f32 -1.442695, %v3548_v54 }
0x2180   :  { %6349 = vpow2.f32 %v6005_v40 }
0x2181   :  { %6351 = vtanh.f32 %v3548_v54 }
0x218b   :  { %v6348_v1 = vpop.eup %6347 }
0x218c   :  { %v3557_v55 = vadd.f32 1.0, %v6348_v1 }
0x218d   :  { %v6350_v27 = vpop.eup %6349 }
0x218e   :  { %v3558_v50 = vadd.f32 1.0, %v6350_v27  ;;  %v6352_v63 = vpop.eup %6351 }
0x2190   :  { %6353 = vrcp.f32 %v3558_v50 }
0x2191   :  { %6355 = vrcp.f32 %v3557_v55 }
0x219d   :  { %v6354_v34 = vpop.eup %6353 }
0x219e   :  { %v6356_v18 = vpop.eup %6355  ;;  %v3564_v26 = vsel %vm235_vm1, %v6352_v63, %v6354_v34 }
0x219f   :  { %v3566_v48 = vmul.f32 %v6356_v18, %v3564_v26  ;;  %v3565_v5 = vmul.f32 %v6356_v18, %v3444_v60 }
0x21a1   :  { %3568 = vrot.lane.b32.xlu0 %v3566_v48, %s6820_s0 }
0x2213   :  { %v3569_v36 = vpop.permute.xlu0 %3568 }
0x2214   :  { %v3571_v12 = vadd.f32 %v3569_v36, %v3565_v5 }
0x2216   :  { %6357 = vtanh.f32 %v3571_v12 }
0x2223   :  { %v6358_v22 = vpop.eup %6357 }
0x2224   :  { %v3573_v14 = vmul.f32 %v6358_v22, %v3564_v26 }
0x2226   :  { %3575 = vrot.lane.b32.xlu1 %v3573_v14, %s6820_s0 }
0x2298   :  { %v3576_v47 = vpop.permute.xlu1 %3575 }
0x2299   :  { %3578 = vst.msk [vmem:[#allocation4 + $0x8] sm:$0xff] %vm577_vm2, %v3576_v47  ;;  %6006 = vmatmul.mubr.msk.f32.vlgmr.msra.gmra.mxu0 %vm577_vm2, %v3576_v47 }
0x229a   :  { %3874 = vmatpush1.msra.mxu0 %v7817_v13  ;;  %3921 = vmatprep.mubr.f32.mxu0 %v6819_v0 }
0x229b   :  { %3875 = vmatprep.subr.mxu0 %v7819_v23 }
0x229c   :  { %3876 = vmatpush1.msra.mxu0 %v7822_v38 }
0x229d   :  { %3877 = vmatprep.subr.mxu0 %v7826_v15 }
0x229e   :  { %3878 = vmatpush1.msra.mxu0 %v7830_v51 }
0x229f   :  { %3879 = vmatprep.subr.mxu0 %v7834_v41 }
0x22a0   :  { %3880 = vmatpush1.msra.mxu0 %v7838_v29 }
0x22a1   :  { %3881 = vmatprep.subr.mxu0 %v7842_v21 }
0x22a2   :  { %3882 = vmatpush1.msra.mxu0 %v7846_v19 }
0x22a3   :  { %3883 = vmatprep.subr.mxu0 %v7860_v7 }
0x22a4   :  { %3884 = vmatpush1.msra.mxu0 %v7862_v20 }
0x22a5   :  { %3885 = vmatprep.subr.mxu0 %v7868_v62 }
0x22a6   :  { %3886 = vmatpush1.msra.mxu0 %v7870_v56 }
0x22a7   :  { %3887 = vmatprep.subr.mxu0 %v7876_v57 }
0x22a8   :  { %3888 = vmatpush1.msra.mxu0 %v7878_v49 }
0x22a9   :  { %4127 = vmatprep.subr.mxu0 %v7815_v25 }
0x2359   :  { %v3669_v60 = vpop.f32.mrf.mxu0 }
0x235a   :  { %v3674_v59 = vadd.f32 %v3669_v60, %v7799_v4 }
0x235b   :  { %v3671_v46 = vpop.f32.mrf.mxu0 }
0x235c   :  { %v6007_v53 = vmul.f32 -1.442695, %v3674_v59  ;;  %v3675_v58 = vadd.f32 %v3671_v46, %v7808_v9 }
0x235e   :  { %6359 = vpow2.f32 %v6007_v53  ;;  %v6008_v37 = vmul.f32 -1.442695, %v3675_v58 }
0x2360   :  { %6361 = vpow2.f32 %v6008_v37 }
0x2361   :  { %6363 = vtanh.f32 %v3675_v58 }
0x236b   :  { %v6360_v2 = vpop.eup %6359 }
0x236c   :  { %v3684_v54 = vadd.f32 1.0, %v6360_v2 }
0x236d   :  { %v6362_v31 = vpop.eup %6361 }
0x236e   :  { %v3685_v40 = vadd.f32 1.0, %v6362_v31  ;;  %v6364_v1 = vpop.eup %6363 }
0x2370   :  { %6365 = vrcp.f32 %v3685_v40 }
0x2371   :  { %6367 = vrcp.f32 %v3684_v54 }
0x237d   :  { %v6366_v27 = vpop.eup %6365 }
0x237e   :  { %v6368_v55 = vpop.eup %6367  ;;  %v3691_v4 = vsel %vm235_vm1, %v6364_v1, %v6366_v27 }
0x237f   :  { %v3693_v50 = vmul.f32 %v6368_v55, %v3691_v4  ;;  %v3692_v9 = vmul.f32 %v6368_v55, %v3571_v12 }
0x2381   :  { %3695 = vrot.lane.b32.xlu0 %v3693_v50, %s6820_s0 }
0x23f3   :  { %v3696_v63 = vpop.permute.xlu0 %3695 }
0x23f4   :  { %v3698_v34 = vadd.f32 %v3696_v63, %v3692_v9 }
0x23f6   :  { %6369 = vtanh.f32 %v3698_v34 }
0x2403   :  { %v6370_v18 = vpop.eup %6369 }
0x2404   :  { %v3700_v26 = vmul.f32 %v6370_v18, %v3691_v4 }
0x2406   :  { %3702 = vrot.lane.b32.xlu1 %v3700_v26, %s6820_s0 }
0x2478   :  { %v3703_v48 = vpop.permute.xlu1 %3702 }
0x2479   :  { %3705 = vst.msk [vmem:[#allocation4 + $0x10] sm:$0xff] %vm577_vm2, %v3703_v48  ;;  %6009 = vmatmul.mubr.msk.f32.vlgmr.msra.gmra.mxu1 %vm577_vm2, %v3703_v48 }
0x247a   :  { %4001 = vmatpush1.msra.mxu1 %v7817_v13  ;;  %4048 = vmatprep.mubr.f32.mxu1 %v6819_v0 }
0x247b   :  { %4002 = vmatprep.subr.mxu1 %v7819_v23 }
0x247c   :  { %4003 = vmatpush1.msra.mxu1 %v7822_v38 }
0x247d   :  { %4004 = vmatprep.subr.mxu1 %v7826_v15 }
0x247e   :  { %4005 = vmatpush1.msra.mxu1 %v7830_v51 }
0x247f   :  { %4006 = vmatprep.subr.mxu1 %v7834_v41 }
0x2480   :  { %4007 = vmatpush1.msra.mxu1 %v7838_v29 }
0x2481   :  { %4008 = vmatprep.subr.mxu1 %v7842_v21 }
0x2482   :  { %4009 = vmatpush1.msra.mxu1 %v7846_v19 }
0x2483   :  { %4010 = vmatprep.subr.mxu1 %v7860_v7 }
0x2484   :  { %4011 = vmatpush1.msra.mxu1 %v7862_v20 }
0x2485   :  { %4012 = vmatprep.subr.mxu1 %v7868_v62 }
0x2486   :  { %4013 = vmatpush1.msra.mxu1 %v7870_v56 }
0x2487   :  { %4014 = vmatprep.subr.mxu1 %v7876_v57 }
0x2488   :  { %4015 = vmatpush1.msra.mxu1 %v7878_v49 }
0x2489   :  { %4254 = vmatprep.subr.mxu1 %v7815_v25 }
0x2539   :  { %v3796_v5 = vpop.f32.mrf.mxu1 }
0x253a   :  { %v3801_v36 = vadd.f32 %v3796_v5, %v7793_v6 }
0x253b   :  { %v3798_v12 = vpop.f32.mrf.mxu1 }
0x253c   :  { %v6010_v22 = vmul.f32 -1.442695, %v3801_v36  ;;  %v3802_v14 = vadd.f32 %v3798_v12, %v7796_v28 }
0x253e   :  { %6371 = vpow2.f32 %v6010_v22  ;;  %v6011_v47 = vmul.f32 -1.442695, %v3802_v14 }
0x2540   :  { %6373 = vpow2.f32 %v6011_v47 }
0x2541   :  { %6375 = vtanh.f32 %v3802_v14 }
0x254b   :  { %v6372_v60 = vpop.eup %6371 }
0x254c   :  { %v3811_v46 = vadd.f32 1.0, %v6372_v60 }
0x254d   :  { %v6374_v59 = vpop.eup %6373 }
0x254e   :  { %v3812_v53 = vadd.f32 1.0, %v6374_v59  ;;  %v6376_v58 = vpop.eup %6375 }
0x2550   :  { %6377 = vrcp.f32 %v3812_v53 }
0x2551   :  { %6379 = vrcp.f32 %v3811_v46 }
0x255d   :  { %v6378_v37 = vpop.eup %6377 }
0x255e   :  { %v6380_v25 = vpop.eup %6379  ;;  %v3818_v6 = vsel %vm235_vm1, %v6376_v58, %v6378_v37 }
0x255f   :  { %v3820_v2 = vmul.f32 %v6380_v25, %v3818_v6  ;;  %v3819_v28 = vmul.f32 %v6380_v25, %v3698_v34 }
0x2561   :  { %3822 = vrot.lane.b32.xlu0 %v3820_v2, %s6820_s0 }
0x25d3   :  { %v3823_v31 = vpop.permute.xlu0 %3822 }
0x25d4   :  { %v3825_v54 = vadd.f32 %v3823_v31, %v3819_v28  ;;  %v4365_v28 = vld [vmem:[#allocation21 + $0x70] sm:$0xff] }
0x25d6   :  { %6381 = vtanh.f32 %v3825_v54 }
0x25e3   :  { %v6382_v40 = vpop.eup %6381 }
0x25e4   :  { %v3827_v1 = vmul.f32 %v6382_v40, %v3818_v6  ;;  %v4363_v40 = vld [vmem:[#allocation21 + $0x60] sm:$0xff] }
0x25e6   :  { %3829 = vrot.lane.b32.xlu1 %v3827_v1, %s6820_s0  ;;  %v4362_v1 = vld [vmem:[#allocation21 + $0x58] sm:$0xff] }
0x2658   :  { %v3830_v27 = vpop.permute.xlu1 %3829 }
0x2659   :  { %3832 = vst.msk [vmem:[#allocation4 + $0x18] sm:$0xff] %vm577_vm2, %v3830_v27  ;;  %6012 = vmatmul.mubr.msk.f32.vlgmr.msra.gmra.mxu0 %vm577_vm2, %v3830_v27  ;;  %v4361_v27 = vld [vmem:[#allocation21 + $0x50] sm:$0xff] }
0x265a   :  { %4128 = vmatpush1.msra.mxu0 %v7817_v13  ;;  %4175 = vmatprep.mubr.f32.mxu0 %v6819_v0 }
0x265b   :  { %4129 = vmatprep.subr.mxu0 %v7819_v23 }
0x265c   :  { %4130 = vmatpush1.msra.mxu0 %v7822_v38 }
0x265d   :  { %4131 = vmatprep.subr.mxu0 %v7826_v15 }
0x265e   :  { %4132 = vmatpush1.msra.mxu0 %v7830_v51 }
0x265f   :  { %4133 = vmatprep.subr.mxu0 %v7834_v41 }
0x2660   :  { %4134 = vmatpush1.msra.mxu0 %v7838_v29 }
0x2661   :  { %4135 = vmatprep.subr.mxu0 %v7842_v21 }
0x2662   :  { %4136 = vmatpush1.msra.mxu0 %v7846_v19 }
0x2663   :  { %4137 = vmatprep.subr.mxu0 %v7860_v7 }
0x2664   :  { %4138 = vmatpush1.msra.mxu0 %v7862_v20 }
0x2665   :  { %4139 = vmatprep.subr.mxu0 %v7868_v62 }
0x2666   :  { %4140 = vmatpush1.msra.mxu0 %v7870_v56 }
0x2667   :  { %4141 = vmatprep.subr.mxu0 %v7876_v57 }
0x2668   :  { %4142 = vmatpush1.msra.mxu0 %v7878_v49 }
0x2719   :  { %v3923_v55 = vpop.f32.mrf.mxu0 }
0x271a   :  { %v3928_v4 = vadd.f32 %v3923_v55, %v7787_v32  ;;  %v4360_v55 = vld [vmem:[#allocation21 + $0x48] sm:$0xff] }
0x271b   :  { %v3925_v50 = vpop.f32.mrf.mxu0 }
0x271c   :  { %v6013_v9 = vmul.f32 -1.442695, %v3928_v4  ;;  %v3929_v63 = vadd.f32 %v3925_v50, %v7790_v30  ;;  %v4359_v4 = vld [vmem:[#allocation21 + $0x40] sm:$0xff]  ;;  %v4358_v50 = vld [vmem:[#allocation21 + $0x38] sm:$0xff] }
0x271e   :  { %6383 = vpow2.f32 %v6013_v9  ;;  %v6014_v34 = vmul.f32 -1.442695, %v3929_v63  ;;  %v4357_v9 = vld [vmem:[#allocation21 + $0x30] sm:$0xff] }
0x2720   :  { %6385 = vpow2.f32 %v6014_v34  ;;  %v4355_v34 = vld [vmem:[#allocation21 + $0x20] sm:$0xff] }
0x2721   :  { %6387 = vtanh.f32 %v3929_v63  ;;  %v4356_v63 = vld [vmem:[#allocation21 + $0x28] sm:$0xff] }
0x272b   :  { %v6384_v18 = vpop.eup %6383 }
0x272c   :  { %v3938_v48 = vadd.f32 1.0, %v6384_v18  ;;  %v4354_v18 = vld [vmem:[#allocation21 + $0x18] sm:$0xff] }
0x272d   :  { %v6386_v26 = vpop.eup %6385 }
0x272e   :  { %v3939_v5 = vadd.f32 1.0, %v6386_v26  ;;  %v6388_v36 = vpop.eup %6387  ;;  %v4353_v26 = vld [vmem:[#allocation21 + $0x10] sm:$0xff] }
0x2730   :  { %6389 = vrcp.f32 %v3939_v5  ;;  %v4351_v5 = vld [vmem:[#allocation21] sm:$0xff] }
0x2731   :  { %6391 = vrcp.f32 %v3938_v48  ;;  %v4352_v48 = vld [vmem:[#allocation21 + $0x8] sm:$0xff] }
0x273d   :  { %v6390_v12 = vpop.eup %6389 }
0x273e   :  { %v6392_v22 = vpop.eup %6391  ;;  %v3945_v32 = vsel %vm235_vm1, %v6388_v36, %v6390_v12  ;;  %v8059_v36 = vld [vmem:[#allocation4] sm:$0xff]  ;;  %v8064_v12 = vld [vmem:[#allocation4 + $0x8] sm:$0xff] }
0x273f   :  { %v3947_v14 = vmul.f32 %v6392_v22, %v3945_v32  ;;  %v3946_v30 = vmul.f32 %v6392_v22, %v3825_v54  ;;  %v4364_v54 = vld [vmem:[#allocation21 + $0x68] sm:$0xff]  ;;  %v8069_v22 = vld [vmem:[#allocation4 + $0x10] sm:$0xff] }
0x2741   :  { %3949 = vrot.lane.b32.xlu0 %v3947_v14, %s6820_s0 }
0x27b3   :  { %v3950_v47 = vpop.permute.xlu0 %3949 }
0x27b4   :  { %v3952_v60 = vadd.f32 %v3950_v47, %v3946_v30  ;;  %v3151_v47 = vadd.f32 %v7913_v43, %v7783_v33 }
0x27b6   :  { %6393 = vtanh.f32 %v3952_v60 }
0x27c3   :  { %v6394_v59 = vpop.eup %6393 }
0x27c4   :  { %v3954_v46 = vmul.f32 %v6394_v59, %v3945_v32  ;;  %v8074_v32 = vld [vmem:[#allocation4 + $0x18] sm:$0xff]  ;;  %v4092_v59 = vadd.f32 %v7775_v3, %v3151_v47 }
0x27c6   :  { %3956 = vrot.lane.b32.xlu1 %v3954_v46, %s6820_s0 }
0x2838   :  { %v3957_v53 = vpop.permute.xlu1 %3956 }
0x2839   :  { %3959 = vst.msk [vmem:[#allocation4 + $0x20] sm:$0xff] %vm577_vm2, %v3957_v53  ;;  %6015 = vmatmul.mubr.msk.f32.vlgmr.msra.gmra.mxu1 %vm577_vm2, %v3957_v53 }
0x283a   :  { %4255 = vmatpush1.msra.mxu1 %v7817_v13  ;;  %4302 = vmatprep.mubr.f32.mxu1 %v6819_v0  ;;  %v3145_v13 = vadd.f32 %v7763_v8, %v7783_v33 }
0x283b   :  { %4256 = vmatprep.subr.mxu1 %v7819_v23 }
0x283c   :  { %4257 = vmatpush1.msra.mxu1 %v7822_v38  ;;  %v3965_v38 = vadd.f32 %v7780_v17, %v3145_v13 }
0x283d   :  { %4258 = vmatprep.subr.mxu1 %v7826_v15 }
0x283e   :  { %4259 = vmatpush1.msra.mxu1 %v7830_v51 }
0x283f   :  { %4260 = vmatprep.subr.mxu1 %v7834_v41 }
0x2840   :  { %4261 = vmatpush1.msra.mxu1 %v7838_v29  ;;  %v8079_v14 = vld [vmem:[#allocation4 + $0x20] sm:$0xff] }
0x2841   :  { %4262 = vmatprep.subr.mxu1 %v7842_v21 }
0x2842   :  { %4263 = vmatpush1.msra.mxu1 %v7846_v19 }
0x2843   :  { %4264 = vmatprep.subr.mxu1 %v7860_v7 }
0x2844   :  { %4265 = vmatpush1.msra.mxu1 %v7862_v20 }
0x2845   :  { %4266 = vmatprep.subr.mxu1 %v7868_v62 }
0x2846   :  { %4267 = vmatpush1.msra.mxu1 %v7870_v56 }
0x2847   :  { %4268 = vmatprep.subr.mxu1 %v7876_v57 }
0x2848   :  { %4269 = vmatpush1.msra.mxu1 %v7878_v49  ;;  %v4366_v49 = vld [vmem:[#allocation21 + $0x78] sm:$0xff] }
0x2849   :  { %4419 = vmatprep.subr.mxu0 %v4366_v49  ;;  %v4545_v49 = vld [vmem:[#allocation22 + $0x68] sm:$0xff] }
0x28f9   :  { %v4050_v23 = vpop.f32.mrf.mxu1 }
0x28fa   :  { %v4055_v15 = vadd.f32 %v4050_v23, %v7778_v44 }
0x28fb   :  { %v4052_v51 = vpop.f32.mrf.mxu1 }
0x28fc   :  { %v6016_v41 = vmul.f32 -1.442695, %v4055_v15  ;;  %v4056_v29 = vadd.f32 %v4052_v51, %v3965_v38 }
0x28fe   :  { %6395 = vpow2.f32 %v6016_v41  ;;  %v6017_v21 = vmul.f32 -1.442695, %v4056_v29 }
0x2900   :  { %6397 = vpow2.f32 %v6017_v21 }
0x2901   :  { %6399 = vtanh.f32 %v4056_v29 }
0x290b   :  { %v6396_v19 = vpop.eup %6395 }
0x290c   :  { %v4065_v20 = vadd.f32 1.0, %v6396_v19 }
0x290d   :  { %v6398_v7 = vpop.eup %6397 }
0x290e   :  { %v4066_v62 = vadd.f32 1.0, %v6398_v7  ;;  %v6400_v56 = vpop.eup %6399  ;;  %v4547_v7 = vld [vmem:[#allocation22 + $0x78] sm:$0xff] }
0x290f   :  { %4564 = vmatprep.subr.mxu1 %v4547_v7 }
0x2910   :  { %6401 = vrcp.f32 %v4066_v62 }
0x2911   :  { %6403 = vrcp.f32 %v4065_v20 }
0x291d   :  { %v6402_v8 = vpop.eup %6401 }
0x291e   :  { %v6404_v57 = vpop.eup %6403  ;;  %v4072_v17 = vsel %vm235_vm1, %v6400_v56, %v6402_v8 }
0x291f   :  { %v4074_v44 = vmul.f32 %v6404_v57, %v4072_v17  ;;  %v4073_v58 = vmul.f32 %v6404_v57, %v3952_v60 }
0x2921   :  { %4076 = vrot.lane.b32.xlu0 %v4074_v44, %s6820_s0 }
0x2993   :  { %v4077_v37 = vpop.permute.xlu0 %4076 }
0x2994   :  { %v8052_v25 = vadd.f32 %v4077_v37, %v4073_v58  ;;  %v4544_v58 = vld [vmem:[#allocation22 + $0x60] sm:$0xff]  ;;  %v4543_v37 = vld [vmem:[#allocation22 + $0x58] sm:$0xff] }
0x2996   :  { %6405 = vtanh.f32 %v8052_v25 }
0x29a3   :  { %v6406_v6 = vpop.eup %6405 }
0x29a4   :  { %v4081_v2 = vmul.f32 %v6406_v6, %v4072_v17  ;;  %v4546_v17 = vld [vmem:[#allocation22 + $0x70] sm:$0xff]  ;;  %v4541_v6 = vld [vmem:[#allocation22 + $0x48] sm:$0xff] }
0x29a6   :  { %4083 = vrot.lane.b32.xlu1 %v4081_v2, %s6820_s0  ;;  %v4540_v2 = vld [vmem:[#allocation22 + $0x40] sm:$0xff] }
0x2a18   :  { %v4084_v31 = vpop.permute.xlu1 %4083 }
0x2a19   :  { %4086 = vst.msk [vmem:[#allocation4 + $0x28] sm:$0xff] %vm577_vm2, %v4084_v31  ;;  %6018 = vmatmul.mubr.msk.f32.vlgmr.msra.gmra.mxu0 %vm577_vm2, %v4084_v31  ;;  %v4538_v31 = vld [vmem:[#allocation22 + $0x30] sm:$0xff] }
0x2a1a   :  { %4420 = vmatpush1.msra.mxu0 %v4365_v28  ;;  %4467 = vmatprep.mubr.f32.mxu0 %v6819_v0  ;;  %v4539_v28 = vld [vmem:[#allocation22 + $0x38] sm:$0xff] }
0x2a1b   :  { %4421 = vmatprep.subr.mxu0 %v4364_v54 }
0x2a1c   :  { %4422 = vmatpush1.msra.mxu0 %v4363_v40  ;;  %v4537_v40 = vld [vmem:[#allocation22 + $0x28] sm:$0xff] }
0x2a1d   :  { %4423 = vmatprep.subr.mxu0 %v4362_v1  ;;  %v4536_v1 = vld [vmem:[#allocation22 + $0x20] sm:$0xff] }
0x2a1e   :  { %4424 = vmatpush1.msra.mxu0 %v4361_v27  ;;  %v4535_v27 = vld [vmem:[#allocation22 + $0x18] sm:$0xff] }
0x2a1f   :  { %4425 = vmatprep.subr.mxu0 %v4360_v55  ;;  %v4534_v55 = vld [vmem:[#allocation22 + $0x10] sm:$0xff] }
0x2a20   :  { %4426 = vmatpush1.msra.mxu0 %v4359_v4  ;;  %v8084_v30 = vld [vmem:[#allocation4 + $0x28] sm:$0xff] }
0x2a21   :  { %4427 = vmatprep.subr.mxu0 %v4358_v50  ;;  %v4533_v4 = vld [vmem:[#allocation22 + $0x8] sm:$0xff]  ;;  %v4532_v50 = vld [vmem:[#allocation22] sm:$0xff] }
0x2a22   :  { %4428 = vmatpush1.msra.mxu0 %v4357_v9 }
0x2a23   :  { %4429 = vmatprep.subr.mxu0 %v4356_v63 }
0x2a24   :  { %4430 = vmatpush1.msra.mxu0 %v4355_v34 }
0x2a25   :  { %4431 = vmatprep.subr.mxu0 %v4354_v18 }
0x2a26   :  { %4432 = vmatpush1.msra.mxu0 %v4353_v26 }
0x2a27   :  { %4433 = vmatprep.subr.mxu0 %v4352_v48 }
0x2a28   :  { %4434 = vmatpush1.msra.mxu0 %v4351_v5 }
0x2a29   :  { %6024 = vmatmul.mubr.msk.f32.vlgmr.msra.gmra.mxu0 %vm577_vm2, %v8059_v36 }
0x2a2a   :  { %4473 = vmatprep.mubr.f32.mxu0 %v6819_v0 }
0x2a2d   :  { %6025 = vmatmul.mubr.msk.f32.gmra.mxu0 %vm577_vm2, %v8064_v12 }
0x2a2e   :  { %4479 = vmatprep.mubr.f32.mxu0 %v6819_v0 }
0x2a31   :  { %6026 = vmatmul.mubr.msk.f32.gmra.mxu0 %vm577_vm2, %v8069_v22 }
0x2a32   :  { %4485 = vmatprep.mubr.f32.mxu0 %v6819_v0 }
0x2a35   :  { %6027 = vmatmul.mubr.msk.f32.gmra.mxu0 %vm577_vm2, %v8074_v32 }
0x2a36   :  { %4491 = vmatprep.mubr.f32.mxu0 %v6819_v0 }
0x2a39   :  { %6028 = vmatmul.mubr.msk.f32.gmra.mxu0 %vm577_vm2, %v8079_v14 }
0x2a3a   :  { %4497 = vmatprep.mubr.f32.mxu0 %v6819_v0 }
0x2a3d   :  { %6029 = vmatmul.mubr.msk.f32.gmra.mxu0 %vm577_vm2, %v8084_v30 }
0x2a3e   :  { %4503 = vmatprep.mubr.f32.mxu0 %v6819_v0 }
0x2ad9   :  { %v4177_v60 = vpop.f32.mrf.mxu0 }
0x2ada   :  { %v4182_v46 = vadd.f32 %v4177_v60, %v7773_v52 }
0x2adb   :  { %v4179_v53 = vpop.f32.mrf.mxu0 }
0x2adc   :  { %v6019_v13 = vmul.f32 -1.442695, %v4182_v46  ;;  %v4183_v23 = vadd.f32 %v4179_v53, %v4092_v59 }
0x2ade   :  { %6407 = vpow2.f32 %v6019_v13  ;;  %v6020_v38 = vmul.f32 -1.442695, %v4183_v23 }
0x2ae0   :  { %6409 = vpow2.f32 %v6020_v38 }
0x2ae1   :  { %6411 = vtanh.f32 %v4183_v23 }
0x2ae9   :  { %v8126_v9 = vpop.f32.mrf.mxu0 }
0x2aeb   :  { %v6408_v15 = vpop.eup %6407  ;;  %v8128_v63 = vpop.f32.mrf.mxu0 }
0x2aec   :  { %v4192_v41 = vadd.f32 1.0, %v6408_v15 }
0x2aed   :  { %v6410_v51 = vpop.eup %6409  ;;  %v8130_v34 = vpop.f32.mrf.mxu0 }
0x2aee   :  { %v4193_v29 = vadd.f32 1.0, %v6410_v51  ;;  %v6412_v21 = vpop.eup %6411 }
0x2aef   :  { %v8132_v18 = vpop.f32.mrf.mxu0 }
0x2af0   :  { %6413 = vrcp.f32 %v4193_v29 }
0x2af1   :  { %6415 = vrcp.f32 %v4192_v41  ;;  %v4481_v26 = vpop.f32.mrf.mxu0 }
0x2af3   :  { %v4483_v48 = vpop.f32.mrf.mxu0 }
0x2af5   :  { %v4487_v5 = vpop.f32.mrf.mxu0 }
0x2afd   :  { %v6414_v43 = vpop.eup %6413 }
0x2afe   :  { %v6416_v19 = vpop.eup %6415  ;;  %v4199_v3 = vsel %vm235_vm1, %v6412_v21, %v6414_v43 }
0x2aff   :  { %v4201_v52 = vmul.f32 %v6416_v19, %v4199_v3  ;;  %v4200_v20 = vmul.f32 %v6416_v19, %v8052_v25  ;;  %v4542_v25 = vld [vmem:[#allocation22 + $0x50] sm:$0xff] }
0x2b01   :  { %4203 = vrot.lane.b32.xlu0 %v4201_v52, %s6820_s0 }
0x2b73   :  { %v4204_v62 = vpop.permute.xlu0 %4203 }
0x2b74   :  { %v8097_v56 = vadd.f32 %v4204_v62, %v4200_v20 }
0x2b76   :  { %6417 = vtanh.f32 %v8097_v56 }
0x2b83   :  { %v6418_v8 = vpop.eup %6417 }
0x2b84   :  { %v4208_v57 = vmul.f32 %v6418_v8, %v4199_v3 }
0x2b86   :  { %4210 = vrot.lane.b32.xlu1 %v4208_v57, %s6820_s0 }
0x2bf8   :  { %v4211_v44 = vpop.permute.xlu1 %4210 }
0x2bf9   :  { %4213 = vst.msk [vmem:[#allocation4 + $0x30] sm:$0xff] %vm577_vm2, %v4211_v44  ;;  %6021 = vmatmul.mubr.msk.f32.vlgmr.msra.gmra.mxu1 %vm577_vm2, %v4211_v44 }
0x2bfa   :  { %4565 = vmatpush1.msra.mxu1 %v4546_v17  ;;  %4612 = vmatprep.mubr.f32.mxu1 %v6819_v0 }
0x2bfb   :  { %4566 = vmatprep.subr.mxu1 %v4545_v49 }
0x2bfc   :  { %4567 = vmatpush1.msra.mxu1 %v4544_v58 }
0x2bfd   :  { %4568 = vmatprep.subr.mxu1 %v4543_v37 }
0x2bfe   :  { %4569 = vmatpush1.msra.mxu1 %v4542_v25 }
0x2bff   :  { %4570 = vmatprep.subr.mxu1 %v4541_v6 }
0x2c00   :  { %4571 = vmatpush1.msra.mxu1 %v4540_v2  ;;  %v4349_v54 = vld [vmem:[#allocation4 + $0x30] sm:$0xff] }
0x2c01   :  { %4572 = vmatprep.subr.mxu1 %v4539_v28  ;;  %6030 = vmatmul.mubr.msk.f32.gmra.mxu0 %vm577_vm2, %v4349_v54 }
0x2c02   :  { %4573 = vmatpush1.msra.mxu1 %v4538_v31  ;;  %4509 = vmatprep.mubr.f32.mxu0 %v6819_v0 }
0x2c03   :  { %4574 = vmatprep.subr.mxu1 %v4537_v40 }
0x2c04   :  { %4575 = vmatpush1.msra.mxu1 %v4536_v1 }
0x2c05   :  { %4576 = vmatprep.subr.mxu1 %v4535_v27 }
0x2c06   :  { %4577 = vmatpush1.msra.mxu1 %v4534_v55 }
0x2c07   :  { %4578 = vmatprep.subr.mxu1 %v4533_v4 }
0x2c08   :  { %4579 = vmatpush1.msra.mxu1 %v4532_v50 }
0x2c09   :  { %6032 = vmatmul.mubr.msk.f32.vlgmr.msra.gmra.mxu1 %vm577_vm2, %v8059_v36  ;;  %v3155_v36 = vadd.f32 %v7915_v11, %v7768_v10  ;;  %v4367_v10 = vld [vmem:[%s8523_s16] sm:$0x3] }
0x2c0a   :  { %4618 = vmatprep.mubr.f32.mxu1 %v6819_v0  ;;  %v8163_v62 = vrot.slane %v4367_v10, %v7159_v39 }
0x2c0c   :  { %v4484_v55 = vadd.f32 %v4483_v48, %v8163_v62  ;;  %v8195_v48 = vld [vmem:[#allocation24 + $0x78] sm:$0xff] }
0x2c0d   :  { %6033 = vmatmul.mubr.msk.f32.gmra.mxu1 %vm577_vm2, %v8064_v12  ;;  %v3157_v12 = vadd.f32 %v7919_v24, %v7783_v33  ;;  %4718 = vmatprep.subr.mxu0 %v8195_v48 }
0x2c0e   :  { %4624 = vmatprep.mubr.f32.mxu1 %v6819_v0  ;;  %4849 = vmatprep.subr.mxu1 %v8195_v48 }
0x2c0f   :  { %v4219_v47 = vadd.f32 %v7770_v16, %v3157_v12  ;;  %v8148_v16 = vrot.slane %v4367_v10, %v7152_v35 }
0x2c11   :  { %6034 = vmatmul.mubr.msk.f32.gmra.mxu1 %vm577_vm2, %v8069_v22  ;;  %v4489_v22 = vpop.f32.mrf.mxu0  ;;  %v4488_v58 = vadd.f32 %v4487_v5, %v8148_v16  ;;  %v4482_v31 = vadd.f32 %v4481_v26, %v8148_v16  ;;  %v4476_v12 = vadd.f32 %v8130_v34, %v8148_v16  ;;  %v8206_v34 = vld [vmem:[#allocation24 + $0x58] sm:$0xff] }
0x2c12   :  { %4630 = vmatprep.mubr.f32.mxu1 %v6819_v0  ;;  %v4490_v6 = vadd.f32 %v4489_v22, %v8163_v62 }
0x2c13   :  { %v4493_v60 = vpop.f32.mrf.mxu0 }
0x2c14   :  { %v4494_v8 = vadd.f32 %v4493_v60, %v8148_v16  ;;  %v8214_v60 = vld [vmem:[#allocation24 + $0x48] sm:$0xff] }
0x2c15   :  { %6035 = vmatmul.mubr.msk.f32.gmra.mxu1 %vm577_vm2, %v8074_v32  ;;  %v4218_v32 = vadd.f32 %v7765_v42, %v3155_v36  ;;  %v4495_v23 = vpop.f32.mrf.mxu0 }
0x2c16   :  { %4636 = vmatprep.mubr.f32.mxu1 %v6819_v0  ;;  %v4496_v17 = vadd.f32 %v4495_v23, %v8163_v62 }
0x2c17   :  { %v4499_v38 = vpop.f32.mrf.mxu0 }
0x2c18   :  { %v4500_v52 = vadd.f32 %v4499_v38, %v8148_v16 }
0x2c19   :  { %6036 = vmatmul.mubr.msk.f32.gmra.mxu1 %vm577_vm2, %v8079_v14  ;;  %v8143_v33 = vpop.f32.mrf.mxu0 }
0x2c1a   :  { %4642 = vmatprep.mubr.f32.mxu1 %v6819_v0 }
0x2c1d   :  { %6037 = vmatmul.mubr.msk.f32.gmra.mxu1 %vm577_vm2, %v8084_v30 }
0x2c1e   :  { %4648 = vmatprep.mubr.f32.mxu1 %v6819_v0 }
0x2c21   :  { %6038 = vmatmul.mubr.msk.f32.gmra.mxu1 %vm577_vm2, %v4349_v54 }
0x2c22   :  { %4654 = vmatprep.mubr.f32.mxu1 %v6819_v0 }
0x2cb9   :  { %v4304_v14 = vpop.f32.mrf.mxu1 }
0x2cba   :  { %v4309_v30 = vadd.f32 %v4304_v14, %v4218_v32  ;;  %v8197_v14 = vld [vmem:[#allocation24 + $0x70] sm:$0xff] }
0x2cbb   :  { %v4306_v59 = vpop.f32.mrf.mxu1  ;;  %4719 = vmatpush1.msra.mxu0 %v8197_v14  ;;  %4850 = vmatpush1.msra.mxu1 %v8197_v14 }
0x2cbc   :  { %v6022_v46 = vmul.f32 -1.442695, %v4309_v30  ;;  %v4310_v53 = vadd.f32 %v4306_v59, %v4219_v47  ;;  %v8199_v30 = vld [vmem:[#allocation24 + $0x68] sm:$0xff]  ;;  %v8202_v47 = vld [vmem:[#allocation24 + $0x60] sm:$0xff] }
0x2cbd   :  { %4720 = vmatprep.subr.mxu0 %v8199_v30  ;;  %4851 = vmatprep.subr.mxu1 %v8199_v30  ;;  %v8218_v59 = vld [vmem:[#allocation24 + $0x40] sm:$0xff] }
0x2cbe   :  { %6419 = vpow2.f32 %v6022_v46  ;;  %v6023_v13 = vmul.f32 -1.442695, %v4310_v53  ;;  %4721 = vmatpush1.msra.mxu0 %v8202_v47  ;;  %4852 = vmatpush1.msra.mxu1 %v8202_v47  ;;  %v8222_v46 = vld [vmem:[#allocation24 + $0x38] sm:$0xff] }
0x2cbf   :  { %4722 = vmatprep.subr.mxu0 %v8206_v34  ;;  %4853 = vmatprep.subr.mxu1 %v8206_v34 }
0x2cc0   :  { %6421 = vpow2.f32 %v6023_v13 }
0x2cc1   :  { %v4505_v42 = vpop.f32.mrf.mxu0  ;;  %6423 = vtanh.f32 %v4310_v53  ;;  %v8226_v53 = vld [vmem:[#allocation24 + $0x30] sm:$0xff] }
0x2cc2   :  { %v4506_v51 = vadd.f32 %v4505_v42, %v8148_v16  ;;  %v8237_v42 = vld [vmem:[#allocation24 + $0x28] sm:$0xff] }
0x2cc9   :  { %v8145_v11 = vpop.f32.mrf.mxu1 }
0x2ccb   :  { %v6420_v24 = vpop.eup %6419  ;;  %v8150_v15 = vpop.f32.mrf.mxu1 }
0x2ccc   :  { %v4319_v29 = vadd.f32 1.0, %v6420_v24  ;;  %v8239_v24 = vld [vmem:[#allocation24 + $0x20] sm:$0xff] }
0x2ccd   :  { %v6422_v41 = vpop.eup %6421  ;;  %v4620_v21 = vpop.f32.mrf.mxu1 }
0x2cce   :  { %v4320_v43 = vadd.f32 1.0, %v6422_v41  ;;  %v8153_v19 = vadd.f32 %v4620_v21, %v4506_v51  ;;  %v6424_v39 = vpop.eup %6423  ;;  %v8245_v51 = vld [vmem:[#allocation24 + $0x18] sm:$0xff]  ;;  %v8253_v41 = vld [vmem:[#allocation24 + $0x8] sm:$0xff] }
0x2ccf   :  { %v8155_v3 = vpop.f32.mrf.mxu1 }
0x2cd0   :  { %6425 = vrcp.f32 %v4320_v43 }
0x2cd1   :  { %6427 = vrcp.f32 %v4319_v29  ;;  %v4626_v35 = vpop.f32.mrf.mxu1  ;;  %v8255_v29 = vld [vmem:[#allocation24] sm:$0xff] }
0x2cd2   :  { %v8158_v7 = vadd.f32 %v4626_v35, %v4500_v52 }
0x2cd3   :  { %v8160_v20 = vpop.f32.mrf.mxu1 }
0x2cd5   :  { %v4632_v57 = vpop.f32.mrf.mxu1 }
0x2cd6   :  { %v8167_v44 = vadd.f32 %v4632_v57, %v4494_v8  ;;  %v4341_v57 = vld [vmem:[#allocation6 + $0x10] sm:$0xff] }
0x2cd7   :  { %v4634_v49 = vpop.f32.mrf.mxu1 }
0x2cd8   :  { %v8170_v37 = vadd.f32 %v4634_v49, %v4496_v17  ;;  %v8289_v17 = vpop.f32.mrf.mxu0 }
0x2cd9   :  { %v4638_v25 = vpop.f32.mrf.mxu1 }
0x2cda   :  { %v8173_v2 = vadd.f32 %v4638_v25, %v4488_v58 }
0x2cdb   :  { %v4640_v28 = vpop.f32.mrf.mxu1 }
0x2cdc   :  { %v8176_v54 = vadd.f32 %v4640_v28, %v4490_v6  ;;  %v4470_v6 = vadd.f32 %v8126_v9, %v8148_v16 }
0x2cdd   :  { %v6426_v40 = vpop.eup %6425  ;;  %v4644_v1 = vpop.f32.mrf.mxu1 }
0x2cde   :  { %v6428_v27 = vpop.eup %6427  ;;  %v8179_v4 = vadd.f32 %v4644_v1, %v4482_v31  ;;  %v8183_v50 = vsel %vm235_vm1, %v6424_v39, %v6426_v40  ;;  %v4472_v31 = vadd.f32 %v8128_v63, %v8163_v62 }
0x2cdf   :  { %v4646_v5 = vpop.f32.mrf.mxu1  ;;  %v4328_v36 = vmul.f32 %v6428_v27, %v8183_v50  ;;  %v4327_v13 = vmul.f32 %v6428_v27, %v8097_v56  ;;  %v8247_v56 = vld [vmem:[#allocation24 + $0x10] sm:$0xff] }
0x2ce0   :  { %v8188_v26 = vadd.f32 %v4646_v5, %v4484_v55 }
0x2ce1   :  { %v4650_v22 = vpop.f32.mrf.mxu1  ;;  %4330 = vrot.lane.b32.xlu0 %v4328_v36, %s6820_s0 }
0x2ce2   :  { %v8191_v32 = vadd.f32 %v4650_v22, %v4476_v12 }
0x2ce3   :  { %v4652_v49 = vpop.f32.mrf.mxu1 }
0x2ce5   :  { %2979 = vrot.lane.b32.xlu0 %v7856_v61, %s6820_s0  ;;  %v8210_v61 = vld [vmem:[#allocation24 + $0x50] sm:$0xff] }
0x2ce6   :  { %4723 = vmatpush1.msra.mxu0 %v8210_v61  ;;  %4854 = vmatpush1.msra.mxu1 %v8210_v61 }
0x2ce7   :  { %4724 = vmatprep.subr.mxu0 %v8214_v60  ;;  %4855 = vmatprep.subr.mxu1 %v8214_v60 }
0x2ce8   :  { %4725 = vmatpush1.msra.mxu0 %v8218_v59  ;;  %4856 = vmatpush1.msra.mxu1 %v8218_v59 }
0x2ce9   :  { %4726 = vmatprep.subr.mxu0 %v8222_v46  ;;  %4857 = vmatprep.subr.mxu1 %v8222_v46 }
0x2cea   :  { %4727 = vmatpush1.msra.mxu0 %v8226_v53  ;;  %4858 = vmatpush1.msra.mxu1 %v8226_v53 }
0x2ceb   :  { %4728 = vmatprep.subr.mxu0 %v8237_v42  ;;  %4859 = vmatprep.subr.mxu1 %v8237_v42 }
0x2cec   :  { %4729 = vmatpush1.msra.mxu0 %v8239_v24  ;;  %4860 = vmatpush1.msra.mxu1 %v8239_v24 }
0x2ced   :  { %4730 = vmatprep.subr.mxu0 %v8245_v51  ;;  %4861 = vmatprep.subr.mxu1 %v8245_v51 }
0x2cee   :  { %4731 = vmatpush1.msra.mxu0 %v8247_v56  ;;  %4862 = vmatpush1.msra.mxu1 %v8247_v56 }
0x2cef   :  { %4732 = vmatprep.subr.mxu0 %v8253_v41  ;;  %4863 = vmatprep.subr.mxu1 %v8253_v41 }
0x2cf0   :  { %4733 = vmatpush1.msra.mxu0 %v8255_v29  ;;  %4864 = vmatpush1.msra.mxu1 %v8255_v29 }
0x2cf1   :  { %4976 = vmatprep.subr.mxu0 %v8195_v48  ;;  %5103 = vmatprep.subr.mxu1 %v8195_v48 }
0x2d53   :  { %v4331_v23 = vpop.permute.xlu0 %4330 }
0x2d54   :  { %v4333_v38 = vadd.f32 %v4331_v23, %v4327_v13 }
0x2d56   :  { %6429 = vtanh.f32 %v4333_v38 }
0x2d57   :  { %v2980_v10 = vpop.permute.xlu0 %2979 }
0x2d58   :  { %2983 = vst.msk [vmem:[#allocation6 + $0x18] sm:$0xff] %vm577_vm2, %v2980_v10 }
0x2d5f   :  { %v4342_v52 = vld [vmem:[#allocation6 + $0x18] sm:$0xff] }
0x2d63   :  { %v6430_v21 = vpop.eup %6429 }
0x2d64   :  { %v4335_v43 = vmul.f32 %v6430_v21, %v8183_v50 }
0x2d66   :  { %4337 = vrot.lane.b32.xlu1 %v4335_v43, %s6820_s0 }
0x2d6a   :  { %4792 = vrot.lane.b32.xlu1 %v4342_v52, %s6820_s0 }
0x2dd8   :  { %v4338_v35 = vpop.permute.xlu1 %4337 }
0x2dd9   :  { %4340 = vst.msk [vmem:[#allocation4 + $0x38] sm:$0xff] %vm577_vm2, %v4338_v35 }
0x2ddc   :  { %v4793_v52 = vpop.permute.xlu1 %4792 }
0x2de0   :  { %v4350_v8 = vld [vmem:[#allocation4 + $0x38] sm:$0xff] }
0x2de1   :  { %6031 = vmatmul.mubr.msk.f32.gmra.mxu0 %vm577_vm2, %v4350_v8  ;;  %6039 = vmatmul.mubr.msk.f32.gmra.mxu1 %vm577_vm2, %v4350_v8 }
0x2de2   :  { %4766 = vmatprep.mubr.f32.mxu0 %v6819_v0  ;;  %4897 = vmatprep.mubr.f32.mxu1 %v6819_v0 }
0x2de5   :  { %6040 = vmatmul.mubr.msk.f32.vlgmr.msra.gmra.mxu0 %vm577_vm2, %v4341_v57 }
0x2de6   :  { %4977 = vmatpush1.msra.mxu0 %v8197_v14  ;;  %5024 = vmatprep.mubr.f32.mxu0 %v6819_v0 }
0x2de7   :  { %4978 = vmatprep.subr.mxu0 %v8199_v30 }
0x2de8   :  { %4979 = vmatpush1.msra.mxu0 %v8202_v47 }
0x2de9   :  { %4980 = vmatprep.subr.mxu0 %v8206_v34 }
0x2dea   :  { %4981 = vmatpush1.msra.mxu0 %v8210_v61 }
0x2deb   :  { %4982 = vmatprep.subr.mxu0 %v8214_v60 }
0x2dec   :  { %4983 = vmatpush1.msra.mxu0 %v8218_v59 }
0x2ded   :  { %4984 = vmatprep.subr.mxu0 %v8222_v46 }
0x2dee   :  { %4985 = vmatpush1.msra.mxu0 %v8226_v53 }
0x2def   :  { %4986 = vmatprep.subr.mxu0 %v8237_v42 }
0x2df0   :  { %4987 = vmatpush1.msra.mxu0 %v8239_v24 }
0x2df1   :  { %4988 = vmatprep.subr.mxu0 %v8245_v51 }
0x2df2   :  { %4989 = vmatpush1.msra.mxu0 %v8247_v56 }
0x2df3   :  { %4990 = vmatprep.subr.mxu0 %v8253_v41 }
0x2df4   :  { %4991 = vmatpush1.msra.mxu0 %v8255_v29 }
0x2df5   :  { %5230 = vmatprep.subr.mxu0 %v8195_v48 }
0x2ea1   :  { %v8291_v58 = vpop.f32.mrf.mxu0  ;;  %v4656_v25 = vpop.f32.mrf.mxu1 }
0x2ea2   :  { %v4681_v40 = vadd.f32 %v4656_v25, %v4470_v6 }
0x2ea3   :  { %v8295_v28 = vpop.f32.mrf.mxu0  ;;  %v4658_v39 = vpop.f32.mrf.mxu1 }
0x2ea4   :  { %v4682_v27 = vadd.f32 %v4658_v39, %v4472_v31  ;;  %v4478_v31 = vadd.f32 %v8132_v18, %v8163_v62 }
0x2ea5   :  { %v4768_v1 = vpop.f32.mrf.mxu0 }
0x2ea6   :  { %v4773_v55 = vadd.f32 %v4768_v1, %v4681_v40  ;;  %v4814_v1 = vadd.f32 %v4652_v49, %v4478_v31 }
0x2ea7   :  { %v4770_v50 = vpop.f32.mrf.mxu0 }
0x2ea8   :  { %v6041_v5 = vmul.f32 -1.442695, %v4773_v55  ;;  %v4774_v36 = vadd.f32 %v4770_v50, %v4682_v27 }
0x2eaa   :  { %6431 = vpow2.f32 %v6041_v5  ;;  %v6042_v12 = vmul.f32 -1.442695, %v4774_v36 }
0x2eac   :  { %6433 = vpow2.f32 %v6042_v12 }
0x2ead   :  { %6435 = vtanh.f32 %v4774_v36 }
0x2eb7   :  { %v6432_v22 = vpop.eup %6431 }
0x2eb8   :  { %v4783_v23 = vadd.f32 1.0, %v6432_v22 }
0x2eb9   :  { %v6434_v13 = vpop.eup %6433 }
0x2eba   :  { %v4784_v9 = vadd.f32 1.0, %v6434_v13  ;;  %v6436_v38 = vpop.eup %6435 }
0x2ebc   :  { %6437 = vrcp.f32 %v4784_v9 }
0x2ebd   :  { %6439 = vrcp.f32 %v4783_v23 }
0x2ec9   :  { %v6438_v10 = vpop.eup %6437 }
0x2eca   :  { %v6440_v63 = vpop.eup %6439  ;;  %v4790_v21 = vsel %vm235_vm1, %v6436_v38, %v6438_v10 }
0x2ecb   :  { %v4796_v43 = vmul.f32 %v6440_v63, %v4790_v21  ;;  %v4795_v35 = vmul.f32 %v6440_v63, %v4793_v52 }
0x2ecd   :  { %4798 = vrot.lane.b32.xlu0 %v4796_v43, %s6820_s0 }
0x2f3f   :  { %v4799_v8 = vpop.permute.xlu0 %4798 }
0x2f40   :  { %v4801_v57 = vadd.f32 %v4799_v8, %v4795_v35 }
0x2f42   :  { %6441 = vtanh.f32 %v4801_v57 }
0x2f4f   :  { %v6442_v25 = vpop.eup %6441 }
0x2f50   :  { %v4803_v6 = vmul.f32 %v6442_v25, %v4790_v21 }
0x2f52   :  { %4805 = vrot.lane.b32.xlu1 %v4803_v6, %s6820_s0 }
0x2fc4   :  { %v4806_v39 = vpop.permute.xlu1 %4805 }
0x2fc5   :  { %4808 = vst.msk [vmem:[#allocation5] sm:$0xff] %vm577_vm2, %v4806_v39  ;;  %6043 = vmatmul.mubr.msk.f32.vlgmr.msra.gmra.mxu1 %vm577_vm2, %v4806_v39 }
0x2fc6   :  { %5104 = vmatpush1.msra.mxu1 %v8197_v14  ;;  %5151 = vmatprep.mubr.f32.mxu1 %v6819_v0 }
0x2fc7   :  { %5105 = vmatprep.subr.mxu1 %v8199_v30 }
0x2fc8   :  { %5106 = vmatpush1.msra.mxu1 %v8202_v47 }
0x2fc9   :  { %5107 = vmatprep.subr.mxu1 %v8206_v34 }
0x2fca   :  { %5108 = vmatpush1.msra.mxu1 %v8210_v61 }
0x2fcb   :  { %5109 = vmatprep.subr.mxu1 %v8214_v60 }
0x2fcc   :  { %5110 = vmatpush1.msra.mxu1 %v8218_v59 }
0x2fcd   :  { %5111 = vmatprep.subr.mxu1 %v8222_v46 }
0x2fce   :  { %5112 = vmatpush1.msra.mxu1 %v8226_v53 }
0x2fcf   :  { %5113 = vmatprep.subr.mxu1 %v8237_v42 }
0x2fd0   :  { %5114 = vmatpush1.msra.mxu1 %v8239_v24 }
0x2fd1   :  { %5115 = vmatprep.subr.mxu1 %v8245_v51 }
0x2fd2   :  { %5116 = vmatpush1.msra.mxu1 %v8247_v56 }
0x2fd3   :  { %5117 = vmatprep.subr.mxu1 %v8253_v41 }
0x2fd4   :  { %5118 = vmatpush1.msra.mxu1 %v8255_v29 }
0x2fd5   :  { %5357 = vmatprep.subr.mxu1 %v8195_v48 }
0x3085   :  { %v4899_v40 = vpop.f32.mrf.mxu1 }
0x3086   :  { %v4904_v27 = vadd.f32 %v4899_v40, %v8191_v32 }
0x3087   :  { %v4901_v55 = vpop.f32.mrf.mxu1 }
0x3088   :  { %v6044_v50 = vmul.f32 -1.442695, %v4904_v27  ;;  %v4905_v5 = vadd.f32 %v4901_v55, %v4814_v1 }
0x308a   :  { %6443 = vpow2.f32 %v6044_v50  ;;  %v6045_v36 = vmul.f32 -1.442695, %v4905_v5 }
0x308c   :  { %6445 = vpow2.f32 %v6045_v36 }
0x308d   :  { %6447 = vtanh.f32 %v4905_v5 }
0x3097   :  { %v6444_v12 = vpop.eup %6443 }
0x3098   :  { %v4914_v13 = vadd.f32 1.0, %v6444_v12 }
0x3099   :  { %v6446_v22 = vpop.eup %6445 }
0x309a   :  { %v4915_v23 = vadd.f32 1.0, %v6446_v22  ;;  %v6448_v9 = vpop.eup %6447 }
0x309c   :  { %6449 = vrcp.f32 %v4915_v23 }
0x309d   :  { %6451 = vrcp.f32 %v4914_v13 }
0x30a9   :  { %v6450_v38 = vpop.eup %6449 }
0x30aa   :  { %v6452_v18 = vpop.eup %6451  ;;  %v4921_v49 = vsel %vm235_vm1, %v6448_v9, %v6450_v38 }
0x30ab   :  { %v4923_v32 = vmul.f32 %v6452_v18, %v4921_v49  ;;  %v4922_v10 = vmul.f32 %v6452_v18, %v4801_v57 }
0x30ad   :  { %4925 = vrot.lane.b32.xlu0 %v4923_v32, %s6820_s0 }
0x311f   :  { %v4926_v63 = vpop.permute.xlu0 %4925 }
0x3120   :  { %v4928_v21 = vadd.f32 %v4926_v63, %v4922_v10 }
0x3122   :  { %6453 = vtanh.f32 %v4928_v21 }
0x312f   :  { %v6454_v43 = vpop.eup %6453 }
0x3130   :  { %v4930_v52 = vmul.f32 %v6454_v43, %v4921_v49 }
0x3132   :  { %4932 = vrot.lane.b32.xlu1 %v4930_v52, %s6820_s0 }
0x31a4   :  { %v4933_v35 = vpop.permute.xlu1 %4932 }
0x31a5   :  { %4935 = vst.msk [vmem:[#allocation5 + $0x8] sm:$0xff] %vm577_vm2, %v4933_v35  ;;  %6046 = vmatmul.mubr.msk.f32.vlgmr.msra.gmra.mxu0 %vm577_vm2, %v4933_v35 }
0x31a6   :  { %5231 = vmatpush1.msra.mxu0 %v8197_v14  ;;  %5278 = vmatprep.mubr.f32.mxu0 %v6819_v0 }
0x31a7   :  { %5232 = vmatprep.subr.mxu0 %v8199_v30 }
0x31a8   :  { %5233 = vmatpush1.msra.mxu0 %v8202_v47 }
0x31a9   :  { %5234 = vmatprep.subr.mxu0 %v8206_v34 }
0x31aa   :  { %5235 = vmatpush1.msra.mxu0 %v8210_v61 }
0x31ab   :  { %5236 = vmatprep.subr.mxu0 %v8214_v60 }
0x31ac   :  { %5237 = vmatpush1.msra.mxu0 %v8218_v59 }
0x31ad   :  { %5238 = vmatprep.subr.mxu0 %v8222_v46 }
0x31ae   :  { %5239 = vmatpush1.msra.mxu0 %v8226_v53 }
0x31af   :  { %5240 = vmatprep.subr.mxu0 %v8237_v42 }
0x31b0   :  { %5241 = vmatpush1.msra.mxu0 %v8239_v24 }
0x31b1   :  { %5242 = vmatprep.subr.mxu0 %v8245_v51 }
0x31b2   :  { %5243 = vmatpush1.msra.mxu0 %v8247_v56 }
0x31b3   :  { %5244 = vmatprep.subr.mxu0 %v8253_v41 }
0x31b4   :  { %5245 = vmatpush1.msra.mxu0 %v8255_v29 }
0x31b5   :  { %5484 = vmatprep.subr.mxu0 %v8195_v48 }
0x3265   :  { %v5026_v8 = vpop.f32.mrf.mxu0 }
0x3266   :  { %v5031_v57 = vadd.f32 %v5026_v8, %v8179_v4 }
0x3267   :  { %v5028_v25 = vpop.f32.mrf.mxu0 }
0x3268   :  { %v6047_v6 = vmul.f32 -1.442695, %v5031_v57  ;;  %v5032_v39 = vadd.f32 %v5028_v25, %v8188_v26 }
0x326a   :  { %6455 = vpow2.f32 %v6047_v6  ;;  %v6048_v31 = vmul.f32 -1.442695, %v5032_v39 }
0x326c   :  { %6457 = vpow2.f32 %v6048_v31 }
0x326d   :  { %6459 = vtanh.f32 %v5032_v39 }
0x3277   :  { %v6456_v40 = vpop.eup %6455 }
0x3278   :  { %v5041_v27 = vadd.f32 1.0, %v6456_v40 }
0x3279   :  { %v6458_v1 = vpop.eup %6457 }
0x327a   :  { %v5042_v55 = vadd.f32 1.0, %v6458_v1  ;;  %v6460_v50 = vpop.eup %6459 }
0x327c   :  { %6461 = vrcp.f32 %v5042_v55 }
0x327d   :  { %6463 = vrcp.f32 %v5041_v27 }
0x3289   :  { %v6462_v5 = vpop.eup %6461 }
0x328a   :  { %v6464_v36 = vpop.eup %6463  ;;  %v5048_v4 = vsel %vm235_vm1, %v6460_v50, %v6462_v5 }
0x328b   :  { %v5050_v12 = vmul.f32 %v6464_v36, %v5048_v4  ;;  %v5049_v26 = vmul.f32 %v6464_v36, %v4928_v21 }
0x328d   :  { %5052 = vrot.lane.b32.xlu0 %v5050_v12, %s6820_s0 }
0x32ff   :  { %v5053_v22 = vpop.permute.xlu0 %5052 }
0x3300   :  { %v5055_v13 = vadd.f32 %v5053_v22, %v5049_v26 }
0x3302   :  { %6465 = vtanh.f32 %v5055_v13 }
0x330f   :  { %v6466_v23 = vpop.eup %6465 }
0x3310   :  { %v5057_v9 = vmul.f32 %v6466_v23, %v5048_v4 }
0x3312   :  { %5059 = vrot.lane.b32.xlu1 %v5057_v9, %s6820_s0 }
0x3384   :  { %v5060_v38 = vpop.permute.xlu1 %5059 }
0x3385   :  { %5062 = vst.msk [vmem:[#allocation5 + $0x10] sm:$0xff] %vm577_vm2, %v5060_v38  ;;  %6049 = vmatmul.mubr.msk.f32.vlgmr.msra.gmra.mxu1 %vm577_vm2, %v5060_v38 }
0x3386   :  { %5358 = vmatpush1.msra.mxu1 %v8197_v14  ;;  %5405 = vmatprep.mubr.f32.mxu1 %v6819_v0 }
0x3387   :  { %5359 = vmatprep.subr.mxu1 %v8199_v30 }
0x3388   :  { %5360 = vmatpush1.msra.mxu1 %v8202_v47 }
0x3389   :  { %5361 = vmatprep.subr.mxu1 %v8206_v34 }
0x338a   :  { %5362 = vmatpush1.msra.mxu1 %v8210_v61 }
0x338b   :  { %5363 = vmatprep.subr.mxu1 %v8214_v60 }
0x338c   :  { %5364 = vmatpush1.msra.mxu1 %v8218_v59 }
0x338d   :  { %5365 = vmatprep.subr.mxu1 %v8222_v46 }
0x338e   :  { %5366 = vmatpush1.msra.mxu1 %v8226_v53 }
0x338f   :  { %5367 = vmatprep.subr.mxu1 %v8237_v42 }
0x3390   :  { %5368 = vmatpush1.msra.mxu1 %v8239_v24 }
0x3391   :  { %5369 = vmatprep.subr.mxu1 %v8245_v51 }
0x3392   :  { %5370 = vmatpush1.msra.mxu1 %v8247_v56 }
0x3393   :  { %5371 = vmatprep.subr.mxu1 %v8253_v41 }
0x3394   :  { %5372 = vmatpush1.msra.mxu1 %v8255_v29 }
0x3395   :  { %5611 = vmatprep.subr.mxu1 %v8195_v48 }
0x3445   :  { %v5153_v18 = vpop.f32.mrf.mxu1 }
0x3446   :  { %v5158_v49 = vadd.f32 %v5153_v18, %v8173_v2 }
0x3447   :  { %v5155_v32 = vpop.f32.mrf.mxu1 }
0x3448   :  { %v6050_v10 = vmul.f32 -1.442695, %v5158_v49  ;;  %v5159_v63 = vadd.f32 %v5155_v32, %v8176_v54 }
0x344a   :  { %6467 = vpow2.f32 %v6050_v10  ;;  %v6051_v21 = vmul.f32 -1.442695, %v5159_v63 }
0x344c   :  { %6469 = vpow2.f32 %v6051_v21 }
0x344d   :  { %6471 = vtanh.f32 %v5159_v63 }
0x3457   :  { %v6468_v43 = vpop.eup %6467 }
0x3458   :  { %v5168_v35 = vadd.f32 1.0, %v6468_v43 }
0x3459   :  { %v6470_v52 = vpop.eup %6469 }
0x345a   :  { %v5169_v8 = vadd.f32 1.0, %v6470_v52  ;;  %v6472_v57 = vpop.eup %6471 }
0x345c   :  { %6473 = vrcp.f32 %v5169_v8 }
0x345d   :  { %6475 = vrcp.f32 %v5168_v35 }
0x3469   :  { %v6474_v25 = vpop.eup %6473 }
0x346a   :  { %v6476_v48 = vpop.eup %6475  ;;  %v5175_v2 = vsel %vm235_vm1, %v6472_v57, %v6474_v25  ;;  %v5715_v25 = vld [vmem:[#allocation25 + $0x38] sm:$0xff] }
0x346b   :  { %v5177_v6 = vmul.f32 %v6476_v48, %v5175_v2  ;;  %v5176_v54 = vmul.f32 %v6476_v48, %v5055_v13 }
0x346d   :  { %5179 = vrot.lane.b32.xlu0 %v5177_v6, %s6820_s0  ;;  %v5713_v6 = vld [vmem:[#allocation25 + $0x28] sm:$0xff] }
0x34df   :  { %v5180_v39 = vpop.permute.xlu0 %5179 }
0x34e0   :  { %v5182_v31 = vadd.f32 %v5180_v39, %v5176_v54  ;;  %v5712_v54 = vld [vmem:[#allocation25 + $0x20] sm:$0xff]  ;;  %v5711_v39 = vld [vmem:[#allocation25 + $0x18] sm:$0xff] }
0x34e2   :  { %6477 = vtanh.f32 %v5182_v31 }
0x34ef   :  { %v6478_v40 = vpop.eup %6477 }
0x34f0   :  { %v5184_v1 = vmul.f32 %v6478_v40, %v5175_v2  ;;  %v5714_v2 = vld [vmem:[#allocation25 + $0x30] sm:$0xff]  ;;  %v5709_v40 = vld [vmem:[#allocation25 + $0x8] sm:$0xff] }
0x34f2   :  { %5186 = vrot.lane.b32.xlu1 %v5184_v1, %s6820_s0  ;;  %v5708_v1 = vld [vmem:[#allocation25] sm:$0xff] }
0x3564   :  { %v5187_v27 = vpop.permute.xlu1 %5186 }
0x3565   :  { %5189 = vst.msk [vmem:[#allocation5 + $0x18] sm:$0xff] %vm577_vm2, %v5187_v27  ;;  %6052 = vmatmul.mubr.msk.f32.vlgmr.msra.gmra.mxu0 %vm577_vm2, %v5187_v27  ;;  %v5699_v27 = vld [vmem:[#allocation5] sm:$0xff] }
0x3566   :  { %5485 = vmatpush1.msra.mxu0 %v8197_v14  ;;  %5532 = vmatprep.mubr.f32.mxu0 %v6819_v0 }
0x3567   :  { %5486 = vmatprep.subr.mxu0 %v8199_v30 }
0x3568   :  { %5487 = vmatpush1.msra.mxu0 %v8202_v47 }
0x3569   :  { %5488 = vmatprep.subr.mxu0 %v8206_v34 }
0x356a   :  { %5489 = vmatpush1.msra.mxu0 %v8210_v61 }
0x356b   :  { %5490 = vmatprep.subr.mxu0 %v8214_v60 }
0x356c   :  { %5491 = vmatpush1.msra.mxu0 %v8218_v59 }
0x356d   :  { %5492 = vmatprep.subr.mxu0 %v8222_v46 }
0x356e   :  { %5493 = vmatpush1.msra.mxu0 %v8226_v53 }
0x356f   :  { %5494 = vmatprep.subr.mxu0 %v8237_v42 }
0x3570   :  { %5495 = vmatpush1.msra.mxu0 %v8239_v24 }
0x3571   :  { %5496 = vmatprep.subr.mxu0 %v8245_v51 }
0x3572   :  { %5497 = vmatpush1.msra.mxu0 %v8247_v56 }
0x3573   :  { %5498 = vmatprep.subr.mxu0 %v8253_v41 }
0x3574   :  { %5499 = vmatpush1.msra.mxu0 %v8255_v29 }
0x3575   :  { %6085 = vmatprep.subr.mxu0 %v6819_v0 }
0x3625   :  { %v5280_v55 = vpop.f32.mrf.mxu0 }
0x3626   :  { %v5285_v50 = vadd.f32 %v5280_v55, %v8167_v44  ;;  %v4508_v55 = vadd.f32 %v8289_v17, %v8163_v62 }
0x3627   :  { %v5282_v5 = vpop.f32.mrf.mxu0 }
0x3628   :  { %v6053_v36 = vmul.f32 -1.442695, %v5285_v50  ;;  %v5286_v4 = vadd.f32 %v5282_v5, %v8170_v37  ;;  %v5449_v5 = vadd.f32 %v8155_v3, %v4508_v55 }
0x362a   :  { %6479 = vpow2.f32 %v6053_v36  ;;  %v6054_v12 = vmul.f32 -1.442695, %v5286_v4 }
0x362c   :  { %6481 = vpow2.f32 %v6054_v12 }
0x362d   :  { %6483 = vtanh.f32 %v5286_v4 }
0x3637   :  { %v6480_v26 = vpop.eup %6479 }
0x3638   :  { %v5295_v13 = vadd.f32 1.0, %v6480_v26 }
0x3639   :  { %v6482_v22 = vpop.eup %6481 }
0x363a   :  { %v5296_v23 = vadd.f32 1.0, %v6482_v22  ;;  %v6484_v9 = vpop.eup %6483 }
0x363c   :  { %6485 = vrcp.f32 %v5296_v23 }
0x363d   :  { %6487 = vrcp.f32 %v5295_v13 }
0x3649   :  { %v6486_v38 = vpop.eup %6485 }
0x364a   :  { %v6488_v18 = vpop.eup %6487  ;;  %v5302_v44 = vsel %vm235_vm1, %v6484_v9, %v6486_v38 }
0x364b   :  { %v5304_v49 = vmul.f32 %v6488_v18, %v5302_v44  ;;  %v5303_v37 = vmul.f32 %v6488_v18, %v5182_v31  ;;  %v5710_v31 = vld [vmem:[#allocation25 + $0x10] sm:$0xff] }
0x364d   :  { %5306 = vrot.lane.b32.xlu0 %v5304_v49, %s6820_s0 }
0x36bf   :  { %v5307_v32 = vpop.permute.xlu0 %5306 }
0x36c0   :  { %v5309_v10 = vadd.f32 %v5307_v32, %v5303_v37 }
0x36c2   :  { %6489 = vtanh.f32 %v5309_v10 }
0x36cf   :  { %v6490_v63 = vpop.eup %6489 }
0x36d0   :  { %v5311_v21 = vmul.f32 %v6490_v63, %v5302_v44 }
0x36d2   :  { %5313 = vrot.lane.b32.xlu1 %v5311_v21, %s6820_s0 }
0x3744   :  { %v5314_v43 = vpop.permute.xlu1 %5313 }
0x3745   :  { %5316 = vst.msk [vmem:[#allocation5 + $0x20] sm:$0xff] %vm577_vm2, %v5314_v43  ;;  %6055 = vmatmul.mubr.msk.f32.vlgmr.msra.gmra.mxu1 %vm577_vm2, %v5314_v43 }
0x3746   :  { %5612 = vmatpush1.msra.mxu1 %v8197_v14  ;;  %5659 = vmatprep.mubr.f32.mxu1 %v6819_v0  ;;  %v4502_v14 = vadd.f32 %v8143_v33, %v8163_v62 }
0x3747   :  { %5613 = vmatprep.subr.mxu1 %v8199_v30 }
0x3748   :  { %5614 = vmatpush1.msra.mxu1 %v8202_v47  ;;  %v5322_v47 = vadd.f32 %v8160_v20, %v4502_v14 }
0x3749   :  { %5615 = vmatprep.subr.mxu1 %v8206_v34 }
0x374a   :  { %5616 = vmatpush1.msra.mxu1 %v8210_v61 }
0x374b   :  { %5617 = vmatprep.subr.mxu1 %v8214_v60 }
0x374c   :  { %5618 = vmatpush1.msra.mxu1 %v8218_v59 }
0x374d   :  { %5619 = vmatprep.subr.mxu1 %v8222_v46 }
0x374e   :  { %5620 = vmatpush1.msra.mxu1 %v8226_v53 }
0x374f   :  { %5621 = vmatprep.subr.mxu1 %v8237_v42 }
0x3750   :  { %5622 = vmatpush1.msra.mxu1 %v8239_v24 }
0x3751   :  { %5623 = vmatprep.subr.mxu1 %v8245_v51 }
0x3752   :  { %5624 = vmatpush1.msra.mxu1 %v8247_v56 }
0x3753   :  { %5625 = vmatprep.subr.mxu1 %v8253_v41 }
0x3754   :  { %5626 = vmatpush1.msra.mxu1 %v8255_v29 }
0x3755   :  { %6104 = vmatprep.subr.mxu1 %v6819_v0 }
0x3805   :  { %v5407_v30 = vpop.f32.mrf.mxu1 }
0x3806   :  { %v5412_v34 = vadd.f32 %v5407_v30, %v8158_v7  ;;  %v4512_v30 = vadd.f32 %v8291_v58, %v8148_v16 }
0x3807   :  { %v5409_v61 = vpop.f32.mrf.mxu1 }
0x3808   :  { %v6056_v60 = vmul.f32 -1.442695, %v5412_v34  ;;  %v5413_v59 = vadd.f32 %v5409_v61, %v5322_v47  ;;  %v4514_v47 = vadd.f32 %v8295_v28, %v8163_v62  ;;  %v5575_v34 = vadd.f32 %v8145_v11, %v4512_v30  ;;  %v5707_v28 = vld [vmem:[%s8524_s17 + $0x38] sm:$0xff] }
0x380a   :  { %6491 = vpow2.f32 %v6056_v60  ;;  %v6057_v46 = vmul.f32 -1.442695, %v5413_v59 }
0x380c   :  { %6493 = vpow2.f32 %v6057_v46 }
0x380d   :  { %6495 = vtanh.f32 %v5413_v59  ;;  %v5576_v59 = vadd.f32 %v8150_v15, %v4514_v47 }
0x3817   :  { %v6492_v53 = vpop.eup %6491 }
0x3818   :  { %v5422_v24 = vadd.f32 1.0, %v6492_v53 }
0x3819   :  { %v6494_v42 = vpop.eup %6493 }
0x381a   :  { %v5423_v51 = vadd.f32 1.0, %v6494_v42  ;;  %v6496_v56 = vpop.eup %6495 }
0x381c   :  { %6497 = vrcp.f32 %v5423_v51 }
0x381d   :  { %6499 = vrcp.f32 %v5422_v24 }
0x3829   :  { %v6498_v33 = vpop.eup %6497 }
0x382a   :  { %v6500_v41 = vpop.eup %6499  ;;  %v5429_v20 = vsel %vm235_vm1, %v6496_v56, %v6498_v33 }
0x382b   :  { %v5431_v7 = vmul.f32 %v6500_v41, %v5429_v20  ;;  %v5430_v29 = vmul.f32 %v6500_v41, %v5309_v10 }
0x382d   :  { %5433 = vrot.lane.b32.xlu0 %v5431_v7, %s6820_s0  ;;  %v5705_v7 = vld [vmem:[%s8524_s17 + $0x28] sm:$0xff] }
0x389f   :  { %v5434_v52 = vpop.permute.xlu0 %5433 }
0x38a0   :  { %v5436_v35 = vadd.f32 %v5434_v52, %v5430_v29 }
0x38a2   :  { %6501 = vtanh.f32 %v5436_v35 }
0x38af   :  { %v6502_v8 = vpop.eup %6501 }
0x38b0   :  { %v5438_v57 = vmul.f32 %v6502_v8, %v5429_v20  ;;  %v5706_v20 = vld [vmem:[%s8524_s17 + $0x30] sm:$0xff]  ;;  %v5703_v8 = vld [vmem:[%s8524_s17 + $0x18] sm:$0xff] }
0x38b2   :  { %5440 = vrot.lane.b32.xlu1 %v5438_v57, %s6820_s0  ;;  %v5702_v57 = vld [vmem:[%s8524_s17 + $0x10] sm:$0xff] }
0x3924   :  { %v5441_v48 = vpop.permute.xlu1 %5440 }
0x3925   :  { %5443 = vst.msk [vmem:[#allocation5 + $0x28] sm:$0xff] %vm577_vm2, %v5441_v48  ;;  %6058 = vmatmul.mubr.msk.f32.vlgmr.msra.gmra.mxu0 %vm577_vm2, %v5441_v48  ;;  %v5700_v48 = vld [vmem:[%s8524_s17] sm:$0xff] }
0x3926   :  { %6086 = vmatpush3.msra.mxu0 %v5715_v25  ;;  %6101 = vmatprep.mubr.msk.f32.mxu0 %vm6821_vm3, %v6819_v0  ;;  %v5701_v25 = vld [vmem:[%s8524_s17 + $0x8] sm:$0xff]  ;;  %s6822_s17 = smov [#allocation27]  }
0x3927   :  { %6087 = vmatprep.subr.mxu0 %v6819_v0  ;;  %s5877_s18 = sshll.u32 %s6822_s17, 4  ;;  %s5878_s18 = int_to_ptr.vmem [resolvable:$true] %s5877_s18 }
0x3928   :  { %6088 = vmatpush3.msra.mxu0 %v5714_v2  ;;  %s6767_s25 = scalar_lea.vmem %s5878_s18, 128  ;;  %p6772_p5 = scmp.lt.s32.totalorder %s5878_s18, %s5878_s18 }
0x3929   :  { %6089 = vmatprep.subr.mxu0 %v6819_v0  ;;  %p6768_p4 = scmp.ne.s32.totalorder %s5878_s18, %s6767_s25  ;;  %p6773_p6 = scmp.lt.s32.totalorder %s6767_s25, %s6767_s25 }
0x392a   :  { %6090 = vmatpush3.msra.mxu0 %v5713_v6 }
0x392b   :  { %6091 = vmatprep.subr.mxu0 %v6819_v0  ;;  %p6774_p7 = por %p6773_p6, %p6772_p5 }
0x392c   :  { %6092 = vmatpush3.msra.mxu0 %v5712_v54 }
0x392d   :  { %6093 = vmatprep.subr.mxu0 %v6819_v0  ;;  %p6775_p8 = pnand %p6774_p7, %p6768_p4 }
0x392e   :  { %6094 = vmatpush3.msra.mxu0 %v5711_v39 }
0x392f   :  { %6095 = vmatprep.subr.mxu0 %v6819_v0 }
0x3930   :  { %6096 = vmatpush3.msra.mxu0 %v5710_v31 }
0x3931   :  { %6097 = vmatprep.subr.mxu0 %v6819_v0 }
0x3932   :  { %6098 = vmatpush3.msra.mxu0 %v5709_v40  ;;  %v6066_v40 = vld [vmem:[%s8526_s19] ss:$0 sm:$0xff] }
0x3933   :  { %6099 = vmatprep.subr.mxu0 %v6819_v0 }
0x3934   :  { %6100 = vmatpush3.msra.mxu0 %v5708_v1 }
0x3935   :  { %6102 = vmatmul.mubr.msk.f32.vlgmr.msra.gmra.mxu0 %vm577_vm2, %v5699_v27 }
0x39e5   :  { %v5534_v50 = vpop.f32.mrf.mxu0 }
0x39e6   :  { %v5539_v36 = vadd.f32 %v5534_v50, %v8153_v19 }
0x39e7   :  { %v5536_v4 = vpop.f32.mrf.mxu0 }
0x39e8   :  { %v6059_v12 = vmul.f32 -1.442695, %v5539_v36  ;;  %v5540_v26 = vadd.f32 %v5536_v4, %v5449_v5 }
0x39ea   :  { %6503 = vpow2.f32 %v6059_v12  ;;  %v6060_v22 = vmul.f32 -1.442695, %v5540_v26 }
0x39ec   :  { %6505 = vpow2.f32 %v6060_v22 }
0x39ed   :  { %6507 = vtanh.f32 %v5540_v26 }
0x39f5   :  { %v8447_v13 = vpop.f32.mrf.mxu0 }
0x39f7   :  { %v6504_v23 = vpop.eup %6503  ;;  %v6103_v9 = vpop.f32.mrf.mxu0 }
0x39f8   :  { %v5549_v18 = vadd.f32 1.0, %v6504_v23 }
0x39f9   :  { %v6506_v38 = vpop.eup %6505 }
0x39fa   :  { %v5550_v44 = vadd.f32 1.0, %v6506_v38  ;;  %v6508_v17 = vpop.eup %6507 }
0x39fc   :  { %6509 = vrcp.f32 %v5550_v44 }
0x39fd   :  { %6511 = vrcp.f32 %v5549_v18 }
0x3a09   :  { %v6510_v3 = vpop.eup %6509 }
0x3a0a   :  { %v6512_v49 = vpop.eup %6511  ;;  %v5556_v19 = vsel %vm235_vm1, %v6508_v17, %v6510_v3 }
0x3a0b   :  { %v5558_v37 = vmul.f32 %v6512_v49, %v5556_v19  ;;  %v5557_v32 = vmul.f32 %v6512_v49, %v5436_v35 }
0x3a0d   :  { %5560 = vrot.lane.b32.xlu0 %v5558_v37, %s6820_s0 }
0x3a7f   :  { %v5561_v10 = vpop.permute.xlu0 %5560 }
0x3a80   :  { %v5563_v63 = vadd.f32 %v5561_v10, %v5557_v32 }
0x3a82   :  { %6513 = vtanh.f32 %v5563_v63 }
0x3a8f   :  { %v6514_v21 = vpop.eup %6513 }
0x3a90   :  { %v5565_v43 = vmul.f32 %v6514_v21, %v5556_v19 }
0x3a92   :  { %5567 = vrot.lane.b32.xlu1 %v5565_v43, %s6820_s0 }
0x3b04   :  { %v5568_v14 = vpop.permute.xlu1 %5567 }
0x3b05   :  { %5570 = vst.msk [vmem:[#allocation5 + $0x30] sm:$0xff] %vm577_vm2, %v5568_v14  ;;  %6061 = vmatmul.mubr.msk.f32.vlgmr.msra.gmra.mxu1 %vm577_vm2, %v5568_v14 }
0x3b06   :  { %6120 = vmatprep.mubr.msk.f32.mxu1 %vm6821_vm3, %v6819_v0  ;;  %6105 = vmatpush3.msra.mxu1 %v5707_v28 }
0x3b07   :  { %6106 = vmatprep.subr.mxu1 %v6819_v0 }
0x3b08   :  { %6107 = vmatpush3.msra.mxu1 %v5706_v20 }
0x3b09   :  { %6108 = vmatprep.subr.mxu1 %v6819_v0 }
0x3b0a   :  { %6109 = vmatpush3.msra.mxu1 %v5705_v7 }
0x3b0b   :  { %6110 = vmatprep.subr.mxu1 %v6819_v0 }
0x3b0c   :  { %6111 = vmatpush3.msra.mxu1 %v5704_v45 }
0x3b0d   :  { %6112 = vmatprep.subr.mxu1 %v6819_v0 }
0x3b0e   :  { %6113 = vmatpush3.msra.mxu1 %v5703_v8 }
0x3b0f   :  { %6114 = vmatprep.subr.mxu1 %v6819_v0 }
0x3b10   :  { %6115 = vmatpush3.msra.mxu1 %v5702_v57 }
0x3b11   :  { %6116 = vmatprep.subr.mxu1 %v6819_v0 }
0x3b12   :  { %6117 = vmatpush3.msra.mxu1 %v5701_v25 }
0x3b13   :  { %6118 = vmatprep.subr.mxu1 %v6819_v0 }
0x3b14   :  { %6119 = vmatpush3.msra.mxu1 %v5700_v48 }
0x3bc5   :  { %v5661_v61 = vpop.f32.mrf.mxu1 }
0x3bc6   :  { %v5666_v60 = vadd.f32 %v5661_v61, %v5575_v34 }
0x3bc7   :  { %v5663_v46 = vpop.f32.mrf.mxu1 }
0x3bc8   :  { %v6062_v53 = vmul.f32 -1.442695, %v5666_v60  ;;  %v5667_v42 = vadd.f32 %v5663_v46, %v5576_v59 }
0x3bca   :  { %6515 = vpow2.f32 %v6062_v53  ;;  %v6063_v24 = vmul.f32 -1.442695, %v5667_v42 }
0x3bcc   :  { %6517 = vpow2.f32 %v6063_v24 }
0x3bcd   :  { %6519 = vtanh.f32 %v5667_v42 }
0x3bd7   :  { %v6516_v51 = vpop.eup %6515 }
0x3bd8   :  { %v5676_v33 = vadd.f32 1.0, %v6516_v51 }
0x3bd9   :  { %v6518_v56 = vpop.eup %6517 }
0x3bda   :  { %v5677_v41 = vadd.f32 1.0, %v6518_v56  ;;  %v6520_v16 = vpop.eup %6519 }
0x3bdc   :  { %6521 = vrcp.f32 %v5677_v41 }
0x3bdd   :  { %6523 = vrcp.f32 %v5676_v33 }
0x3be9   :  { %v6522_v62 = vpop.eup %6521 }
0x3bea   :  { %v6524_v11 = vpop.eup %6523  ;;  %v5683_v58 = vsel %vm235_vm1, %v6520_v16, %v6522_v62 }
0x3beb   :  { %v5685_v15 = vmul.f32 %v6524_v11, %v5683_v58  ;;  %v5684_v29 = vmul.f32 %v6524_v11, %v5563_v63 }
0x3bed   :  { %5687 = vrot.lane.b32.xlu0 %v5685_v15, %s6820_s0 }
0x3c5f   :  { %v5688_v52 = vpop.permute.xlu0 %5687 }
0x3c60   :  { %v5690_v35 = vadd.f32 %v5688_v52, %v5684_v29 }
0x3c62   :  { %6525 = vtanh.f32 %v5690_v35 }
0x3c6f   :  { %v6526_v2 = vpop.eup %6525 }
0x3c70   :  { %v5692_v6 = vmul.f32 %v6526_v2, %v5683_v58 }
0x3c72   :  { %5694 = vrot.lane.b32.xlu1 %v5692_v6, %s6820_s0 }
0x3ce4   :  { %v5695_v54 = vpop.permute.xlu1 %5694 }
0x3ce5   :  { %5697 = vst.msk [vmem:[#allocation5 + $0x38] sm:$0xff] %vm577_vm2, %v5695_v54 }
0x3cec   :  { %v5698_v39 = vld [vmem:[#allocation5 + $0x38] sm:$0xff] }
0x3ced   :  { %6121 = vmatmul.mubr.msk.f32.vlgmr.msra.gmra.mxu1 %vm577_vm2, %v5698_v39 }
0x3dad   :  { %v5858_v31 = vpop.f32.mrf.mxu1 }
0x3dae   :  { %v5859_v0 = vadd.f32 %v5858_v31, %v8447_v13 }
0x3daf   :  { %v6122_v1 = vpop.f32.mrf.mxu1 }
0x3db0   :  { %v5869_v27 = vadd.f32 %v6066_v40, %v5859_v0 }
0x3db2   :  { %5870 = vst [vmem:[#allocation27] sm:$0xff] %v5869_v27 }
0x3db3   :  { %6778 = shalt.err (!%p6775_p8)
}
0x3db4   :  { %5880 = dma.vmem_to_hbm [thread:$0]  %s5878_s18, 128, %s8527_s20, [#allocation9]  }
0x3db5   :  { %6801 = dma.done.wait [#allocation9], 128  }
0x3db6   :  { %6802 = vsyncadd [#allocation9], 4294967168 }
0x3db7   :  { %5884 = vsyncpa [#allocation8], 1 }
0x3db8   :  { %5885 = vsyncpa [#allocation11], 1 }
0x3db9   :  { %5886 = vsyncpa [#allocation14], 1 }
0x3dba   :  { %5887 = vsyncpa [#allocation17], 1 }
0x3dbb   :  { %5888 = vsyncpa [#allocation20], 1 }
0x3dbc   :  { %5889 = vsyncpa [#allocation23], 1 }
0x3dbd   :  { %5890 = vsyncpa [#allocation26], 1 }
0x3dbe   :  { %5891 = vsyncpa [#allocation9], 1 }

</bundles_post_ra>
